<compile_context>
chip_gen: v5e
topology: v5e:2x2
jax: 0.10.0
libtpu: 0.0.40
codegen_flags: <defaults>
</compile_context>

<pallas_src>
import functools

import jax
import jax.numpy as jnp
from jax.experimental import pallas as pl
from jax.experimental.pallas import tpu as pltpu

_VMEM_LIMIT = 32 * 1024 * 1024  # safe on v5e/v6e (128 MiB) and v7x (64 MiB)
_COMPILER_PARAMS = pltpu.CompilerParams(
    dimension_semantics=("parallel",), vmem_limit_bytes=_VMEM_LIMIT)


def _round_up(v, m):
    return (v + m - 1) // m * m


def _pick_block_rows(m, target):
    """Largest row tile <= target that divides m and is a sublane multiple."""
    if m <= target:
        return m
    for t in range(target, 0, -1):
        if m % t == 0 and t % 8 == 0:
            return t
    return m  # fall back to a single full block


# ---------------------------------------------------------------------------
# Fused (x @ w + b [+ ReLU]) kernel: M-tiled, bf16 MXU operands, f32 epilogue.
# ---------------------------------------------------------------------------
def _matmul_bias_act_kernel(x_ref, w_ref, b_ref, o_ref, *, apply_relu):
    acc = jnp.dot(x_ref[...], w_ref[...], preferred_element_type=jnp.float32)
    acc = acc + b_ref[...]
    if apply_relu:
        acc = jnp.maximum(acc, 0.0)
    o_ref[...] = acc.astype(o_ref.dtype)


def matmul_bias_act(x, w, b, *, relu, out_dtype=jnp.float32, block_m=1024):
    """x: (M, K) bf16, w: (K, N) bf16, b: (N,) f32 -> (M, N) out_dtype."""
    M, K = x.shape
    N = w.shape[1]
    tm = _pick_block_rows(M, block_m)
    kernel = functools.partial(_matmul_bias_act_kernel, apply_relu=relu)
    return pl.pallas_call(
        kernel,
        out_shape=jax.ShapeDtypeStruct((M, N), out_dtype),
        grid=(M // tm,),
        in_specs=[
            pl.BlockSpec((tm, K), lambda i: (i, 0)),
            pl.BlockSpec((K, N), lambda i: (0, 0)),   # VMEM-resident weight
            pl.BlockSpec((1, N), lambda i: (0, 0)),   # VMEM-resident bias
        ],
        out_specs=pl.BlockSpec((tm, N), lambda i: (i, 0)),
        compiler_params=_COMPILER_PARAMS,
    )(x, w, b.reshape(1, N).astype(jnp.float32))


# ---------------------------------------------------------------------------
# MaxPool2d(2, 2) as a single 4-way-max kernel with lane-dense I/O.
# ---------------------------------------------------------------------------
def _max4_kernel(a_ref, b_ref, c_ref, d_ref, o_ref):
    a = a_ref[...].astype(jnp.float32)
    b = b_ref[...].astype(jnp.float32)
    c = c_ref[...].astype(jnp.float32)
    d = d_ref[...].astype(jnp.float32)
    o_ref[...] = jnp.maximum(jnp.maximum(a, b), jnp.maximum(c, d)).astype(o_ref.dtype)


def maxpool2x2_nhwc(x):
    """2x2 / stride-2 max pool on an NHWC tensor (even H and W required)."""
    B, H, W, C = x.shape
    assert H % 2 == 0 and W % 2 == 0, "MaxPool2d(2,2) needs even spatial dims"
    Ho, Wo = H // 2, W // 2
    L = Ho * Wo * C
    # TODO(synk): the 4 stride-2 taps are still extracted with XLA slices; an
    # in-kernel strided gather would remove one HBM round trip.
    sub = lambda di, dj: x[:, di::2, dj::2, :].reshape(B, L)
    tb = _pick_block_rows(B, 64)
    out = pl.pallas_call(
        _max4_kernel,
        out_shape=jax.ShapeDtypeStruct((B, L), x.dtype),
        grid=(B // tb,),
        in_specs=[pl.BlockSpec((tb, L), lambda i: (i, 0)) for _ in range(4)],
        out_specs=pl.BlockSpec((tb, L), lambda i: (i, 0)),
        compiler_params=_COMPILER_PARAMS,
    )(sub(0, 0), sub(0, 1), sub(1, 0), sub(1, 1))
    return out.reshape(B, Ho, Wo, C)


# ---------------------------------------------------------------------------
# Conv2d (stride 1) + bias + ReLU via NHWC-ordered im2col + fused matmul.
# ---------------------------------------------------------------------------
def conv2d_relu(x_nhwc, w_oihw, b, *, padding=0, cout_pad=None, block_m=1024):
    """x_nhwc: (B,H,W,Cin) bf16 (Cin may contain zero-padded channels).
    w_oihw: (Cout, Cin_w, kh, kw) f32 (PyTorch layout), Cin_w <= Cin.
    Returns (B, Ho, Wo, Cout_pad) bf16 with channels [Cout:Cout_pad] == 0."""
    B, H, W, Cin = x_nhwc.shape
    Cout, Cin_w, kh, kw = w_oihw.shape
    assert Cin_w <= Cin
    if padding:
        x_nhwc = jnp.pad(
            x_nhwc, ((0, 0), (padding, padding), (padding, padding), (0, 0)))
    Hp, Wp = x_nhwc.shape[1], x_nhwc.shape[2]
    Ho, Wo = Hp - kh + 1, Wp - kw + 1

    # im2col directly in (B, Ho, Wo, K) order with features ordered (di,dj,ci):
    # flattening to (M, K) only merges leading dims -> no patch-matrix transpose.
    # TODO(synk): building patches inside the kernel from a VMEM-resident image
    # tile would keep the 25x expansion out of HBM entirely.
    K = kh * kw * Cin
    Kp = _round_up(K, 8)
    cols = [x_nhwc[:, di:di + Ho, dj:dj + Wo, :]
            for di in range(kh) for dj in range(kw)]
    if Kp != K:
        cols.append(jnp.zeros((B, Ho, Wo, Kp - K), x_nhwc.dtype))
    patches = jnp.concatenate(cols, axis=-1).reshape(B * Ho * Wo, Kp)

    # Weight -> (kh, kw, Cin, Cout) -> (K, Cout), matching the (di, dj, ci)
    # patch-feature order; zero-pad the channel / K / Cout dims.
    Cp = Cout if cout_pad is None else cout_pad
    wt = jnp.transpose(w_oihw, (2, 3, 1, 0))                   # (kh,kw,Cin_w,Cout)
    wt = jnp.pad(wt, ((0, 0), (0, 0), (0, Cin - Cin_w), (0, 0)))
    wmat = jnp.pad(wt.reshape(K, Cout), ((0, Kp - K), (0, Cp - Cout)))
    bias = jnp.pad(b, (0, Cp - Cout))

    out = matmul_bias_act(patches, wmat.astype(jnp.bfloat16), bias,
                          relu=True, out_dtype=jnp.bfloat16, block_m=block_m)
    # TODO(synk): the (M, Cp) output is still a narrow-lane masked store; a
    # transposed (Cp, M) product would be lane-dense but needs a channel-major
    # inter-layer layout.
    return out.reshape(B, Ho, Wo, Cp)


# ---------------------------------------------------------------------------
# fc1 -> ReLU -> fc2 -> ReLU -> fc3 fused into one pallas_call.
# ---------------------------------------------------------------------------
def _mlp_kernel(x_ref, w1_ref, b1_ref, w2_ref, b2_ref, w3_ref, b3_ref, o_ref):
    h = jnp.dot(x_ref[...], w1_ref[...], preferred_element_type=jnp.float32)
    h = jnp.maximum(h + b1_ref[...], 0.0).astype(w2_ref.dtype)
    h = jnp.dot(h, w2_ref[...], preferred_element_type=jnp.float32)
    h = jnp.maximum(h + b2_ref[...], 0.0).astype(w3_ref.dtype)
    y = jnp.dot(h, w3_ref[...], preferred_element_type=jnp.float32)
    o_ref[...] = (y + b3_ref[...]).astype(o_ref.dtype)


def mlp_fused(x, w1, b1, w2, b2, w3, b3, *, block_b=256):
    B, K1 = x.shape
    N1, N2, N3 = w1.shape[1], w2.shape[1], w3.shape[1]
    tb = _pick_block_rows(B, block_b)
    return pl.pallas_call(
        _mlp_kernel,
        out_shape=jax.ShapeDtypeStruct((B, N3), jnp.float32),
        grid=(B // tb,),
        in_specs=[
            pl.BlockSpec((tb, K1), lambda i: (i, 0)),
            pl.BlockSpec((K1, N1), lambda i: (0, 0)),
            pl.BlockSpec((1, N1), lambda i: (0, 0)),
            pl.BlockSpec((N1, N2), lambda i: (0, 0)),
            pl.BlockSpec((1, N2), lambda i: (0, 0)),
            pl.BlockSpec((N2, N3), lambda i: (0, 0)),
            pl.BlockSpec((1, N3), lambda i: (0, 0)),
        ],
        out_specs=pl.BlockSpec((tb, N3), lambda i: (i, 0)),
        compiler_params=_COMPILER_PARAMS,
    )(x,
      w1, b1.reshape(1, N1).astype(jnp.float32),
      w2, b2.reshape(1, N2).astype(jnp.float32),
      w3, b3.reshape(1, N3).astype(jnp.float32))


# ---------------------------------------------------------------------------
# LeNet5 parameters + forward
# ---------------------------------------------------------------------------
def init_params(key):
    ks = jax.random.split(key, 10)
    s = 0.05
    return {
        "conv1_w": s * jax.random.normal(ks[0], (6, 1, 5, 5), jnp.float32),
        "conv1_b": s * jax.random.normal(ks[1], (6,), jnp.float32),
        "conv2_w": s * jax.random.normal(ks[2], (16, 6, 5, 5), jnp.float32),
        "conv2_b": s * jax.random.normal(ks[3], (16,), jnp.float32),
        # FC weights stored (in, out) == PyTorch W.T; fc1 rows follow PyTorch's
        # NCHW flatten order.
        "fc1_w": s * jax.random.normal(ks[4], (2704, 120), jnp.float32),
        "fc1_b": s * jax.random.normal(ks[5], (120,), jnp.float32),
        "fc2_w": s * jax.random.normal(ks[6], (120, 84), jnp.float32),
        "fc2_b": s * jax.random.normal(ks[7], (84,), jnp.float32),
        "fc3_w": s * jax.random.normal(ks[8], (84, 1), jnp.float32),
        "fc3_b": s * jax.random.normal(ks[9], (1,), jnp.float32),
    }


@jax.jit
def lenet5_forward(x, params):
    """x: (B, 1, 60, 60) f32 NCHW -> (B, 1) f32.

    Matches LeNet5.forward.  MXU matmuls use bf16 operands with f32
    accumulation (per perf review); for bit-level f32 parity with PyTorch use
    f32 operands and precision=jax.lax.Precision.HIGHEST instead.
    """
    B, Cin, H, W = x.shape
    # NCHW -> NHWC is a free reshape because Cin == 1.
    h = x.astype(jnp.bfloat16).reshape(B, H, W, Cin)
    h = conv2d_relu(h, params["conv1_w"], params["conv1_b"],
                    padding=2, cout_pad=8)                      # (B, 60, 60, 8)
    h = maxpool2x2_nhwc(h)                                      # (B, 30, 30, 8)
    h = conv2d_relu(h, params["conv2_w"], params["conv2_b"])    # (B, 26, 26, 16)
    h = maxpool2x2_nhwc(h)                                      # (B, 13, 13, 16)
    # PyTorch flattens NCHW: transpose the tiny pooled map before flattening.
    h = jnp.transpose(h, (0, 3, 1, 2)).reshape(B, -1)           # (B, 2704) bf16
    # fc3 output padded to 128 lanes for unmasked stores; sliced back below.
    w3 = jnp.pad(params["fc3_w"], ((0, 0), (0, 127)))
    b3 = jnp.pad(params["fc3_b"], (0, 127))
    out = mlp_fused(h,
                    params["fc1_w"].astype(jnp.bfloat16), params["fc1_b"],
                    params["fc2_w"].astype(jnp.bfloat16), params["fc2_b"],
                    w3.astype(jnp.bfloat16), b3)                # (B, 128) f32
    return out[:, :1]


if __name__ == "__main__":
    key = jax.random.PRNGKey(0)
    pkey, xkey = jax.random.split(key)
    params = init_params(pkey)
    # 60x60 input so that 16 * 13 * 13 == 2704 matches fc1 (as the module implies).
    x = jax.random.normal(xkey, (2, 1, 60, 60), jnp.float32)
    out = jax.block_until_ready(lenet5_forward(x, params))
    assert out.shape == (2, 1), out.shape
    print("KERNEL_OK")
</pallas_src>

<mosaic_0001>
module attributes {stable_mosaic.version = 11 : i64} {
  func.func @_matmul_bias_act_kernel(%arg0: i32, %arg1: memref<800x32xbf16, #tpu.memory_space<vmem>>, %arg2: memref<32x8xbf16, #tpu.memory_space<vmem>>, %arg3: memref<1x8xf32, #tpu.memory_space<vmem>>, %arg4: memref<800x8xbf16, #tpu.memory_space<vmem>>) attributes {dimension_semantics = [#tpu.dimension_semantics<parallel>], iteration_bounds = array<i64: 9>, scalar_prefetch = 0 : i64, scratch_operands = 0 : i64, tpu.core_type = #tpu.core_type<tc>, window_params = [{transform_indices = @transform_0, window_bounds = array<i64: 800, 32>}, {pipeline_mode = #tpu.pipeline_mode<synchronous>, transform_indices = @transform_1, window_bounds = array<i64: 32, 8>}, {pipeline_mode = #tpu.pipeline_mode<synchronous>, transform_indices = @transform_2, window_bounds = array<i64: 1, 8>}, {transform_indices = @transform_3, window_bounds = array<i64: 800, 8>}]} {
    %c0 = arith.constant 0 : index
    %c0_0 = arith.constant 0 : index
    %0 = vector.load %arg1[%c0, %c0_0] : memref<800x32xbf16, #tpu.memory_space<vmem>>, vector<800x32xbf16>
    %c0_1 = arith.constant 0 : index
    %c0_2 = arith.constant 0 : index
    %1 = vector.load %arg2[%c0_1, %c0_2] : memref<32x8xbf16, #tpu.memory_space<vmem>>, vector<32x8xbf16>
    %cst = arith.constant dense<0.000000e+00> : vector<800x8xf32>
    %2 = tpu.matmul %0, %1, %cst {dimension_numbers = #tpu.dot_dimension_numbers<[1], [0], [0], [1], [0, 0, 1, 1], [], []>} : vector<800x32xbf16>, vector<32x8xbf16>, vector<800x8xf32> -> vector<800x8xf32>
    %c0_3 = arith.constant 0 : index
    %c0_4 = arith.constant 0 : index
    %3 = vector.load %arg3[%c0_3, %c0_4] : memref<1x8xf32, #tpu.memory_space<vmem>>, vector<1x8xf32>
    %4 = vector.broadcast %3 : vector<1x8xf32> to vector<800x8xf32>
    %5 = arith.addf %2, %4 : vector<800x8xf32>
    %cst_5 = arith.constant 0.000000e+00 : f32
    %6 = vector.broadcast %cst_5 : f32 to vector<800x8xf32>
    %7 = arith.maximumf %5, %6 : vector<800x8xf32>
    %8 = arith.truncf %7 : vector<800x8xf32> to vector<800x8xbf16>
    %c0_6 = arith.constant 0 : index
    %c0_7 = arith.constant 0 : index
    %9 = vector.load %arg4[%c0_6, %c0_7] : memref<800x8xbf16, #tpu.memory_space<vmem>>, vector<800x8xbf16>
    tpu.vector_store %arg4[%c0_6, %c0_7], %8 {strides = array<i32>} : memref<800x8xbf16, #tpu.memory_space<vmem>>, vector<800x8xbf16>,
    return
  }
  func.func @transform_0(%arg0: i32) -> (i32, i32) {
    %c0_i32 = arith.constant 0 : i32
    %c0_i32_0 = arith.constant 0 : i32
    return %arg0, %c0_i32 : i32, i32
  }
  func.func @transform_1(%arg0: i32) -> (i32, i32) {
    %c0_i32 = arith.constant 0 : i32
    %c0_i32_0 = arith.constant 0 : i32
    %c0_i32_1 = arith.constant 0 : i32
    return %c0_i32, %c0_i32_0 : i32, i32
  }
  func.func @transform_2(%arg0: i32) -> (i32, i32) {
    %c0_i32 = arith.constant 0 : i32
    %c0_i32_0 = arith.constant 0 : i32
    %c0_i32_1 = arith.constant 0 : i32
    return %c0_i32, %c0_i32_0 : i32, i32
  }
  func.func @transform_3(%arg0: i32) -> (i32, i32) {
    %c0_i32 = arith.constant 0 : i32
    %c0_i32_0 = arith.constant 0 : i32
    return %arg0, %c0_i32 : i32, i32
  }
}

module attributes {stable_mosaic.version = 11 : i64} {
  func.func @_max4_kernel(%arg0: i32, %arg1: memref<2x7200xbf16, #tpu.memory_space<vmem>>, %arg2: memref<2x7200xbf16, #tpu.memory_space<vmem>>, %arg3: memref<2x7200xbf16, #tpu.memory_space<vmem>>, %arg4: memref<2x7200xbf16, #tpu.memory_space<vmem>>, %arg5: memref<2x7200xbf16, #tpu.memory_space<vmem>>) attributes {dimension_semantics = [#tpu.dimension_semantics<parallel>], iteration_bounds = array<i64: 1>, scalar_prefetch = 0 : i64, scratch_operands = 0 : i64, tpu.core_type = #tpu.core_type<tc>, window_params = [{transform_indices = @transform_0, window_bounds = array<i64: 2, 7200>}, {transform_indices = @transform_1, window_bounds = array<i64: 2, 7200>}, {transform_indices = @transform_2, window_bounds = array<i64: 2, 7200>}, {transform_indices = @transform_3, window_bounds = array<i64: 2, 7200>}, {transform_indices = @transform_4, window_bounds = array<i64: 2, 7200>}]} {
    %c0 = arith.constant 0 : index
    %c0_0 = arith.constant 0 : index
    %0 = vector.load %arg1[%c0, %c0_0] : memref<2x7200xbf16, #tpu.memory_space<vmem>>, vector<2x7200xbf16>
    %1 = arith.extf %0 : vector<2x7200xbf16> to vector<2x7200xf32>
    %c0_1 = arith.constant 0 : index
    %c0_2 = arith.constant 0 : index
    %2 = vector.load %arg2[%c0_1, %c0_2] : memref<2x7200xbf16, #tpu.memory_space<vmem>>, vector<2x7200xbf16>
    %3 = arith.extf %2 : vector<2x7200xbf16> to vector<2x7200xf32>
    %c0_3 = arith.constant 0 : index
    %c0_4 = arith.constant 0 : index
    %4 = vector.load %arg3[%c0_3, %c0_4] : memref<2x7200xbf16, #tpu.memory_space<vmem>>, vector<2x7200xbf16>
    %5 = arith.extf %4 : vector<2x7200xbf16> to vector<2x7200xf32>
    %c0_5 = arith.constant 0 : index
    %c0_6 = arith.constant 0 : index
    %6 = vector.load %arg4[%c0_5, %c0_6] : memref<2x7200xbf16, #tpu.memory_space<vmem>>, vector<2x7200xbf16>
    %7 = arith.extf %6 : vector<2x7200xbf16> to vector<2x7200xf32>
    %8 = arith.maximumf %1, %3 : vector<2x7200xf32>
    %9 = arith.maximumf %5, %7 : vector<2x7200xf32>
    %10 = arith.maximumf %8, %9 : vector<2x7200xf32>
    %11 = arith.truncf %10 : vector<2x7200xf32> to vector<2x7200xbf16>
    %c0_7 = arith.constant 0 : index
    %c0_8 = arith.constant 0 : index
    %12 = vector.load %arg5[%c0_7, %c0_8] : memref<2x7200xbf16, #tpu.memory_space<vmem>>, vector<2x7200xbf16>
    tpu.vector_store %arg5[%c0_7, %c0_8], %11 {strides = array<i32>} : memref<2x7200xbf16, #tpu.memory_space<vmem>>, vector<2x7200xbf16>,
    return
  }
  func.func @transform_0(%arg0: i32) -> (i32, i32) {
    %c0_i32 = arith.constant 0 : i32
    %c0_i32_0 = arith.constant 0 : i32
    return %arg0, %c0_i32 : i32, i32
  }
  func.func @transform_1(%arg0: i32) -> (i32, i32) {
    %c0_i32 = arith.constant 0 : i32
    %c0_i32_0 = arith.constant 0 : i32
    return %arg0, %c0_i32 : i32, i32
  }
  func.func @transform_2(%arg0: i32) -> (i32, i32) {
    %c0_i32 = arith.constant 0 : i32
    %c0_i32_0 = arith.constant 0 : i32
    return %arg0, %c0_i32 : i32, i32
  }
  func.func @transform_3(%arg0: i32) -> (i32, i32) {
    %c0_i32 = arith.constant 0 : i32
    %c0_i32_0 = arith.constant 0 : i32
    return %arg0, %c0_i32 : i32, i32
  }
  func.func @transform_4(%arg0: i32) -> (i32, i32) {
    %c0_i32 = arith.constant 0 : i32
    %c0_i32_0 = arith.constant 0 : i32
    return %arg0, %c0_i32 : i32, i32
  }
}

module attributes {stable_mosaic.version = 11 : i64} {
  func.func @_matmul_bias_act_kernel(%arg0: i32, %arg1: memref<104x200xbf16, #tpu.memory_space<vmem>>, %arg2: memref<200x16xbf16, #tpu.memory_space<vmem>>, %arg3: memref<1x16xf32, #tpu.memory_space<vmem>>, %arg4: memref<104x16xbf16, #tpu.memory_space<vmem>>) attributes {dimension_semantics = [#tpu.dimension_semantics<parallel>], iteration_bounds = array<i64: 13>, scalar_prefetch = 0 : i64, scratch_operands = 0 : i64, tpu.core_type = #tpu.core_type<tc>, window_params = [{transform_indices = @transform_0, window_bounds = array<i64: 104, 200>}, {pipeline_mode = #tpu.pipeline_mode<synchronous>, transform_indices = @transform_1, window_bounds = array<i64: 200, 16>}, {pipeline_mode = #tpu.pipeline_mode<synchronous>, transform_indices = @transform_2, window_bounds = array<i64: 1, 16>}, {transform_indices = @transform_3, window_bounds = array<i64: 104, 16>}]} {
    %c0 = arith.constant 0 : index
    %c0_0 = arith.constant 0 : index
    %0 = vector.load %arg1[%c0, %c0_0] : memref<104x200xbf16, #tpu.memory_space<vmem>>, vector<104x200xbf16>
    %c0_1 = arith.constant 0 : index
    %c0_2 = arith.constant 0 : index
    %1 = vector.load %arg2[%c0_1, %c0_2] : memref<200x16xbf16, #tpu.memory_space<vmem>>, vector<200x16xbf16>
    %cst = arith.constant dense<0.000000e+00> : vector<104x16xf32>
    %2 = tpu.matmul %0, %1, %cst {dimension_numbers = #tpu.dot_dimension_numbers<[1], [0], [0], [1], [0, 0, 1, 1], [], []>} : vector<104x200xbf16>, vector<200x16xbf16>, vector<104x16xf32> -> vector<104x16xf32>
    %c0_3 = arith.constant 0 : index
    %c0_4 = arith.constant 0 : index
    %3 = vector.load %arg3[%c0_3, %c0_4] : memref<1x16xf32, #tpu.memory_space<vmem>>, vector<1x16xf32>
    %4 = vector.broadcast %3 : vector<1x16xf32> to vector<104x16xf32>
    %5 = arith.addf %2, %4 : vector<104x16xf32>
    %cst_5 = arith.constant 0.000000e+00 : f32
    %6 = vector.broadcast %cst_5 : f32 to vector<104x16xf32>
    %7 = arith.maximumf %5, %6 : vector<104x16xf32>
    %8 = arith.truncf %7 : vector<104x16xf32> to vector<104x16xbf16>
    %c0_6 = arith.constant 0 : index
    %c0_7 = arith.constant 0 : index
    %9 = vector.load %arg4[%c0_6, %c0_7] : memref<104x16xbf16, #tpu.memory_space<vmem>>, vector<104x16xbf16>
    tpu.vector_store %arg4[%c0_6, %c0_7], %8 {strides = array<i32>} : memref<104x16xbf16, #tpu.memory_space<vmem>>, vector<104x16xbf16>,
    return
  }
  func.func @transform_0(%arg0: i32) -> (i32, i32) {
    %c0_i32 = arith.constant 0 : i32
    %c0_i32_0 = arith.constant 0 : i32
    return %arg0, %c0_i32 : i32, i32
  }
  func.func @transform_1(%arg0: i32) -> (i32, i32) {
    %c0_i32 = arith.constant 0 : i32
    %c0_i32_0 = arith.constant 0 : i32
    %c0_i32_1 = arith.constant 0 : i32
    return %c0_i32, %c0_i32_0 : i32, i32
  }
  func.func @transform_2(%arg0: i32) -> (i32, i32) {
    %c0_i32 = arith.constant 0 : i32
    %c0_i32_0 = arith.constant 0 : i32
    %c0_i32_1 = arith.constant 0 : i32
    return %c0_i32, %c0_i32_0 : i32, i32
  }
  func.func @transform_3(%arg0: i32) -> (i32, i32) {
    %c0_i32 = arith.constant 0 : i32
    %c0_i32_0 = arith.constant 0 : i32
    return %arg0, %c0_i32 : i32, i32
  }
}

module attributes {stable_mosaic.version = 11 : i64} {
  func.func @_max4_kernel(%arg0: i32, %arg1: memref<2x2704xbf16, #tpu.memory_space<vmem>>, %arg2: memref<2x2704xbf16, #tpu.memory_space<vmem>>, %arg3: memref<2x2704xbf16, #tpu.memory_space<vmem>>, %arg4: memref<2x2704xbf16, #tpu.memory_space<vmem>>, %arg5: memref<2x2704xbf16, #tpu.memory_space<vmem>>) attributes {dimension_semantics = [#tpu.dimension_semantics<parallel>], iteration_bounds = array<i64: 1>, scalar_prefetch = 0 : i64, scratch_operands = 0 : i64, tpu.core_type = #tpu.core_type<tc>, window_params = [{transform_indices = @transform_0, window_bounds = array<i64: 2, 2704>}, {transform_indices = @transform_1, window_bounds = array<i64: 2, 2704>}, {transform_indices = @transform_2, window_bounds = array<i64: 2, 2704>}, {transform_indices = @transform_3, window_bounds = array<i64: 2, 2704>}, {transform_indices = @transform_4, window_bounds = array<i64: 2, 2704>}]} {
    %c0 = arith.constant 0 : index
    %c0_0 = arith.constant 0 : index
    %0 = vector.load %arg1[%c0, %c0_0] : memref<2x2704xbf16, #tpu.memory_space<vmem>>, vector<2x2704xbf16>
    %1 = arith.extf %0 : vector<2x2704xbf16> to vector<2x2704xf32>
    %c0_1 = arith.constant 0 : index
    %c0_2 = arith.constant 0 : index
    %2 = vector.load %arg2[%c0_1, %c0_2] : memref<2x2704xbf16, #tpu.memory_space<vmem>>, vector<2x2704xbf16>
    %3 = arith.extf %2 : vector<2x2704xbf16> to vector<2x2704xf32>
    %c0_3 = arith.constant 0 : index
    %c0_4 = arith.constant 0 : index
    %4 = vector.load %arg3[%c0_3, %c0_4] : memref<2x2704xbf16, #tpu.memory_space<vmem>>, vector<2x2704xbf16>
    %5 = arith.extf %4 : vector<2x2704xbf16> to vector<2x2704xf32>
    %c0_5 = arith.constant 0 : index
    %c0_6 = arith.constant 0 : index
    %6 = vector.load %arg4[%c0_5, %c0_6] : memref<2x2704xbf16, #tpu.memory_space<vmem>>, vector<2x2704xbf16>
    %7 = arith.extf %6 : vector<2x2704xbf16> to vector<2x2704xf32>
    %8 = arith.maximumf %1, %3 : vector<2x2704xf32>
    %9 = arith.maximumf %5, %7 : vector<2x2704xf32>
    %10 = arith.maximumf %8, %9 : vector<2x2704xf32>
    %11 = arith.truncf %10 : vector<2x2704xf32> to vector<2x2704xbf16>
    %c0_7 = arith.constant 0 : index
    %c0_8 = arith.constant 0 : index
    %12 = vector.load %arg5[%c0_7, %c0_8] : memref<2x2704xbf16, #tpu.memory_space<vmem>>, vector<2x2704xbf16>
    tpu.vector_store %arg5[%c0_7, %c0_8], %11 {strides = array<i32>} : memref<2x2704xbf16, #tpu.memory_space<vmem>>, vector<2x2704xbf16>,
    return
  }
  func.func @transform_0(%arg0: i32) -> (i32, i32) {
    %c0_i32 = arith.constant 0 : i32
    %c0_i32_0 = arith.constant 0 : i32
    return %arg0, %c0_i32 : i32, i32
  }
  func.func @transform_1(%arg0: i32) -> (i32, i32) {
    %c0_i32 = arith.constant 0 : i32
    %c0_i32_0 = arith.constant 0 : i32
    return %arg0, %c0_i32 : i32, i32
  }
  func.func @transform_2(%arg0: i32) -> (i32, i32) {
    %c0_i32 = arith.constant 0 : i32
    %c0_i32_0 = arith.constant 0 : i32
    return %arg0, %c0_i32 : i32, i32
  }
  func.func @transform_3(%arg0: i32) -> (i32, i32) {
    %c0_i32 = arith.constant 0 : i32
    %c0_i32_0 = arith.constant 0 : i32
    return %arg0, %c0_i32 : i32, i32
  }
  func.func @transform_4(%arg0: i32) -> (i32, i32) {
    %c0_i32 = arith.constant 0 : i32
    %c0_i32_0 = arith.constant 0 : i32
    return %arg0, %c0_i32 : i32, i32
  }
}

module attributes {stable_mosaic.version = 11 : i64} {
  func.func @_mlp_kernel(%arg0: i32, %arg1: memref<2x2704xbf16, #tpu.memory_space<vmem>>, %arg2: memref<2704x120xbf16, #tpu.memory_space<vmem>>, %arg3: memref<1x120xf32, #tpu.memory_space<vmem>>, %arg4: memref<120x84xbf16, #tpu.memory_space<vmem>>, %arg5: memref<1x84xf32, #tpu.memory_space<vmem>>, %arg6: memref<84x128xbf16, #tpu.memory_space<vmem>>, %arg7: memref<1x128xf32, #tpu.memory_space<vmem>>, %arg8: memref<2x128xf32, #tpu.memory_space<vmem>>) attributes {dimension_semantics = [#tpu.dimension_semantics<parallel>], iteration_bounds = array<i64: 1>, scalar_prefetch = 0 : i64, scratch_operands = 0 : i64, tpu.core_type = #tpu.core_type<tc>, window_params = [{transform_indices = @transform_0, window_bounds = array<i64: 2, 2704>}, {pipeline_mode = #tpu.pipeline_mode<synchronous>, transform_indices = @transform_1, window_bounds = array<i64: 2704, 120>}, {pipeline_mode = #tpu.pipeline_mode<synchronous>, transform_indices = @transform_2, window_bounds = array<i64: 1, 120>}, {pipeline_mode = #tpu.pipeline_mode<synchronous>, transform_indices = @transform_3, window_bounds = array<i64: 120, 84>}, {pipeline_mode = #tpu.pipeline_mode<synchronous>, transform_indices = @transform_4, window_bounds = array<i64: 1, 84>}, {pipeline_mode = #tpu.pipeline_mode<synchronous>, transform_indices = @transform_5, window_bounds = array<i64: 84, 128>}, {pipeline_mode = #tpu.pipeline_mode<synchronous>, transform_indices = @transform_6, window_bounds = array<i64: 1, 128>}, {transform_indices = @transform_7, window_bounds = array<i64: 2, 128>}]} {
    %c0 = arith.constant 0 : index
    %c0_0 = arith.constant 0 : index
    %0 = vector.load %arg1[%c0, %c0_0] : memref<2x2704xbf16, #tpu.memory_space<vmem>>, vector<2x2704xbf16>
    %c0_1 = arith.constant 0 : index
    %c0_2 = arith.constant 0 : index
    %1 = vector.load %arg2[%c0_1, %c0_2] : memref<2704x120xbf16, #tpu.memory_space<vmem>>, vector<2704x120xbf16>
    %cst = arith.constant dense<0.000000e+00> : vector<2x120xf32>
    %2 = tpu.matmul %0, %1, %cst {dimension_numbers = #tpu.dot_dimension_numbers<[1], [0], [0], [1], [0, 0, 1, 1], [], []>} : vector<2x2704xbf16>, vector<2704x120xbf16>, vector<2x120xf32> -> vector<2x120xf32>
    %c0_3 = arith.constant 0 : index
    %c0_4 = arith.constant 0 : index
    %3 = vector.load %arg3[%c0_3, %c0_4] : memref<1x120xf32, #tpu.memory_space<vmem>>, vector<1x120xf32>
    %4 = vector.broadcast %3 : vector<1x120xf32> to vector<2x120xf32>
    %5 = arith.addf %2, %4 : vector<2x120xf32>
    %cst_5 = arith.constant 0.000000e+00 : f32
    %6 = vector.broadcast %cst_5 : f32 to vector<2x120xf32>
    %7 = arith.maximumf %5, %6 : vector<2x120xf32>
    %8 = arith.truncf %7 : vector<2x120xf32> to vector<2x120xbf16>
    %c0_6 = arith.constant 0 : index
    %c0_7 = arith.constant 0 : index
    %9 = vector.load %arg4[%c0_6, %c0_7] : memref<120x84xbf16, #tpu.memory_space<vmem>>, vector<120x84xbf16>
    %cst_8 = arith.constant dense<0.000000e+00> : vector<2x84xf32>
    %10 = tpu.matmul %8, %9, %cst_8 {dimension_numbers = #tpu.dot_dimension_numbers<[1], [0], [0], [1], [0, 0, 1, 1], [], []>} : vector<2x120xbf16>, vector<120x84xbf16>, vector<2x84xf32> -> vector<2x84xf32>
    %c0_9 = arith.constant 0 : index
    %c0_10 = arith.constant 0 : index
    %11 = vector.load %arg5[%c0_9, %c0_10] : memref<1x84xf32, #tpu.memory_space<vmem>>, vector<1x84xf32>
    %12 = vector.broadcast %11 : vector<1x84xf32> to vector<2x84xf32>
    %13 = arith.addf %10, %12 : vector<2x84xf32>
    %cst_11 = arith.constant 0.000000e+00 : f32
    %14 = vector.broadcast %cst_11 : f32 to vector<2x84xf32>
    %15 = arith.maximumf %13, %14 : vector<2x84xf32>
    %16 = arith.truncf %15 : vector<2x84xf32> to vector<2x84xbf16>
    %c0_12 = arith.constant 0 : index
    %c0_13 = arith.constant 0 : index
    %17 = vector.load %arg6[%c0_12, %c0_13] : memref<84x128xbf16, #tpu.memory_space<vmem>>, vector<84x128xbf16>
    %cst_14 = arith.constant dense<0.000000e+00> : vector<2x128xf32>
    %18 = tpu.matmul %16, %17, %cst_14 {dimension_numbers = #tpu.dot_dimension_numbers<[1], [0], [0], [1], [0, 0, 1, 1], [], []>} : vector<2x84xbf16>, vector<84x128xbf16>, vector<2x128xf32> -> vector<2x128xf32>
    %c0_15 = arith.constant 0 : index
    %c0_16 = arith.constant 0 : index
    %19 = vector.load %arg7[%c0_15, %c0_16] : memref<1x128xf32, #tpu.memory_space<vmem>>, vector<1x128xf32>
    %20 = vector.broadcast %19 : vector<1x128xf32> to vector<2x128xf32>
    %21 = arith.addf %18, %20 : vector<2x128xf32>
    %c0_17 = arith.constant 0 : index
    %c0_18 = arith.constant 0 : index
    %22 = vector.load %arg8[%c0_17, %c0_18] : memref<2x128xf32, #tpu.memory_space<vmem>>, vector<2x128xf32>
    tpu.vector_store %arg8[%c0_17, %c0_18], %21 {strides = array<i32>} : memref<2x128xf32, #tpu.memory_space<vmem>>, vector<2x128xf32>,
    return
  }
  func.func @transform_0(%arg0: i32) -> (i32, i32) {
    %c0_i32 = arith.constant 0 : i32
    %c0_i32_0 = arith.constant 0 : i32
    return %arg0, %c0_i32 : i32, i32
  }
  func.func @transform_1(%arg0: i32) -> (i32, i32) {
    %c0_i32 = arith.constant 0 : i32
    %c0_i32_0 = arith.constant 0 : i32
    %c0_i32_1 = arith.constant 0 : i32
    return %c0_i32, %c0_i32_0 : i32, i32
  }
  func.func @transform_2(%arg0: i32) -> (i32, i32) {
    %c0_i32 = arith.constant 0 : i32
    %c0_i32_0 = arith.constant 0 : i32
    %c0_i32_1 = arith.constant 0 : i32
    return %c0_i32, %c0_i32_0 : i32, i32
  }
  func.func @transform_3(%arg0: i32) -> (i32, i32) {
    %c0_i32 = arith.constant 0 : i32
    %c0_i32_0 = arith.constant 0 : i32
    %c0_i32_1 = arith.constant 0 : i32
    return %c0_i32, %c0_i32_0 : i32, i32
  }
  func.func @transform_4(%arg0: i32) -> (i32, i32) {
    %c0_i32 = arith.constant 0 : i32
    %c0_i32_0 = arith.constant 0 : i32
    %c0_i32_1 = arith.constant 0 : i32
    return %c0_i32, %c0_i32_0 : i32, i32
  }
  func.func @transform_5(%arg0: i32) -> (i32, i32) {
    %c0_i32 = arith.constant 0 : i32
    %c0_i32_0 = arith.constant 0 : i32
    %c0_i32_1 = arith.constant 0 : i32
    return %c0_i32, %c0_i32_0 : i32, i32
  }
  func.func @transform_6(%arg0: i32) -> (i32, i32) {
    %c0_i32 = arith.constant 0 : i32
    %c0_i32_0 = arith.constant 0 : i32
    %c0_i32_1 = arith.constant 0 : i32
    return %c0_i32, %c0_i32_0 : i32, i32
  }
  func.func @transform_7(%arg0: i32) -> (i32, i32) {
    %c0_i32 = arith.constant 0 : i32
    %c0_i32_0 = arith.constant 0 : i32
    return %arg0, %c0_i32 : i32, i32
  }
}

</mosaic_0001>

<bundles_post_ra>
// kernel: lenet5_forward.5
= control target key start
LH: loop header
LB: loop body
LE: loop exit
PB: predicated region body
PF: predicated region fallthrough
CT: control target
= control target key end

     0   :  { %s1675_s12 = smov 0   ;;  %s2113_s0 = inlined_call_operand.vmem [shape: bf16[7200,32], index: 0, kind: input, shape index: {}]   ;;  %s2114_s1 = inlined_call_operand.vmem [shape: bf16[32,8], index: 1, kind: input, shape index: {}]   ;;  %s2115_s2 = inlined_call_operand.vmem [shape: f32[1,8], index: 2, kind: input, shape index: {}]   ;;  %s2116_s3 = inlined_call_operand.vmem [shape: bf16[7200,8], index: 3, kind: output, shape index: {}]  }
   0x1 LB: > { %s1312_s13 = sadd.s32 4294967295, %s1653_s12   ;;  %p1316_p0 = scmp.ge.s32.totalorder %s1653_s12, 1  ;;  %s1653_s12 = sphi %s1675_s12, %s13_s12  }
   0x2   : > { %p138_p1 = scmp.lt.s32.totalorder %s1653_s12, 10 }
   0x4   : > { %p139_p2 = pnand %p1316_p0, %p138_p1 }
   0x5   : > { %s162_s16 = smul.u32 (!%p139_p2), 100, %s1312_s13 }
   0x6   : > { %142 = sbr.rel (%p139_p2) target bundleno = 359 (0x167), region = 32 }
   0x7   : > { %p163_p3 = scmp.lt.s32.totalorder (!%p139_p2), %s162_s16, 899 }
   0xb   : > { %v1630_v0 = vld [vmem:[%s2114_s1 + $0x8] sm:$0xff]  ;;  %v1629_v1 = vld [vmem:[%s2114_s1] sm:$0xff]  ;;  %s2118_s16 = smov (!%p163_p3, %s162_s16), 899  ;;  %vm545_vm0 = vcmask 261120   ;;  %vm1155_vm1 = vcmask 60416  }
   0xc   : > { %702 = vmatpush.bf16.msra.mxu0 %v1630_v0  ;;  %1631 = vmatpush.bf16.msra.mxu1 %v1630_v0  ;;  %s1317_s19 = sshll.u32 %s2118_s16, 2  ;;  %v1766_v34 = vld [vmem:[%s2115_s2] ss:$0 sm:$0xff] }
   0xd   : > { %1632 = vmatpush.bf16.msra.mxu2 %v1630_v0  ;;  %1633 = vmatpush.bf16.msra.mxu3 %v1630_v0  ;;  %s1697_s22 = scalar_lea.vmem %s2113_s0, %s1317_s19  ;;  %s1781_s27 = scalar_lea.vmem %s2116_s3, %s1317_s19 }
   0xe   : > { %v1579_v2 = vld [vmem:[%s1697_s22] sm:$0xff]  ;;  %v1592_v3 = vld [vmem:[%s1697_s22 + $0x68] sm:$0xff]  ;;  %v1605_v4 = vld [vmem:[%s1697_s22 + $0xd0] sm:$0xff] }
   0xf   : > { %v1618_v5 = vld [vmem:[%s1697_s22 + $0x138] sm:$0xff]  ;;  %v1580_v6 = vld [vmem:[%s1697_s22 + $0x8] sm:$0xff]  ;;  %v1593_v7 = vld [vmem:[%s1697_s22 + $0x70] sm:$0xff] }
  0x10   : > { %703 = vmatpush.bf16.msra.mxu0 %v1629_v1  ;;  %1634 = vmatpush.bf16.msra.mxu1 %v1629_v1  ;;  %v1606_v8 = vld [vmem:[%s1697_s22 + $0xd8] sm:$0xff]  ;;  %v1619_v9 = vld [vmem:[%s1697_s22 + $0x140] sm:$0xff]  ;;  %v1581_v10 = vld [vmem:[%s1697_s22 + $0x10] sm:$0xff] }
  0x11   : > { %1635 = vmatpush.bf16.msra.mxu2 %v1629_v1  ;;  %1636 = vmatpush.bf16.msra.mxu3 %v1629_v1  ;;  %v1594_v11 = vld [vmem:[%s1697_s22 + $0x78] sm:$0xff]  ;;  %v1607_v12 = vld [vmem:[%s1697_s22 + $0xe0] sm:$0xff]  ;;  %v1620_v13 = vld [vmem:[%s1697_s22 + $0x148] sm:$0xff] }
  0x12   : > { %v1582_v14 = vld [vmem:[%s1697_s22 + $0x18] sm:$0xff]  ;;  %v1595_v15 = vld [vmem:[%s1697_s22 + $0x80] sm:$0xff]  ;;  %v1608_v16 = vld [vmem:[%s1697_s22 + $0xe8] sm:$0xff] }
  0x13   : > { %1527 = vmatmul.msk.bf16.vlgmr.msra.gmra.mxu0 %vm545_vm0, %v1579_v2  ;;  %1540 = vmatmul.msk.bf16.vlgmr.msra.gmra.mxu1 %vm545_vm0, %v1592_v3  ;;  %v1621_v17 = vld [vmem:[%s1697_s22 + $0x150] sm:$0xff]  ;;  %v1583_v18 = vld [vmem:[%s1697_s22 + $0x20] sm:$0xff]  ;;  %v1596_v19 = vld [vmem:[%s1697_s22 + $0x88] sm:$0xff] }
  0x14   : > { %1553 = vmatmul.msk.bf16.vlgmr.msra.gmra.mxu2 %vm545_vm0, %v1605_v4  ;;  %1566 = vmatmul.msk.bf16.vlgmr.msra.gmra.mxu3 %vm545_vm0, %v1618_v5  ;;  %v1609_v20 = vld [vmem:[%s1697_s22 + $0xf0] sm:$0xff]  ;;  %v1622_v21 = vld [vmem:[%s1697_s22 + $0x158] sm:$0xff]  ;;  %v1584_v22 = vld [vmem:[%s1697_s22 + $0x28] sm:$0xff] }
  0x15   : > { %v1597_v23 = vld [vmem:[%s1697_s22 + $0x90] sm:$0xff]  ;;  %v1610_v24 = vld [vmem:[%s1697_s22 + $0xf8] sm:$0xff]  ;;  %v1623_v25 = vld [vmem:[%s1697_s22 + $0x160] sm:$0xff] }
  0x16   : > { %v1585_v26 = vld [vmem:[%s1697_s22 + $0x30] sm:$0xff]  ;;  %v1598_v27 = vld [vmem:[%s1697_s22 + $0x98] sm:$0xff]  ;;  %v1611_v28 = vld [vmem:[%s1697_s22 + $0x100] sm:$0xff] }
  0x17   : > { %v1624_v29 = vld [vmem:[%s1697_s22 + $0x168] sm:$0xff]  ;;  %v1586_v30 = vld [vmem:[%s1697_s22 + $0x38] sm:$0xff]  ;;  %v1599_v31 = vld [vmem:[%s1697_s22 + $0xa0] sm:$0xff] }
  0x18   : > { %v1612_v32 = vld [vmem:[%s1697_s22 + $0x108] sm:$0xff]  ;;  %v1625_v33 = vld [vmem:[%s1697_s22 + $0x170] sm:$0xff]  ;;  %v1587_v35 = vld [vmem:[%s1697_s22 + $0x40] sm:$0xff] }
  0x19   : > { %v1600_v36 = vld [vmem:[%s1697_s22 + $0xa8] sm:$0xff]  ;;  %v1613_v39 = vld [vmem:[%s1697_s22 + $0x110] sm:$0xff]  ;;  %v1626_v42 = vld [vmem:[%s1697_s22 + $0x178] sm:$0xff] }
  0x1a   : > { %v1588_v0 = vld [vmem:[%s1697_s22 + $0x48] sm:$0xff]  ;;  %v1601_v1 = vld [vmem:[%s1697_s22 + $0xb0] sm:$0xff]  ;;  %v1614_v5 = vld [vmem:[%s1697_s22 + $0x118] sm:$0xff] }
  0x23   : > { %1528 = vmatmul.msk.bf16.gmra.mxu0 %vm545_vm0, %v1580_v6  ;;  %1541 = vmatmul.msk.bf16.gmra.mxu1 %vm545_vm0, %v1593_v7 }
  0x24   : > { %1554 = vmatmul.msk.bf16.gmra.mxu2 %vm545_vm0, %v1606_v8  ;;  %1567 = vmatmul.msk.bf16.gmra.mxu3 %vm545_vm0, %v1619_v9  ;;  %v1627_v9 = vld [vmem:[%s1697_s22 + $0x180] sm:$0xff] }
  0x33   : > { %1529 = vmatmul.msk.bf16.gmra.mxu0 %vm545_vm0, %v1581_v10  ;;  %1542 = vmatmul.msk.bf16.gmra.mxu1 %vm545_vm0, %v1594_v11 }
  0x34   : > { %1555 = vmatmul.msk.bf16.gmra.mxu2 %vm545_vm0, %v1607_v12  ;;  %1568 = vmatmul.msk.bf16.gmra.mxu3 %vm545_vm0, %v1620_v13 }
  0x43   : > { %1530 = vmatmul.msk.bf16.gmra.mxu0 %vm545_vm0, %v1582_v14  ;;  %1543 = vmatmul.msk.bf16.gmra.mxu1 %vm545_vm0, %v1595_v15 }
  0x44   : > { %1556 = vmatmul.msk.bf16.gmra.mxu2 %vm545_vm0, %v1608_v16  ;;  %1569 = vmatmul.msk.bf16.gmra.mxu3 %vm545_vm0, %v1621_v17 }
  0x53   : > { %1531 = vmatmul.msk.bf16.gmra.mxu0 %vm545_vm0, %v1583_v18  ;;  %1544 = vmatmul.msk.bf16.gmra.mxu1 %vm545_vm0, %v1596_v19 }
  0x54   : > { %1557 = vmatmul.msk.bf16.gmra.mxu2 %vm545_vm0, %v1609_v20  ;;  %1570 = vmatmul.msk.bf16.gmra.mxu3 %vm545_vm0, %v1622_v21 }
  0x63   : > { %1532 = vmatmul.msk.bf16.gmra.mxu0 %vm545_vm0, %v1584_v22  ;;  %1545 = vmatmul.msk.bf16.gmra.mxu1 %vm545_vm0, %v1597_v23 }
  0x64   : > { %1558 = vmatmul.msk.bf16.gmra.mxu2 %vm545_vm0, %v1610_v24  ;;  %1571 = vmatmul.msk.bf16.gmra.mxu3 %vm545_vm0, %v1623_v25 }
  0x73   : > { %1533 = vmatmul.msk.bf16.gmra.mxu0 %vm545_vm0, %v1585_v26  ;;  %1546 = vmatmul.msk.bf16.gmra.mxu1 %vm545_vm0, %v1598_v27 }
  0x74   : > { %1559 = vmatmul.msk.bf16.gmra.mxu2 %vm545_vm0, %v1611_v28  ;;  %1572 = vmatmul.msk.bf16.gmra.mxu3 %vm545_vm0, %v1624_v29 }
  0x83   : > { %1534 = vmatmul.msk.bf16.gmra.mxu0 %vm545_vm0, %v1586_v30  ;;  %1547 = vmatmul.msk.bf16.gmra.mxu1 %vm545_vm0, %v1599_v31 }
  0x84   : > { %1560 = vmatmul.msk.bf16.gmra.mxu2 %vm545_vm0, %v1612_v32  ;;  %1573 = vmatmul.msk.bf16.gmra.mxu3 %vm545_vm0, %v1625_v33 }
  0x90   : > { %v705_v37 = vpop.f32.mrf.mxu0  ;;  %v770_v38 = vpop.f32.mrf.mxu1 }
  0x91   : > { %v706_v40 = vadd.f32 %v1766_v34, %v705_v37  ;;  %v771_v41 = vadd.f32 %v1766_v34, %v770_v38  ;;  %v1589_v37 = vld [vmem:[%s1697_s22 + $0x50] sm:$0xff]  ;;  %v1602_v38 = vld [vmem:[%s1697_s22 + $0xb8] sm:$0xff] }
  0x93   : > { %v955_v43 = vmax.f32 %v706_v40, 0.0  ;;  %v981_v44 = vmax.f32 %v771_v41, 0.0  ;;  %1535 = vmatmul.msk.bf16.gmra.mxu0 %vm545_vm0, %v1587_v35  ;;  %1548 = vmatmul.msk.bf16.gmra.mxu1 %vm545_vm0, %v1600_v36 }
  0x94   : > { %1561 = vmatmul.msk.bf16.gmra.mxu2 %vm545_vm0, %v1613_v39  ;;  %1574 = vmatmul.msk.bf16.gmra.mxu3 %vm545_vm0, %v1626_v42  ;;  %v1615_v42 = vld [vmem:[%s1697_s22 + $0x120] sm:$0xff] }
  0x95   : > { %v1055_v45 = vpack.c.bf16 %v955_v43, %v955_v43  ;;  %v1081_v46 = vpack.c.bf16 %v981_v44, %v981_v44 }
  0x97   : > { %1156 = vst.msk [vmem:[%s1781_s27] sm:$0xf] %vm1155_vm1, %v1055_v45  ;;  %v835_v47 = vpop.f32.mrf.mxu2  ;;  %v900_v53 = vpop.f32.mrf.mxu3 }
  0x98   : > { %1182 = vst.msk [vmem:[%s1781_s27 + $0x68] sm:$0xf] %vm1155_vm1, %v1081_v46  ;;  %v836_v48 = vadd.f32 %v1766_v34, %v835_v47  ;;  %v707_v49 = vpop.f32.mrf.mxu0  ;;  %v772_v50 = vpop.f32.mrf.mxu1  ;;  %v901_v55 = vadd.f32 %v1766_v34, %v900_v53  ;;  %v1628_v46 = vld [vmem:[%s1697_s22 + $0x188] sm:$0xff] }
  0x99   : > { %v708_v51 = vadd.f32 %v1766_v34, %v707_v49  ;;  %v773_v52 = vadd.f32 %v1766_v34, %v772_v50 }
  0x9a   : > { %v1007_v54 = vmax.f32 %v836_v48, 0.0  ;;  %v1033_v59 = vmax.f32 %v901_v55, 0.0 }
  0x9b   : > { %v956_v56 = vmax.f32 %v708_v51, 0.0  ;;  %v982_v57 = vmax.f32 %v773_v52, 0.0 }
  0x9c   : > { %v1107_v58 = vpack.c.bf16 %v1007_v54, %v1007_v54  ;;  %v1133_v62 = vpack.c.bf16 %v1033_v59, %v1033_v59 }
  0x9d   : > { %v1056_v60 = vpack.c.bf16 %v956_v56, %v956_v56  ;;  %v1082_v61 = vpack.c.bf16 %v982_v57, %v982_v57 }
  0x9e   : > { %1208 = vst.msk [vmem:[%s1781_s27 + $0xd0] sm:$0xf] %vm1155_vm1, %v1107_v58 }
  0x9f   : > { %1157 = vst.msk [vmem:[%s1781_s27 + $0x4] sm:$0xf] %vm1155_vm1, %v1056_v60  ;;  %v837_v63 = vpop.f32.mrf.mxu2  ;;  %v902_v8 = vpop.f32.mrf.mxu3 }
  0xa0   : > { %1183 = vst.msk [vmem:[%s1781_s27 + $0x6c] sm:$0xf] %vm1155_vm1, %v1082_v61  ;;  %v838_v2 = vadd.f32 %v1766_v34, %v837_v63  ;;  %v710_v3 = vpop.f32.mrf.mxu0  ;;  %v775_v4 = vpop.f32.mrf.mxu1  ;;  %v903_v11 = vadd.f32 %v1766_v34, %v902_v8 }
  0xa1   : > { %v711_v6 = vadd.f32 %v1766_v34, %v710_v3  ;;  %v776_v7 = vadd.f32 %v1766_v34, %v775_v4  ;;  %1234 = vst.msk [vmem:[%s1781_s27 + $0x138] sm:$0xf] %vm1155_vm1, %v1133_v62 }
  0xa2   : > { %v1008_v10 = vmax.f32 %v838_v2, 0.0  ;;  %v1034_v15 = vmax.f32 %v903_v11, 0.0 }
  0xa3   : > { %v957_v12 = vmax.f32 %v711_v6, 0.0  ;;  %v983_v13 = vmax.f32 %v776_v7, 0.0  ;;  %1536 = vmatmul.msk.bf16.gmra.mxu0 %vm545_vm0, %v1588_v0  ;;  %1549 = vmatmul.msk.bf16.gmra.mxu1 %vm545_vm0, %v1601_v1 }
  0xa4   : > { %v1108_v14 = vpack.c.bf16 %v1008_v10, %v1008_v10  ;;  %1562 = vmatmul.msk.bf16.gmra.mxu2 %vm545_vm0, %v1614_v5  ;;  %1575 = vmatmul.msk.bf16.gmra.mxu3 %vm545_vm0, %v1627_v9  ;;  %v1134_v18 = vpack.c.bf16 %v1034_v15, %v1034_v15  ;;  %v1590_v9 = vld [vmem:[%s1697_s22 + $0x58] sm:$0xff]  ;;  %v1603_v10 = vld [vmem:[%s1697_s22 + $0xc0] sm:$0xff] }
  0xa5   : > { %v1057_v16 = vpack.c.bf16 %v957_v12, %v957_v12  ;;  %v1083_v17 = vpack.c.bf16 %v983_v13, %v983_v13 }
  0xa6   : > { %1209 = vst.msk [vmem:[%s1781_s27 + $0xd4] sm:$0xf] %vm1155_vm1, %v1108_v14  ;;  %v1616_v14 = vld [vmem:[%s1697_s22 + $0x128] sm:$0xff] }
  0xa7   : > { %1158 = vst.msk [vmem:[%s1781_s27 + $0x8] sm:$0xf] %vm1155_vm1, %v1057_v16  ;;  %v840_v19 = vpop.f32.mrf.mxu2  ;;  %v905_v25 = vpop.f32.mrf.mxu3 }
  0xa8   : > { %1184 = vst.msk [vmem:[%s1781_s27 + $0x70] sm:$0xf] %vm1155_vm1, %v1083_v17  ;;  %v841_v20 = vadd.f32 %v1766_v34, %v840_v19  ;;  %v712_v21 = vpop.f32.mrf.mxu0  ;;  %v777_v22 = vpop.f32.mrf.mxu1  ;;  %v906_v27 = vadd.f32 %v1766_v34, %v905_v25 }
  0xa9   : > { %v713_v23 = vadd.f32 %v1766_v34, %v712_v21  ;;  %v778_v24 = vadd.f32 %v1766_v34, %v777_v22  ;;  %1235 = vst.msk [vmem:[%s1781_s27 + $0x13c] sm:$0xf] %vm1155_vm1, %v1134_v18 }
  0xaa   : > { %v1009_v26 = vmax.f32 %v841_v20, 0.0  ;;  %v1035_v31 = vmax.f32 %v906_v27, 0.0 }
  0xab   : > { %v958_v28 = vmax.f32 %v713_v23, 0.0  ;;  %v984_v29 = vmax.f32 %v778_v24, 0.0 }
  0xac   : > { %v1109_v30 = vpack.c.bf16 %v1009_v26, %v1009_v26  ;;  %v1135_v35 = vpack.c.bf16 %v1035_v31, %v1035_v31 }
  0xad   : > { %v1058_v32 = vpack.c.bf16 %v958_v28, %v958_v28  ;;  %v1084_v33 = vpack.c.bf16 %v984_v29, %v984_v29 }
  0xae   : > { %1210 = vst.msk [vmem:[%s1781_s27 + $0xd8] sm:$0xf] %vm1155_vm1, %v1109_v30 }
  0xaf   : > { %1159 = vst.msk [vmem:[%s1781_s27 + $0xc] sm:$0xf] %vm1155_vm1, %v1058_v32  ;;  %v842_v36 = vpop.f32.mrf.mxu2  ;;  %v907_v45 = vpop.f32.mrf.mxu3 }
  0xb0   : > { %1185 = vst.msk [vmem:[%s1781_s27 + $0x74] sm:$0xf] %vm1155_vm1, %v1084_v33  ;;  %v843_v39 = vadd.f32 %v1766_v34, %v842_v36  ;;  %v715_v40 = vpop.f32.mrf.mxu0  ;;  %v780_v41 = vpop.f32.mrf.mxu1  ;;  %v908_v48 = vadd.f32 %v1766_v34, %v907_v45  ;;  %v1591_v45 = vld [vmem:[%s1697_s22 + $0x60] sm:$0xff] }
  0xb1   : > { %v716_v43 = vadd.f32 %v1766_v34, %v715_v40  ;;  %v781_v44 = vadd.f32 %v1766_v34, %v780_v41  ;;  %1236 = vst.msk [vmem:[%s1781_s27 + $0x140] sm:$0xf] %vm1155_vm1, %v1135_v35 }
  0xb2   : > { %v1010_v47 = vmax.f32 %v843_v39, 0.0  ;;  %v1036_v52 = vmax.f32 %v908_v48, 0.0 }
  0xb3   : > { %v959_v49 = vmax.f32 %v716_v43, 0.0  ;;  %v985_v50 = vmax.f32 %v781_v44, 0.0  ;;  %1537 = vmatmul.msk.bf16.gmra.mxu0 %vm545_vm0, %v1589_v37  ;;  %1550 = vmatmul.msk.bf16.gmra.mxu1 %vm545_vm0, %v1602_v38 }
  0xb4   : > { %v1110_v51 = vpack.c.bf16 %v1010_v47, %v1010_v47  ;;  %1563 = vmatmul.msk.bf16.gmra.mxu2 %vm545_vm0, %v1615_v42  ;;  %1576 = vmatmul.msk.bf16.gmra.mxu3 %vm545_vm0, %v1628_v46  ;;  %v1136_v55 = vpack.c.bf16 %v1036_v52, %v1036_v52  ;;  %v1604_v46 = vld [vmem:[%s1697_s22 + $0xc8] sm:$0xff] }
  0xb5   : > { %v1059_v53 = vpack.c.bf16 %v959_v49, %v959_v49  ;;  %v1085_v54 = vpack.c.bf16 %v985_v50, %v985_v50  ;;  %v1617_v50 = vld [vmem:[%s1697_s22 + $0x130] sm:$0xff] }
  0xb6   : > { %1211 = vst.msk [vmem:[%s1781_s27 + $0xdc] sm:$0xf] %vm1155_vm1, %v1110_v51 }
  0xb7   : > { %1160 = vst.msk [vmem:[%s1781_s27 + $0x10] sm:$0xf] %vm1155_vm1, %v1059_v53  ;;  %v845_v56 = vpop.f32.mrf.mxu2  ;;  %v910_v62 = vpop.f32.mrf.mxu3 }
  0xb8   : > { %1186 = vst.msk [vmem:[%s1781_s27 + $0x78] sm:$0xf] %vm1155_vm1, %v1085_v54  ;;  %v846_v57 = vadd.f32 %v1766_v34, %v845_v56  ;;  %v717_v58 = vpop.f32.mrf.mxu0  ;;  %v782_v59 = vpop.f32.mrf.mxu1  ;;  %v911_v0 = vadd.f32 %v1766_v34, %v910_v62 }
  0xb9   : > { %v718_v60 = vadd.f32 %v1766_v34, %v717_v58  ;;  %v783_v61 = vadd.f32 %v1766_v34, %v782_v59  ;;  %1237 = vst.msk [vmem:[%s1781_s27 + $0x144] sm:$0xf] %vm1155_vm1, %v1136_v55 }
  0xba   : > { %v1011_v63 = vmax.f32 %v846_v57, 0.0  ;;  %v1037_v4 = vmax.f32 %v911_v0, 0.0 }
  0xbb   : > { %v960_v1 = vmax.f32 %v718_v60, 0.0  ;;  %v986_v2 = vmax.f32 %v783_v61, 0.0 }
  0xbc   : > { %v1111_v3 = vpack.c.bf16 %v1011_v63, %v1011_v63  ;;  %v1137_v7 = vpack.c.bf16 %v1037_v4, %v1037_v4 }
  0xbd   : > { %v1060_v5 = vpack.c.bf16 %v960_v1, %v960_v1  ;;  %v1086_v6 = vpack.c.bf16 %v986_v2, %v986_v2 }
  0xbe   : > { %1212 = vst.msk [vmem:[%s1781_s27 + $0xe0] sm:$0xf] %vm1155_vm1, %v1111_v3 }
  0xbf   : > { %1161 = vst.msk [vmem:[%s1781_s27 + $0x14] sm:$0xf] %vm1155_vm1, %v1060_v5  ;;  %v847_v8 = vpop.f32.mrf.mxu2  ;;  %v912_v17 = vpop.f32.mrf.mxu3 }
  0xc0   : > { %1187 = vst.msk [vmem:[%s1781_s27 + $0x7c] sm:$0xf] %vm1155_vm1, %v1086_v6  ;;  %v848_v11 = vadd.f32 %v1766_v34, %v847_v8  ;;  %v720_v12 = vpop.f32.mrf.mxu0  ;;  %v785_v13 = vpop.f32.mrf.mxu1  ;;  %v913_v19 = vadd.f32 %v1766_v34, %v912_v17 }
  0xc1   : > { %v721_v15 = vadd.f32 %v1766_v34, %v720_v12  ;;  %v786_v16 = vadd.f32 %v1766_v34, %v785_v13  ;;  %1238 = vst.msk [vmem:[%s1781_s27 + $0x148] sm:$0xf] %vm1155_vm1, %v1137_v7 }
  0xc2   : > { %v1012_v18 = vmax.f32 %v848_v11, 0.0  ;;  %v1038_v23 = vmax.f32 %v913_v19, 0.0 }
  0xc3   : > { %v961_v20 = vmax.f32 %v721_v15, 0.0  ;;  %v987_v21 = vmax.f32 %v786_v16, 0.0  ;;  %1538 = vmatmul.msk.bf16.gmra.mxu0 %vm545_vm0, %v1590_v9  ;;  %1551 = vmatmul.msk.bf16.gmra.mxu1 %vm545_vm0, %v1603_v10 }
  0xc4   : > { %v1112_v22 = vpack.c.bf16 %v1012_v18, %v1012_v18  ;;  %1564 = vmatmul.msk.bf16.gmra.mxu2 %vm545_vm0, %v1616_v14  ;;  %v1138_v26 = vpack.c.bf16 %v1038_v23, %v1038_v23 }
  0xc5   : > { %v1061_v24 = vpack.c.bf16 %v961_v20, %v961_v20  ;;  %v1087_v25 = vpack.c.bf16 %v987_v21, %v987_v21 }
  0xc6   : > { %1213 = vst.msk [vmem:[%s1781_s27 + $0xe4] sm:$0xf] %vm1155_vm1, %v1112_v22 }
  0xc7   : > { %1162 = vst.msk [vmem:[%s1781_s27 + $0x18] sm:$0xf] %vm1155_vm1, %v1061_v24  ;;  %v850_v27 = vpop.f32.mrf.mxu2  ;;  %v915_v33 = vpop.f32.mrf.mxu3 }
  0xc8   : > { %1188 = vst.msk [vmem:[%s1781_s27 + $0x80] sm:$0xf] %vm1155_vm1, %v1087_v25  ;;  %v851_v28 = vadd.f32 %v1766_v34, %v850_v27  ;;  %v722_v29 = vpop.f32.mrf.mxu0  ;;  %v787_v30 = vpop.f32.mrf.mxu1  ;;  %v916_v36 = vadd.f32 %v1766_v34, %v915_v33 }
  0xc9   : > { %v723_v31 = vadd.f32 %v1766_v34, %v722_v29  ;;  %v788_v32 = vadd.f32 %v1766_v34, %v787_v30  ;;  %1239 = vst.msk [vmem:[%s1781_s27 + $0x14c] sm:$0xf] %vm1155_vm1, %v1138_v26 }
  0xca   : > { %v1013_v35 = vmax.f32 %v851_v28, 0.0  ;;  %v1039_v40 = vmax.f32 %v916_v36, 0.0 }
  0xcb   : > { %v962_v37 = vmax.f32 %v723_v31, 0.0  ;;  %v988_v38 = vmax.f32 %v788_v32, 0.0 }
  0xcc   : > { %v1113_v39 = vpack.c.bf16 %v1013_v35, %v1013_v35  ;;  %v1139_v43 = vpack.c.bf16 %v1039_v40, %v1039_v40 }
  0xcd   : > { %v1062_v41 = vpack.c.bf16 %v962_v37, %v962_v37  ;;  %v1088_v42 = vpack.c.bf16 %v988_v38, %v988_v38 }
  0xce   : > { %1214 = vst.msk [vmem:[%s1781_s27 + $0xe8] sm:$0xf] %vm1155_vm1, %v1113_v39 }
  0xcf   : > { %1163 = vst.msk [vmem:[%s1781_s27 + $0x1c] sm:$0xf] %vm1155_vm1, %v1062_v41  ;;  %v852_v44 = vpop.f32.mrf.mxu2  ;;  %v917_v53 = vpop.f32.mrf.mxu3 }
  0xd0   : > { %1189 = vst.msk [vmem:[%s1781_s27 + $0x84] sm:$0xf] %vm1155_vm1, %v1088_v42  ;;  %v853_v47 = vadd.f32 %v1766_v34, %v852_v44  ;;  %v725_v48 = vpop.f32.mrf.mxu0  ;;  %v790_v49 = vpop.f32.mrf.mxu1  ;;  %v918_v55 = vadd.f32 %v1766_v34, %v917_v53 }
  0xd1   : > { %v726_v51 = vadd.f32 %v1766_v34, %v725_v48  ;;  %v791_v52 = vadd.f32 %v1766_v34, %v790_v49  ;;  %1240 = vst.msk [vmem:[%s1781_s27 + $0x150] sm:$0xf] %vm1155_vm1, %v1139_v43 }
  0xd2   : > { %v1014_v54 = vmax.f32 %v853_v47, 0.0  ;;  %v1040_v59 = vmax.f32 %v918_v55, 0.0 }
  0xd3   : > { %v963_v56 = vmax.f32 %v726_v51, 0.0  ;;  %v989_v57 = vmax.f32 %v791_v52, 0.0  ;;  %1539 = vmatmul.msk.bf16.gmra.mxu0 %vm545_vm0, %v1591_v45  ;;  %1552 = vmatmul.msk.bf16.gmra.mxu1 %vm545_vm0, %v1604_v46 }
  0xd4   : > { %v1114_v58 = vpack.c.bf16 %v1014_v54, %v1014_v54  ;;  %1565 = vmatmul.msk.bf16.gmra.mxu2 %vm545_vm0, %v1617_v50  ;;  %v1140_v62 = vpack.c.bf16 %v1040_v59, %v1040_v59 }
  0xd5   : > { %v1063_v60 = vpack.c.bf16 %v963_v56, %v963_v56  ;;  %v1089_v61 = vpack.c.bf16 %v989_v57, %v989_v57 }
  0xd6   : > { %1215 = vst.msk [vmem:[%s1781_s27 + $0xec] sm:$0xf] %vm1155_vm1, %v1114_v58 }
  0xd7   : > { %1164 = vst.msk [vmem:[%s1781_s27 + $0x20] sm:$0xf] %vm1155_vm1, %v1063_v60  ;;  %v855_v63 = vpop.f32.mrf.mxu2  ;;  %v920_v5 = vpop.f32.mrf.mxu3 }
  0xd8   : > { %1190 = vst.msk [vmem:[%s1781_s27 + $0x88] sm:$0xf] %vm1155_vm1, %v1089_v61  ;;  %v856_v0 = vadd.f32 %v1766_v34, %v855_v63  ;;  %v727_v1 = vpop.f32.mrf.mxu0  ;;  %v792_v2 = vpop.f32.mrf.mxu1  ;;  %v921_v7 = vadd.f32 %v1766_v34, %v920_v5 }
  0xd9   : > { %v728_v3 = vadd.f32 %v1766_v34, %v727_v1  ;;  %v793_v4 = vadd.f32 %v1766_v34, %v792_v2  ;;  %1241 = vst.msk [vmem:[%s1781_s27 + $0x154] sm:$0xf] %vm1155_vm1, %v1140_v62 }
  0xda   : > { %v1015_v6 = vmax.f32 %v856_v0, 0.0  ;;  %v1041_v11 = vmax.f32 %v921_v7, 0.0 }
  0xdb   : > { %v964_v8 = vmax.f32 %v728_v3, 0.0  ;;  %v990_v9 = vmax.f32 %v793_v4, 0.0 }
  0xdc   : > { %v1115_v10 = vpack.c.bf16 %v1015_v6, %v1015_v6  ;;  %v1141_v14 = vpack.c.bf16 %v1041_v11, %v1041_v11 }
  0xdd   : > { %v1064_v12 = vpack.c.bf16 %v964_v8, %v964_v8  ;;  %v1090_v13 = vpack.c.bf16 %v990_v9, %v990_v9 }
  0xde   : > { %1216 = vst.msk [vmem:[%s1781_s27 + $0xf0] sm:$0xf] %vm1155_vm1, %v1115_v10 }
  0xdf   : > { %1165 = vst.msk [vmem:[%s1781_s27 + $0x24] sm:$0xf] %vm1155_vm1, %v1064_v12  ;;  %v857_v15 = vpop.f32.mrf.mxu2  ;;  %v922_v21 = vpop.f32.mrf.mxu3 }
  0xe0   : > { %1191 = vst.msk [vmem:[%s1781_s27 + $0x8c] sm:$0xf] %vm1155_vm1, %v1090_v13  ;;  %v858_v16 = vadd.f32 %v1766_v34, %v857_v15  ;;  %v730_v17 = vpop.f32.mrf.mxu0  ;;  %v795_v18 = vpop.f32.mrf.mxu1  ;;  %v923_v23 = vadd.f32 %v1766_v34, %v922_v21 }
  0xe1   : > { %v731_v19 = vadd.f32 %v1766_v34, %v730_v17  ;;  %v796_v20 = vadd.f32 %v1766_v34, %v795_v18  ;;  %1242 = vst.msk [vmem:[%s1781_s27 + $0x158] sm:$0xf] %vm1155_vm1, %v1141_v14 }
  0xe2   : > { %v1016_v22 = vmax.f32 %v858_v16, 0.0  ;;  %v1042_v27 = vmax.f32 %v923_v23, 0.0 }
  0xe3   : > { %v965_v24 = vmax.f32 %v731_v19, 0.0  ;;  %v991_v25 = vmax.f32 %v796_v20, 0.0 }
  0xe4   : > { %v1116_v26 = vpack.c.bf16 %v1016_v22, %v1016_v22  ;;  %v1142_v30 = vpack.c.bf16 %v1042_v27, %v1042_v27 }
  0xe5   : > { %v1065_v28 = vpack.c.bf16 %v965_v24, %v965_v24  ;;  %v1091_v29 = vpack.c.bf16 %v991_v25, %v991_v25 }
  0xe6   : > { %1217 = vst.msk [vmem:[%s1781_s27 + $0xf4] sm:$0xf] %vm1155_vm1, %v1116_v26 }
  0xe7   : > { %1166 = vst.msk [vmem:[%s1781_s27 + $0x28] sm:$0xf] %vm1155_vm1, %v1065_v28  ;;  %v860_v31 = vpop.f32.mrf.mxu2  ;;  %v925_v38 = vpop.f32.mrf.mxu3 }
  0xe8   : > { %1192 = vst.msk [vmem:[%s1781_s27 + $0x90] sm:$0xf] %vm1155_vm1, %v1091_v29  ;;  %v861_v32 = vadd.f32 %v1766_v34, %v860_v31  ;;  %v732_v33 = vpop.f32.mrf.mxu0  ;;  %v797_v35 = vpop.f32.mrf.mxu1  ;;  %v926_v40 = vadd.f32 %v1766_v34, %v925_v38 }
  0xe9   : > { %v733_v36 = vadd.f32 %v1766_v34, %v732_v33  ;;  %v798_v37 = vadd.f32 %v1766_v34, %v797_v35  ;;  %1243 = vst.msk [vmem:[%s1781_s27 + $0x15c] sm:$0xf] %vm1155_vm1, %v1142_v30 }
  0xea   : > { %v1017_v39 = vmax.f32 %v861_v32, 0.0  ;;  %v1043_v44 = vmax.f32 %v926_v40, 0.0 }
  0xeb   : > { %v966_v41 = vmax.f32 %v733_v36, 0.0  ;;  %v992_v42 = vmax.f32 %v798_v37, 0.0 }
  0xec   : > { %v1117_v43 = vpack.c.bf16 %v1017_v39, %v1017_v39  ;;  %v1143_v47 = vpack.c.bf16 %v1043_v44, %v1043_v44 }
  0xed   : > { %v1066_v45 = vpack.c.bf16 %v966_v41, %v966_v41  ;;  %v1092_v46 = vpack.c.bf16 %v992_v42, %v992_v42 }
  0xee   : > { %1218 = vst.msk [vmem:[%s1781_s27 + $0xf8] sm:$0xf] %vm1155_vm1, %v1117_v43 }
  0xef   : > { %1167 = vst.msk [vmem:[%s1781_s27 + $0x2c] sm:$0xf] %vm1155_vm1, %v1066_v45  ;;  %v862_v48 = vpop.f32.mrf.mxu2  ;;  %v927_v54 = vpop.f32.mrf.mxu3 }
  0xf0   : > { %1193 = vst.msk [vmem:[%s1781_s27 + $0x94] sm:$0xf] %vm1155_vm1, %v1092_v46  ;;  %v863_v49 = vadd.f32 %v1766_v34, %v862_v48  ;;  %v735_v50 = vpop.f32.mrf.mxu0  ;;  %v800_v51 = vpop.f32.mrf.mxu1  ;;  %v928_v56 = vadd.f32 %v1766_v34, %v927_v54 }
  0xf1   : > { %v736_v52 = vadd.f32 %v1766_v34, %v735_v50  ;;  %v801_v53 = vadd.f32 %v1766_v34, %v800_v51  ;;  %1244 = vst.msk [vmem:[%s1781_s27 + $0x160] sm:$0xf] %vm1155_vm1, %v1143_v47 }
  0xf2   : > { %v1018_v55 = vmax.f32 %v863_v49, 0.0  ;;  %v1044_v60 = vmax.f32 %v928_v56, 0.0 }
  0xf3   : > { %v967_v57 = vmax.f32 %v736_v52, 0.0  ;;  %v993_v58 = vmax.f32 %v801_v53, 0.0 }
  0xf4   : > { %v1118_v59 = vpack.c.bf16 %v1018_v55, %v1018_v55  ;;  %v1144_v63 = vpack.c.bf16 %v1044_v60, %v1044_v60 }
  0xf5   : > { %v1067_v61 = vpack.c.bf16 %v967_v57, %v967_v57  ;;  %v1093_v62 = vpack.c.bf16 %v993_v58, %v993_v58 }
  0xf6   : > { %1219 = vst.msk [vmem:[%s1781_s27 + $0xfc] sm:$0xf] %vm1155_vm1, %v1118_v59 }
  0xf7   : > { %1168 = vst.msk [vmem:[%s1781_s27 + $0x30] sm:$0xf] %vm1155_vm1, %v1067_v61  ;;  %v865_v0 = vpop.f32.mrf.mxu2  ;;  %v930_v6 = vpop.f32.mrf.mxu3 }
  0xf8   : > { %1194 = vst.msk [vmem:[%s1781_s27 + $0x98] sm:$0xf] %vm1155_vm1, %v1093_v62  ;;  %v866_v1 = vadd.f32 %v1766_v34, %v865_v0  ;;  %v737_v2 = vpop.f32.mrf.mxu0  ;;  %v802_v3 = vpop.f32.mrf.mxu1  ;;  %v931_v8 = vadd.f32 %v1766_v34, %v930_v6 }
  0xf9   : > { %v738_v4 = vadd.f32 %v1766_v34, %v737_v2  ;;  %v803_v5 = vadd.f32 %v1766_v34, %v802_v3  ;;  %1245 = vst.msk [vmem:[%s1781_s27 + $0x164] sm:$0xf] %vm1155_vm1, %v1144_v63 }
  0xfa   : > { %v1019_v7 = vmax.f32 %v866_v1, 0.0  ;;  %v1045_v12 = vmax.f32 %v931_v8, 0.0 }
  0xfb   : > { %v968_v9 = vmax.f32 %v738_v4, 0.0  ;;  %v994_v10 = vmax.f32 %v803_v5, 0.0 }
  0xfc   : > { %v1119_v11 = vpack.c.bf16 %v1019_v7, %v1019_v7  ;;  %v1145_v15 = vpack.c.bf16 %v1045_v12, %v1045_v12 }
  0xfd   : > { %v1068_v13 = vpack.c.bf16 %v968_v9, %v968_v9  ;;  %v1094_v14 = vpack.c.bf16 %v994_v10, %v994_v10 }
  0xfe   : > { %1220 = vst.msk [vmem:[%s1781_s27 + $0x100] sm:$0xf] %vm1155_vm1, %v1119_v11 }
  0xff   : > { %1169 = vst.msk [vmem:[%s1781_s27 + $0x34] sm:$0xf] %vm1155_vm1, %v1068_v13  ;;  %v867_v16 = vpop.f32.mrf.mxu2  ;;  %v932_v22 = vpop.f32.mrf.mxu3 }
 0x100   : > { %1195 = vst.msk [vmem:[%s1781_s27 + $0x9c] sm:$0xf] %vm1155_vm1, %v1094_v14  ;;  %v868_v17 = vadd.f32 %v1766_v34, %v867_v16  ;;  %v740_v18 = vpop.f32.mrf.mxu0  ;;  %v805_v19 = vpop.f32.mrf.mxu1  ;;  %v933_v24 = vadd.f32 %v1766_v34, %v932_v22 }
 0x101   : > { %v741_v20 = vadd.f32 %v1766_v34, %v740_v18  ;;  %v806_v21 = vadd.f32 %v1766_v34, %v805_v19  ;;  %1246 = vst.msk [vmem:[%s1781_s27 + $0x168] sm:$0xf] %vm1155_vm1, %v1145_v15 }
 0x102   : > { %v1020_v23 = vmax.f32 %v868_v17, 0.0  ;;  %v1046_v28 = vmax.f32 %v933_v24, 0.0 }
 0x103   : > { %v969_v25 = vmax.f32 %v741_v20, 0.0  ;;  %v995_v26 = vmax.f32 %v806_v21, 0.0 }
 0x104   : > { %v1120_v27 = vpack.c.bf16 %v1020_v23, %v1020_v23  ;;  %v1146_v31 = vpack.c.bf16 %v1046_v28, %v1046_v28 }
 0x105   : > { %v1069_v29 = vpack.c.bf16 %v969_v25, %v969_v25  ;;  %v1095_v30 = vpack.c.bf16 %v995_v26, %v995_v26 }
 0x106   : > { %1221 = vst.msk [vmem:[%s1781_s27 + $0x104] sm:$0xf] %vm1155_vm1, %v1120_v27 }
 0x107   : > { %1170 = vst.msk [vmem:[%s1781_s27 + $0x38] sm:$0xf] %vm1155_vm1, %v1069_v29  ;;  %v870_v32 = vpop.f32.mrf.mxu2  ;;  %v935_v39 = vpop.f32.mrf.mxu3 }
 0x108   : > { %1196 = vst.msk [vmem:[%s1781_s27 + $0xa0] sm:$0xf] %vm1155_vm1, %v1095_v30  ;;  %v871_v33 = vadd.f32 %v1766_v34, %v870_v32  ;;  %v742_v35 = vpop.f32.mrf.mxu0  ;;  %v807_v36 = vpop.f32.mrf.mxu1  ;;  %v936_v41 = vadd.f32 %v1766_v34, %v935_v39 }
 0x109   : > { %v743_v37 = vadd.f32 %v1766_v34, %v742_v35  ;;  %v808_v38 = vadd.f32 %v1766_v34, %v807_v36  ;;  %1247 = vst.msk [vmem:[%s1781_s27 + $0x16c] sm:$0xf] %vm1155_vm1, %v1146_v31 }
 0x10a   : > { %v1021_v40 = vmax.f32 %v871_v33, 0.0  ;;  %v1047_v45 = vmax.f32 %v936_v41, 0.0 }
 0x10b   : > { %v970_v42 = vmax.f32 %v743_v37, 0.0  ;;  %v996_v43 = vmax.f32 %v808_v38, 0.0 }
 0x10c   : > { %v1121_v44 = vpack.c.bf16 %v1021_v40, %v1021_v40  ;;  %v1147_v48 = vpack.c.bf16 %v1047_v45, %v1047_v45 }
 0x10d   : > { %v1070_v46 = vpack.c.bf16 %v970_v42, %v970_v42  ;;  %v1096_v47 = vpack.c.bf16 %v996_v43, %v996_v43 }
 0x10e   : > { %1222 = vst.msk [vmem:[%s1781_s27 + $0x108] sm:$0xf] %vm1155_vm1, %v1121_v44 }
 0x10f   : > { %1171 = vst.msk [vmem:[%s1781_s27 + $0x3c] sm:$0xf] %vm1155_vm1, %v1070_v46  ;;  %v872_v49 = vpop.f32.mrf.mxu2  ;;  %v937_v55 = vpop.f32.mrf.mxu3 }
 0x110   : > { %1197 = vst.msk [vmem:[%s1781_s27 + $0xa4] sm:$0xf] %vm1155_vm1, %v1096_v47  ;;  %v873_v50 = vadd.f32 %v1766_v34, %v872_v49  ;;  %v745_v51 = vpop.f32.mrf.mxu0  ;;  %v810_v52 = vpop.f32.mrf.mxu1  ;;  %v938_v57 = vadd.f32 %v1766_v34, %v937_v55 }
 0x111   : > { %v746_v53 = vadd.f32 %v1766_v34, %v745_v51  ;;  %v811_v54 = vadd.f32 %v1766_v34, %v810_v52  ;;  %1248 = vst.msk [vmem:[%s1781_s27 + $0x170] sm:$0xf] %vm1155_vm1, %v1147_v48 }
 0x112   : > { %v1022_v56 = vmax.f32 %v873_v50, 0.0  ;;  %v1048_v61 = vmax.f32 %v938_v57, 0.0 }
 0x113   : > { %v971_v58 = vmax.f32 %v746_v53, 0.0  ;;  %v997_v59 = vmax.f32 %v811_v54, 0.0 }
 0x114   : > { %v1122_v60 = vpack.c.bf16 %v1022_v56, %v1022_v56  ;;  %v1148_v0 = vpack.c.bf16 %v1048_v61, %v1048_v61 }
 0x115   : > { %v1071_v62 = vpack.c.bf16 %v971_v58, %v971_v58  ;;  %v1097_v63 = vpack.c.bf16 %v997_v59, %v997_v59 }
 0x116   : > { %1223 = vst.msk [vmem:[%s1781_s27 + $0x10c] sm:$0xf] %vm1155_vm1, %v1122_v60 }
 0x117   : > { %1172 = vst.msk [vmem:[%s1781_s27 + $0x40] sm:$0xf] %vm1155_vm1, %v1071_v62  ;;  %v875_v1 = vpop.f32.mrf.mxu2  ;;  %v940_v7 = vpop.f32.mrf.mxu3 }
 0x118   : > { %1198 = vst.msk [vmem:[%s1781_s27 + $0xa8] sm:$0xf] %vm1155_vm1, %v1097_v63  ;;  %v876_v2 = vadd.f32 %v1766_v34, %v875_v1  ;;  %v747_v3 = vpop.f32.mrf.mxu0  ;;  %v812_v4 = vpop.f32.mrf.mxu1  ;;  %v941_v9 = vadd.f32 %v1766_v34, %v940_v7 }
 0x119   : > { %v748_v5 = vadd.f32 %v1766_v34, %v747_v3  ;;  %v813_v6 = vadd.f32 %v1766_v34, %v812_v4  ;;  %1249 = vst.msk [vmem:[%s1781_s27 + $0x174] sm:$0xf] %vm1155_vm1, %v1148_v0 }
 0x11a   : > { %v1023_v8 = vmax.f32 %v876_v2, 0.0  ;;  %v1049_v13 = vmax.f32 %v941_v9, 0.0 }
 0x11b   : > { %v972_v10 = vmax.f32 %v748_v5, 0.0  ;;  %v998_v11 = vmax.f32 %v813_v6, 0.0 }
 0x11c   : > { %v1123_v12 = vpack.c.bf16 %v1023_v8, %v1023_v8  ;;  %v1149_v16 = vpack.c.bf16 %v1049_v13, %v1049_v13 }
 0x11d   : > { %v1072_v14 = vpack.c.bf16 %v972_v10, %v972_v10  ;;  %v1098_v15 = vpack.c.bf16 %v998_v11, %v998_v11 }
 0x11e   : > { %1224 = vst.msk [vmem:[%s1781_s27 + $0x110] sm:$0xf] %vm1155_vm1, %v1123_v12 }
 0x11f   : > { %1173 = vst.msk [vmem:[%s1781_s27 + $0x44] sm:$0xf] %vm1155_vm1, %v1072_v14  ;;  %v877_v17 = vpop.f32.mrf.mxu2  ;;  %v942_v23 = vpop.f32.mrf.mxu3 }
 0x120   : > { %1199 = vst.msk [vmem:[%s1781_s27 + $0xac] sm:$0xf] %vm1155_vm1, %v1098_v15  ;;  %v878_v18 = vadd.f32 %v1766_v34, %v877_v17  ;;  %v750_v19 = vpop.f32.mrf.mxu0  ;;  %v815_v20 = vpop.f32.mrf.mxu1  ;;  %v943_v25 = vadd.f32 %v1766_v34, %v942_v23 }
 0x121   : > { %v751_v21 = vadd.f32 %v1766_v34, %v750_v19  ;;  %v816_v22 = vadd.f32 %v1766_v34, %v815_v20  ;;  %1250 = vst.msk [vmem:[%s1781_s27 + $0x178] sm:$0xf] %vm1155_vm1, %v1149_v16 }
 0x122   : > { %v1024_v24 = vmax.f32 %v878_v18, 0.0  ;;  %v1050_v29 = vmax.f32 %v943_v25, 0.0 }
 0x123   : > { %v973_v26 = vmax.f32 %v751_v21, 0.0  ;;  %v999_v27 = vmax.f32 %v816_v22, 0.0 }
 0x124   : > { %v1124_v28 = vpack.c.bf16 %v1024_v24, %v1024_v24  ;;  %v1150_v32 = vpack.c.bf16 %v1050_v29, %v1050_v29 }
 0x125   : > { %v1073_v30 = vpack.c.bf16 %v973_v26, %v973_v26  ;;  %v1099_v31 = vpack.c.bf16 %v999_v27, %v999_v27 }
 0x126   : > { %1225 = vst.msk [vmem:[%s1781_s27 + $0x114] sm:$0xf] %vm1155_vm1, %v1124_v28 }
 0x127   : > { %1174 = vst.msk [vmem:[%s1781_s27 + $0x48] sm:$0xf] %vm1155_vm1, %v1073_v30  ;;  %v880_v33 = vpop.f32.mrf.mxu2  ;;  %v945_v40 = vpop.f32.mrf.mxu3 }
 0x128   : > { %1200 = vst.msk [vmem:[%s1781_s27 + $0xb0] sm:$0xf] %vm1155_vm1, %v1099_v31  ;;  %v881_v35 = vadd.f32 %v1766_v34, %v880_v33  ;;  %v752_v36 = vpop.f32.mrf.mxu0  ;;  %v817_v37 = vpop.f32.mrf.mxu1  ;;  %v946_v42 = vadd.f32 %v1766_v34, %v945_v40 }
 0x129   : > { %v753_v38 = vadd.f32 %v1766_v34, %v752_v36  ;;  %v818_v39 = vadd.f32 %v1766_v34, %v817_v37  ;;  %1251 = vst.msk [vmem:[%s1781_s27 + $0x17c] sm:$0xf] %vm1155_vm1, %v1150_v32 }
 0x12a   : > { %v1025_v41 = vmax.f32 %v881_v35, 0.0  ;;  %v1051_v46 = vmax.f32 %v946_v42, 0.0 }
 0x12b   : > { %v974_v43 = vmax.f32 %v753_v38, 0.0  ;;  %v1000_v44 = vmax.f32 %v818_v39, 0.0 }
 0x12c   : > { %v1125_v45 = vpack.c.bf16 %v1025_v41, %v1025_v41  ;;  %v1151_v49 = vpack.c.bf16 %v1051_v46, %v1051_v46 }
 0x12d   : > { %v1074_v47 = vpack.c.bf16 %v974_v43, %v974_v43  ;;  %v1100_v48 = vpack.c.bf16 %v1000_v44, %v1000_v44 }
 0x12e   : > { %1226 = vst.msk [vmem:[%s1781_s27 + $0x118] sm:$0xf] %vm1155_vm1, %v1125_v45 }
 0x12f   : > { %1175 = vst.msk [vmem:[%s1781_s27 + $0x4c] sm:$0xf] %vm1155_vm1, %v1074_v47  ;;  %v882_v50 = vpop.f32.mrf.mxu2  ;;  %v947_v56 = vpop.f32.mrf.mxu3 }
 0x130   : > { %1201 = vst.msk [vmem:[%s1781_s27 + $0xb4] sm:$0xf] %vm1155_vm1, %v1100_v48  ;;  %v883_v51 = vadd.f32 %v1766_v34, %v882_v50  ;;  %v755_v52 = vpop.f32.mrf.mxu0  ;;  %v820_v53 = vpop.f32.mrf.mxu1  ;;  %v948_v58 = vadd.f32 %v1766_v34, %v947_v56 }
 0x131   : > { %v756_v54 = vadd.f32 %v1766_v34, %v755_v52  ;;  %v821_v55 = vadd.f32 %v1766_v34, %v820_v53  ;;  %1252 = vst.msk [vmem:[%s1781_s27 + $0x180] sm:$0xf] %vm1155_vm1, %v1151_v49 }
 0x132   : > { %v1026_v57 = vmax.f32 %v883_v51, 0.0  ;;  %v1052_v62 = vmax.f32 %v948_v58, 0.0 }
 0x133   : > { %v975_v59 = vmax.f32 %v756_v54, 0.0  ;;  %v1001_v60 = vmax.f32 %v821_v55, 0.0 }
 0x134   : > { %v1126_v61 = vpack.c.bf16 %v1026_v57, %v1026_v57  ;;  %v1152_v1 = vpack.c.bf16 %v1052_v62, %v1052_v62 }
 0x135   : > { %v1075_v63 = vpack.c.bf16 %v975_v59, %v975_v59  ;;  %v1101_v0 = vpack.c.bf16 %v1001_v60, %v1001_v60 }
 0x136   : > { %1227 = vst.msk [vmem:[%s1781_s27 + $0x11c] sm:$0xf] %vm1155_vm1, %v1126_v61 }
 0x137   : > { %1176 = vst.msk [vmem:[%s1781_s27 + $0x50] sm:$0xf] %vm1155_vm1, %v1075_v63  ;;  %v885_v2 = vpop.f32.mrf.mxu2  ;;  %v950_v8 = vpop.f32.mrf.mxu3 }
 0x138   : > { %1202 = vst.msk [vmem:[%s1781_s27 + $0xb8] sm:$0xf] %vm1155_vm1, %v1101_v0  ;;  %v886_v3 = vadd.f32 %v1766_v34, %v885_v2  ;;  %v757_v4 = vpop.f32.mrf.mxu0  ;;  %v822_v5 = vpop.f32.mrf.mxu1  ;;  %v951_v10 = vadd.f32 %v1766_v34, %v950_v8 }
 0x139   : > { %v758_v6 = vadd.f32 %v1766_v34, %v757_v4  ;;  %v823_v7 = vadd.f32 %v1766_v34, %v822_v5  ;;  %1253 = vst.msk [vmem:[%s1781_s27 + $0x184] sm:$0xf] %vm1155_vm1, %v1152_v1 }
 0x13a   : > { %v1027_v9 = vmax.f32 %v886_v3, 0.0  ;;  %v1053_v14 = vmax.f32 %v951_v10, 0.0 }
 0x13b   : > { %v976_v11 = vmax.f32 %v758_v6, 0.0  ;;  %v1002_v12 = vmax.f32 %v823_v7, 0.0 }
 0x13c   : > { %v1127_v13 = vpack.c.bf16 %v1027_v9, %v1027_v9  ;;  %v1153_v17 = vpack.c.bf16 %v1053_v14, %v1053_v14 }
 0x13d   : > { %v1076_v15 = vpack.c.bf16 %v976_v11, %v976_v11  ;;  %v1102_v16 = vpack.c.bf16 %v1002_v12, %v1002_v12 }
 0x13e   : > { %1228 = vst.msk [vmem:[%s1781_s27 + $0x120] sm:$0xf] %vm1155_vm1, %v1127_v13 }
 0x13f   : > { %1177 = vst.msk [vmem:[%s1781_s27 + $0x54] sm:$0xf] %vm1155_vm1, %v1076_v15  ;;  %v887_v18 = vpop.f32.mrf.mxu2  ;;  %v952_v24 = vpop.f32.mrf.mxu3 }
 0x140   : > { %1203 = vst.msk [vmem:[%s1781_s27 + $0xbc] sm:$0xf] %vm1155_vm1, %v1102_v16  ;;  %v888_v19 = vadd.f32 %v1766_v34, %v887_v18  ;;  %v760_v20 = vpop.f32.mrf.mxu0  ;;  %v825_v21 = vpop.f32.mrf.mxu1  ;;  %v953_v26 = vadd.f32 %v1766_v34, %v952_v24 }
 0x141   : > { %v761_v22 = vadd.f32 %v1766_v34, %v760_v20  ;;  %v826_v23 = vadd.f32 %v1766_v34, %v825_v21  ;;  %1254 = vst.msk [vmem:[%s1781_s27 + $0x188] sm:$0xf] %vm1155_vm1, %v1153_v17 }
 0x142   : > { %v1028_v25 = vmax.f32 %v888_v19, 0.0  ;;  %v1054_v30 = vmax.f32 %v953_v26, 0.0 }
 0x143   : > { %v977_v27 = vmax.f32 %v761_v22, 0.0  ;;  %v1003_v28 = vmax.f32 %v826_v23, 0.0 }
 0x144   : > { %v1128_v29 = vpack.c.bf16 %v1028_v25, %v1028_v25  ;;  %v1154_v33 = vpack.c.bf16 %v1054_v30, %v1054_v30 }
 0x145   : > { %v1077_v31 = vpack.c.bf16 %v977_v27, %v977_v27  ;;  %v1103_v32 = vpack.c.bf16 %v1003_v28, %v1003_v28 }
 0x146   : > { %1229 = vst.msk [vmem:[%s1781_s27 + $0x124] sm:$0xf] %vm1155_vm1, %v1128_v29 }
 0x147   : > { %1178 = vst.msk [vmem:[%s1781_s27 + $0x58] sm:$0xf] %vm1155_vm1, %v1077_v31  ;;  %v890_v35 = vpop.f32.mrf.mxu2 }
 0x148   : > { %1204 = vst.msk [vmem:[%s1781_s27 + $0xc0] sm:$0xf] %vm1155_vm1, %v1103_v32  ;;  %v891_v36 = vadd.f32 %v1766_v34, %v890_v35  ;;  %v762_v37 = vpop.f32.mrf.mxu0  ;;  %v827_v38 = vpop.f32.mrf.mxu1 }
 0x149   : > { %v763_v39 = vadd.f32 %v1766_v34, %v762_v37  ;;  %v828_v40 = vadd.f32 %v1766_v34, %v827_v38  ;;  %1255 = vst.msk [vmem:[%s1781_s27 + $0x18c] sm:$0xf] %vm1155_vm1, %v1154_v33 }
 0x14a   : > { %v1029_v41 = vmax.f32 %v891_v36, 0.0 }
 0x14b   : > { %v978_v42 = vmax.f32 %v763_v39, 0.0  ;;  %v1004_v43 = vmax.f32 %v828_v40, 0.0 }
 0x14c   : > { %v1129_v44 = vpack.c.bf16 %v1029_v41, %v1029_v41 }
 0x14d   : > { %v1078_v45 = vpack.c.bf16 %v978_v42, %v978_v42  ;;  %v1104_v46 = vpack.c.bf16 %v1004_v43, %v1004_v43 }
 0x14e   : > { %1230 = vst.msk [vmem:[%s1781_s27 + $0x128] sm:$0xf] %vm1155_vm1, %v1129_v44 }
 0x14f   : > { %1179 = vst.msk [vmem:[%s1781_s27 + $0x5c] sm:$0xf] %vm1155_vm1, %v1078_v45  ;;  %v892_v47 = vpop.f32.mrf.mxu2 }
 0x150   : > { %1205 = vst.msk [vmem:[%s1781_s27 + $0xc4] sm:$0xf] %vm1155_vm1, %v1104_v46  ;;  %v893_v48 = vadd.f32 %v1766_v34, %v892_v47  ;;  %v765_v49 = vpop.f32.mrf.mxu0  ;;  %v830_v50 = vpop.f32.mrf.mxu1 }
 0x151   : > { %v766_v51 = vadd.f32 %v1766_v34, %v765_v49  ;;  %v831_v52 = vadd.f32 %v1766_v34, %v830_v50  ;;  %v1646_v34 = vld [vmem:[%s2115_s2] ss:$0 sm:$0xff] }
 0x152   : > { %v1030_v53 = vmax.f32 %v893_v48, 0.0 }
 0x153   : > { %v979_v54 = vmax.f32 %v766_v51, 0.0  ;;  %v1005_v55 = vmax.f32 %v831_v52, 0.0 }
 0x154   : > { %v1130_v56 = vpack.c.bf16 %v1030_v53, %v1030_v53 }
 0x155   : > { %v1079_v57 = vpack.c.bf16 %v979_v54, %v979_v54  ;;  %v1105_v58 = vpack.c.bf16 %v1005_v55, %v1005_v55 }
 0x156   : > { %1231 = vst.msk [vmem:[%s1781_s27 + $0x12c] sm:$0xf] %vm1155_vm1, %v1130_v56 }
 0x157   : > { %1180 = vst.msk [vmem:[%s1781_s27 + $0x60] sm:$0xf] %vm1155_vm1, %v1079_v57  ;;  %v895_v59 = vpop.f32.mrf.mxu2 }
 0x158   : > { %1206 = vst.msk [vmem:[%s1781_s27 + $0xc8] sm:$0xf] %vm1155_vm1, %v1105_v58  ;;  %v896_v60 = vadd.f32 %v1646_v34, %v895_v59  ;;  %v767_v61 = vpop.f32.mrf.mxu0  ;;  %v832_v62 = vpop.f32.mrf.mxu1 }
 0x159   : > { %v768_v63 = vadd.f32 %v1646_v34, %v767_v61  ;;  %v833_v0 = vadd.f32 %v1646_v34, %v832_v62 }
 0x15a   : > { %v1031_v1 = vmax.f32 %v896_v60, 0.0 }
 0x15b   : > { %v980_v2 = vmax.f32 %v768_v63, 0.0  ;;  %v1006_v3 = vmax.f32 %v833_v0, 0.0 }
 0x15c   : > { %v1131_v4 = vpack.c.bf16 %v1031_v1, %v1031_v1 }
 0x15d   : > { %v1080_v5 = vpack.c.bf16 %v980_v2, %v980_v2  ;;  %v1106_v6 = vpack.c.bf16 %v1006_v3, %v1006_v3 }
 0x15e   : > { %1232 = vst.msk [vmem:[%s1781_s27 + $0x130] sm:$0xf] %vm1155_vm1, %v1131_v4 }
 0x15f   : > { %1181 = vst.msk [vmem:[%s1781_s27 + $0x64] sm:$0xf] %vm1155_vm1, %v1080_v5  ;;  %v897_v7 = vpop.f32.mrf.mxu2 }
 0x160   : > { %1207 = vst.msk [vmem:[%s1781_s27 + $0xcc] sm:$0xf] %vm1155_vm1, %v1106_v6  ;;  %v898_v8 = vadd.f32 %v1646_v34, %v897_v7 }
 0x162   : > { %v1032_v9 = vmax.f32 %v898_v8, 0.0 }
 0x164   : > { %v1132_v10 = vpack.c.bf16 %v1032_v9, %v1032_v9 }
 0x166   : > { %1233 = vst.msk [vmem:[%s1781_s27 + $0x134] sm:$0xf] %vm1155_vm1, %v1132_v10 }
 0x167 PF: > { %s13_s12 = sadd.s32 1, %s1653_s12  }
 0x168   : > { %p10_p4 = scmp.ge.s32.totalorder %s13_s12, 11  }
 0x16a   :  { %12 = sbr.rel (!%p10_p4) target bundleno = 1 (0x1), region = 62 }

// kernel: lenet5_forward.6
= control target key start
LH: loop header
LB: loop body
LE: loop exit
PB: predicated region body
PF: predicated region fallthrough
CT: control target
= control target key end

     0   :  { %vm407_vm0 = vcmask 1040384   ;;  %vm411_vm1 = vcmask 1042434   ;;  %vm415_vm2 = vcmask 1041408   ;;  %vm417_vm3 = vcmask 1044484   ;;  %s803_s0 = inlined_call_operand.vmem [shape: bf16[2,7200], index: 0, kind: input, shape index: {}]   ;;  %s804_s1 = inlined_call_operand.vmem [shape: bf16[2,7200], index: 1, kind: input, shape index: {}]   ;;  %s805_s2 = inlined_call_operand.vmem [shape: bf16[2,7200], index: 2, kind: input, shape index: {}]   ;;  %s806_s3 = inlined_call_operand.vmem [shape: bf16[2,7200], index: 3, kind: input, shape index: {}]   ;;  %s807_s4 = inlined_call_operand.vmem [shape: bf16[2,7200], index: 4, kind: output, shape index: {}]  }
   0x1   :  { %v17_v0 = vld [vmem:[%s803_s0] sm:$0xff]  ;;  %v24_v1 = vld [vmem:[%s803_s0 + $0x38] sm:$0x1]  ;;  %v18_v21 = vld [vmem:[%s803_s0 + $0x8] sm:$0xff]  ;;  %vm421_vm4 = vcmask 1046534   ;;  %vm425_vm5 = vcmask 1045508  }
   0x2   :  { %v40_v2 = vld [vmem:[%s804_s1] sm:$0xff]  ;;  %v47_v3 = vld [vmem:[%s804_s1 + $0x38] sm:$0x1]  ;;  %v25_v6 = vunpack.c.l.bf16 %v17_v0  ;;  %v39_v7 = vunpack.c.l.bf16 %v24_v1  ;;  %v41_v22 = vld [vmem:[%s804_s1 + $0x8] sm:$0xff]  ;;  %v26_v26 = vunpack.c.h.bf16 %v17_v0  ;;  %v27_v30 = vunpack.c.l.bf16 %v18_v21 }
   0x3   :  { %v63_v4 = vld [vmem:[%s805_s2] sm:$0xff]  ;;  %v48_v8 = vunpack.c.l.bf16 %v40_v2  ;;  %v62_v9 = vunpack.c.l.bf16 %v47_v3  ;;  %v70_v10 = vld [vmem:[%s805_s2 + $0x38] sm:$0x1]  ;;  %v64_v23 = vld [vmem:[%s805_s2 + $0x8] sm:$0xff]  ;;  %v49_v27 = vunpack.c.h.bf16 %v40_v2  ;;  %v50_v31 = vunpack.c.l.bf16 %v41_v22 }
   0x4   :  { %v86_v5 = vld [vmem:[%s806_s3] sm:$0xff]  ;;  %v93_v11 = vld [vmem:[%s806_s3 + $0x38] sm:$0x1]  ;;  %v71_v12 = vunpack.c.l.bf16 %v63_v4  ;;  %v85_v14 = vunpack.c.l.bf16 %v70_v10  ;;  %v87_v24 = vld [vmem:[%s806_s3 + $0x8] sm:$0xff]  ;;  %v72_v28 = vunpack.c.h.bf16 %v63_v4  ;;  %v73_v32 = vunpack.c.l.bf16 %v64_v23 }
   0x5   :  { %v94_v13 = vunpack.c.l.bf16 %v86_v5  ;;  %v108_v15 = vunpack.c.l.bf16 %v93_v11  ;;  %v109_v16 = vmax.f32 %v25_v6, %v48_v8  ;;  %v592_v17 = vmax.f32 %v39_v7, %v62_v9  ;;  %v19_v34 = vld [vmem:[%s803_s0 + $0x10] sm:$0xff]  ;;  %v625_v62 = vld [vmem:[%s803_s0 + $0x18] sm:$0xff] }
   0x6   :  { %v95_v29 = vunpack.c.h.bf16 %v86_v5  ;;  %v96_v33 = vunpack.c.l.bf16 %v87_v24  ;;  %v110_v35 = vmax.f32 %v26_v26, %v49_v27  ;;  %v28_v37 = vunpack.c.h.bf16 %v18_v21  ;;  %v42_v39 = vld [vmem:[%s804_s1 + $0x10] sm:$0xff]  ;;  %v630_v63 = vld [vmem:[%s804_s1 + $0x18] sm:$0xff] }
   0x7   :  { %v124_v18 = vmax.f32 %v71_v12, %v94_v13  ;;  %v594_v19 = vmax.f32 %v85_v14, %v108_v15  ;;  %v51_v38 = vunpack.c.h.bf16 %v41_v22  ;;  %v65_v40 = vld [vmem:[%s805_s2 + $0x10] sm:$0xff]  ;;  %v111_v42 = vmax.f32 %v27_v30, %v50_v31  ;;  %v635_v0 = vld [vmem:[%s805_s2 + $0x18] sm:$0xff] }
   0x8   :  { %v125_v36 = vmax.f32 %v72_v28, %v95_v29  ;;  %v88_v41 = vld [vmem:[%s806_s3 + $0x10] sm:$0xff]  ;;  %v126_v43 = vmax.f32 %v73_v32, %v96_v33  ;;  %v74_v44 = vunpack.c.h.bf16 %v64_v23  ;;  %v97_v45 = vunpack.c.h.bf16 %v87_v24  ;;  %v640_v5 = vld [vmem:[%s806_s3 + $0x18] sm:$0xff] }
   0x9   :  { %v139_v20 = vmax.f32 %v109_v16, %v124_v18  ;;  %v153_v25 = vmax.f32 %v592_v17, %v594_v19  ;;  %v29_v48 = vunpack.c.l.bf16 %v19_v34  ;;  %v52_v49 = vunpack.c.l.bf16 %v42_v39 }
   0xa   :  { %v140_v46 = vmax.f32 %v110_v35, %v125_v36  ;;  %v141_v47 = vmax.f32 %v111_v42, %v126_v43  ;;  %v75_v50 = vunpack.c.l.bf16 %v65_v40  ;;  %v98_v51 = vunpack.c.l.bf16 %v88_v41 }
   0xb   :  { %169 = vst [vmem:[#allocation1] ss:$4 sm:$0xff] %v139_v20  ;;  %v112_v55 = vmax.f32 %v28_v37, %v51_v38  ;;  %v127_v56 = vmax.f32 %v74_v44, %v97_v45  ;;  %v30_v59 = vunpack.c.h.bf16 %v19_v34  ;;  %v53_v60 = vunpack.c.h.bf16 %v42_v39  ;;  %v658_v45 = vld [vmem:[%s803_s0 + $0x20] sm:$0xff] }
   0xc   :  { %171 = vst [vmem:[#allocation1 + $0x20] ss:$4 sm:$0xff] %v140_v46  ;;  %v76_v1 = vunpack.c.h.bf16 %v65_v40  ;;  %v99_v2 = vunpack.c.h.bf16 %v88_v41  ;;  %v113_v3 = vmax.f32 %v29_v48, %v52_v49  ;;  %v128_v4 = vmax.f32 %v75_v50, %v98_v51  ;;  %v663_v46 = vld [vmem:[%s804_s1 + $0x20] sm:$0xff] }
   0xd   :  { %v142_v6 = vmax.f32 %v112_v55, %v127_v56  ;;  %v31_v10 = vunpack.c.l.bf16 %v625_v62  ;;  %v54_v11 = vunpack.c.l.bf16 %v630_v63  ;;  %v77_v12 = vunpack.c.l.bf16 %v635_v0  ;;  %v669_v51 = vld [vmem:[%s805_s2 + $0x20] sm:$0xff] }
   0xe   :  { %v100_v15 = vunpack.c.l.bf16 %v640_v5  ;;  %v114_v16 = vmax.f32 %v30_v59, %v53_v60  ;;  %v143_v18 = vmax.f32 %v113_v3, %v128_v4  ;;  %v129_v27 = vmax.f32 %v76_v1, %v99_v2 }
   0xf   :  { %v32_v31 = vunpack.c.h.bf16 %v625_v62  ;;  %vm427_vm6 = vcmask 1043456   ;;  %v55_v35 = vunpack.c.h.bf16 %v630_v63  ;;  %v78_v41 = vunpack.c.h.bf16 %v635_v0 }
  0x10   :  { %v101_v42 = vunpack.c.h.bf16 %v640_v5  ;;  %v130_v48 = vmax.f32 %v77_v12, %v100_v15  ;;  %v144_v49 = vmax.f32 %v114_v16, %v129_v27  ;;  %v33_v59 = vunpack.c.l.bf16 %v658_v45  ;;  %v699_v27 = vld [vmem:[%s804_s1 + $0x28] sm:$0xff] }
  0x11   :  { %v56_v60 = vunpack.c.l.bf16 %v663_v46  ;;  %v79_v0 = vunpack.c.l.bf16 %v669_v51  ;;  %v116_v4 = vmax.f32 %v32_v31, %v55_v35  ;;  %vm537_vm7 = vcmask 253952  }
  0x12   :  { %v172_v52 = vld.sshfl [vmem:[#allocation1] sm:$0xff pattern:$0x73625140]  ;;  %v173_v53 = vld.sshfl [vmem:[#allocation1 + $0x8] sm:$0xff pattern:$0x73625140]  ;;  %v131_v5 = vmax.f32 %v78_v41, %v101_v42  ;;  %v58_v42 = vunpack.c.l.bf16 %v699_v27 }
  0x13   :  { %v174_v54 = vld.sshfl [vmem:[#allocation1 + $0x10] sm:$0xff pattern:$0x73625140]  ;;  %v175_v57 = vld.sshfl [vmem:[#allocation1 + $0x18] sm:$0xff pattern:$0x73625140]  ;;  %v299_v58 = vpack.c.bf16 %v173_v53, %v172_v52 }
  0x14   :  { %180 = vst [vmem:[#allocation1] ss:$4 sm:$0xff] %v141_v47  ;;  %v300_v61 = vpack.c.bf16 %v175_v57, %v174_v54  ;;  %v176_v13 = vld.sshfl [vmem:[#allocation1 + $0x20] sm:$0xff pattern:$0x73625140]  ;;  %v115_v47 = vmax.f32 %v31_v10, %v54_v11 }
  0x15   :  { %v357_v7 = vrot.slane %v299_v58, 3  ;;  %v177_v14 = vld.sshfl [vmem:[#allocation1 + $0x28] sm:$0xff pattern:$0x73625140]  ;;  %v674_v52 = vld [vmem:[%s806_s3 + $0x20] sm:$0xff] }
  0x16   :  { %v358_v8 = vrot.slane %v300_v61, 6  ;;  %v359_v9 = vrot.slane %v300_v61, 1  ;;  %v178_v20 = vld.sshfl [vmem:[#allocation1 + $0x30] sm:$0xff pattern:$0x73625140]  ;;  %v301_v22 = vpack.c.bf16 %v177_v14, %v176_v13  ;;  %v102_v1 = vunpack.c.l.bf16 %v674_v52 }
  0x17   :  { %v179_v21 = vld.sshfl [vmem:[#allocation1 + $0x38] sm:$0xff pattern:$0x73625140]  ;;  %v410_v24 = vsel %vm407_vm0, %v299_v58, %v357_v7  ;;  %v145_v2 = vmax.f32 %v115_v47, %v130_v48  ;;  %v57_v13 = vunpack.c.h.bf16 %v663_v46  ;;  %v80_v14 = vunpack.c.h.bf16 %v669_v51 }
  0x18   :  { %181 = vst [vmem:[#allocation1 + $0x20] ss:$4 sm:$0xff] %v142_v6  ;;  %v302_v23 = vpack.c.bf16 %v179_v21, %v178_v20  ;;  %v414_v26 = vsel %vm411_vm1, %v358_v8, %v359_v9  ;;  %v360_v28 = vrot.slane %v301_v22, 4  ;;  %v361_v29 = vrot.slane %v301_v22, 7 }
  0x19   :  { %v416_v36 = vsel %vm415_vm2, %v410_v24, %v414_v26  ;;  %v34_v8 = vunpack.c.h.bf16 %v658_v45  ;;  %v103_v15 = vunpack.c.h.bf16 %v674_v52  ;;  %v694_v26 = vld [vmem:[%s803_s0 + $0x28] sm:$0xff] }
  0x1a   :  { %v362_v32 = vrot.slane %v302_v23, 2  ;;  %v363_v33 = vrot.slane %v302_v23, 5  ;;  %v420_v37 = vsel %vm417_vm3, %v360_v28, %v361_v29  ;;  %v117_v28 = vmax.f32 %v33_v59, %v56_v60 }
  0x1b   :  { %v182_v30 = vld.sshfl [vmem:[#allocation1] sm:$0xff pattern:$0x73625140]  ;;  %v183_v34 = vld.sshfl [vmem:[#allocation1 + $0x8] sm:$0xff pattern:$0x73625140]  ;;  %v132_v29 = vmax.f32 %v79_v0, %v102_v1  ;;  %v35_v41 = vunpack.c.l.bf16 %v694_v26  ;;  %v118_v51 = vmax.f32 %v34_v8, %v57_v13  ;;  %v133_v52 = vmax.f32 %v80_v14, %v103_v15 }
  0x1c   :  { %v184_v38 = vld.sshfl [vmem:[#allocation1 + $0x10] sm:$0xff pattern:$0x73625140]  ;;  %v185_v39 = vld.sshfl [vmem:[#allocation1 + $0x18] sm:$0xff pattern:$0x73625140]  ;;  %v303_v40 = vpack.c.bf16 %v183_v34, %v182_v30  ;;  %v424_v43 = vsel %vm421_vm4, %v362_v32, %v363_v33  ;;  %v146_v30 = vmax.f32 %v116_v4, %v131_v5  ;;  %v59_v60 = vunpack.c.h.bf16 %v699_v27 }
  0x1d   :  { %190 = vst [vmem:[#allocation1] ss:$4 sm:$0xff] %v143_v18  ;;  %v304_v44 = vpack.c.bf16 %v185_v39, %v184_v38  ;;  %v426_v50 = vsel %vm425_vm5, %v420_v37, %v424_v43  ;;  %v705_v32 = vld [vmem:[%s805_s2 + $0x28] sm:$0xff]  ;;  %v119_v8 = vmax.f32 %v35_v41, %v58_v42  ;;  %v92_v13 = vld [vmem:[%s806_s3 + $0x30] sm:$0xff] }
  0x1e   :  { %v428_v53 = vsel %vm427_vm6, %v416_v36, %v426_v50  ;;  %v364_v54 = vrot.slane %v303_v40, 3  ;;  %v710_v33 = vld [vmem:[%s806_s3 + $0x28] sm:$0xff]  ;;  %v81_v47 = vunpack.c.l.bf16 %v705_v32 }
  0x1f   :  { %v365_v55 = vrot.slane %v304_v44, 6  ;;  %v366_v56 = vrot.slane %v304_v44, 1  ;;  %530 = vst [vmem:[%s807_s4] sm:$0xff] %v428_v53  ;;  %v186_v57 = vld.sshfl [vmem:[#allocation1 + $0x20] sm:$0xff pattern:$0x73625140]  ;;  %v104_v48 = vunpack.c.l.bf16 %v710_v33 }
  0x20   :  { %v187_v58 = vld.sshfl [vmem:[#allocation1 + $0x28] sm:$0xff pattern:$0x73625140]  ;;  %v188_v61 = vld.sshfl [vmem:[#allocation1 + $0x30] sm:$0xff pattern:$0x73625140]  ;;  %v431_v11 = vsel %vm407_vm0, %v303_v40, %v364_v54 }
  0x21   :  { %v189_v62 = vld.sshfl [vmem:[#allocation1 + $0x38] sm:$0xff pattern:$0x73625140]  ;;  %v305_v63 = vpack.c.bf16 %v187_v58, %v186_v57  ;;  %v434_v12 = vsel %vm411_vm1, %v365_v55, %v366_v56  ;;  %v36_v55 = vunpack.c.h.bf16 %v694_v26 }
  0x22   :  { %191 = vst [vmem:[#allocation1 + $0x20] ss:$4 sm:$0xff] %v144_v49  ;;  %v306_v3 = vpack.c.bf16 %v189_v62, %v188_v61  ;;  %v435_v31 = vsel %vm415_vm2, %v431_v11, %v434_v12  ;;  %v147_v49 = vmax.f32 %v117_v28, %v132_v29  ;;  %v82_v61 = vunpack.c.h.bf16 %v705_v32  ;;  %v69_v12 = vld [vmem:[%s805_s2 + $0x30] sm:$0xff] }
  0x23   :  { %v367_v6 = vrot.slane %v305_v63, 4  ;;  %v368_v7 = vrot.slane %v305_v63, 7  ;;  %v105_v62 = vunpack.c.h.bf16 %v710_v33 }
  0x24   :  { %v192_v9 = vld.sshfl [vmem:[#allocation1] sm:$0xff pattern:$0x73625140]  ;;  %v193_v10 = vld.sshfl [vmem:[#allocation1 + $0x8] sm:$0xff pattern:$0x73625140] }
  0x25   :  { %v194_v16 = vld.sshfl [vmem:[#allocation1 + $0x10] sm:$0xff pattern:$0x73625140]  ;;  %v195_v18 = vld.sshfl [vmem:[#allocation1 + $0x18] sm:$0xff pattern:$0x73625140]  ;;  %v307_v20 = vpack.c.bf16 %v193_v10, %v192_v9  ;;  %v438_v23 = vsel %vm417_vm3, %v367_v6, %v368_v7  ;;  %v134_v9 = vmax.f32 %v81_v47, %v104_v48  ;;  %v148_v10 = vmax.f32 %v118_v51, %v133_v52 }
  0x26   :  { %200 = vst [vmem:[#allocation1] ss:$4 sm:$0xff] %v145_v2  ;;  %v369_v21 = vrot.slane %v306_v3, 2  ;;  %v370_v22 = vrot.slane %v306_v3, 5  ;;  %v308_v24 = vpack.c.bf16 %v195_v18, %v194_v16  ;;  %v732_v6 = vld [vmem:[%s803_s0 + $0x30] sm:$0xff] }
  0x27   :  { %v371_v35 = vrot.slane %v307_v20, 3  ;;  %v737_v7 = vld [vmem:[%s804_s1 + $0x30] sm:$0xff]  ;;  %v149_v32 = vmax.f32 %v119_v8, %v134_v9 }
  0x28   :  { %v441_v34 = vsel %vm421_vm4, %v369_v21, %v370_v22  ;;  %v372_v36 = vrot.slane %v308_v24, 6  ;;  %v373_v37 = vrot.slane %v308_v24, 1  ;;  %v60_v24 = vunpack.c.l.bf16 %v737_v7 }
  0x29   :  { %v196_v38 = vld.sshfl [vmem:[#allocation1 + $0x20] sm:$0xff pattern:$0x73625140]  ;;  %v197_v39 = vld.sshfl [vmem:[#allocation1 + $0x28] sm:$0xff pattern:$0x73625140]  ;;  %v442_v40 = vsel %vm425_vm5, %v438_v23, %v441_v34  ;;  %v446_v58 = vsel %vm407_vm0, %v307_v20, %v371_v35  ;;  %v37_v23 = vunpack.c.l.bf16 %v732_v6  ;;  %v120_v34 = vmax.f32 %v36_v55, %v59_v60 }
  0x2a   :  { %v198_v43 = vld.sshfl [vmem:[#allocation1 + $0x30] sm:$0xff pattern:$0x73625140]  ;;  %v199_v44 = vld.sshfl [vmem:[#allocation1 + $0x38] sm:$0xff pattern:$0x73625140]  ;;  %v443_v45 = vsel %vm427_vm6, %v435_v31, %v442_v40  ;;  %v309_v46 = vpack.c.bf16 %v197_v39, %v196_v38  ;;  %v449_v59 = vsel %vm411_vm1, %v372_v36, %v373_v37  ;;  %v106_v31 = vunpack.c.l.bf16 %v92_v13 }
  0x2b   :  { %201 = vst [vmem:[#allocation1 + $0x20] ss:$4 sm:$0xff] %v146_v30  ;;  %v310_v50 = vpack.c.bf16 %v199_v44, %v198_v43  ;;  %v450_v11 = vsel %vm415_vm2, %v446_v58, %v449_v59  ;;  %v83_v30 = vunpack.c.l.bf16 %v69_v12  ;;  %v135_v35 = vmax.f32 %v82_v61, %v105_v62 }
  0x2c   :  { %531 = vst [vmem:[%s807_s4 + $0x8] sm:$0xff] %v443_v45  ;;  %v374_v53 = vrot.slane %v309_v46, 4  ;;  %v375_v54 = vrot.slane %v309_v46, 7  ;;  %v38_v38 = vunpack.c.h.bf16 %v732_v6  ;;  %v61_v43 = vunpack.c.h.bf16 %v737_v7 }
  0x2d   :  { %v202_v56 = vld.sshfl [vmem:[#allocation1] sm:$0xff pattern:$0x73625140]  ;;  %v203_v57 = vld.sshfl [vmem:[#allocation1 + $0x8] sm:$0xff pattern:$0x73625140]  ;;  %v84_v44 = vunpack.c.h.bf16 %v69_v12  ;;  %v107_v45 = vunpack.c.h.bf16 %v92_v13  ;;  %v150_v55 = vmax.f32 %v120_v34, %v135_v35 }
  0x2e   :  { %v204_v63 = vld.sshfl [vmem:[#allocation1 + $0x10] sm:$0xff pattern:$0x73625140]  ;;  %v205_v0 = vld.sshfl [vmem:[#allocation1 + $0x18] sm:$0xff pattern:$0x73625140]  ;;  %v311_v1 = vpack.c.bf16 %v203_v57, %v202_v56  ;;  %v453_v4 = vsel %vm417_vm3, %v374_v53, %v375_v54  ;;  %v121_v53 = vmax.f32 %v37_v23, %v60_v24  ;;  %v136_v54 = vmax.f32 %v83_v30, %v106_v31 }
  0x2f   :  { %210 = vst [vmem:[#allocation1] ss:$4 sm:$0xff] %v147_v49  ;;  %v376_v2 = vrot.slane %v310_v50, 2  ;;  %v377_v3 = vrot.slane %v310_v50, 5  ;;  %v312_v5 = vpack.c.bf16 %v205_v0, %v204_v63  ;;  %v122_v6 = vmax.f32 %v38_v38, %v61_v43 }
  0x30   :  { %v378_v15 = vrot.slane %v311_v1, 3  ;;  %v137_v7 = vmax.f32 %v84_v44, %v107_v45 }
  0x31   :  { %v456_v14 = vsel %vm421_vm4, %v376_v2, %v377_v3  ;;  %v379_v16 = vrot.slane %v312_v5, 6  ;;  %v380_v18 = vrot.slane %v312_v5, 1 }
  0x32   :  { %v206_v20 = vld.sshfl [vmem:[#allocation1 + $0x20] sm:$0xff pattern:$0x73625140]  ;;  %v207_v21 = vld.sshfl [vmem:[#allocation1 + $0x28] sm:$0xff pattern:$0x73625140]  ;;  %v457_v22 = vsel %vm425_vm5, %v453_v4, %v456_v14  ;;  %v461_v41 = vsel %vm407_vm0, %v311_v1, %v378_v15  ;;  %v151_v4 = vmax.f32 %v121_v53, %v136_v54  ;;  %v152_v23 = vmax.f32 %v122_v6, %v137_v7 }
  0x33   :  { %v208_v26 = vld.sshfl [vmem:[#allocation1 + $0x30] sm:$0xff pattern:$0x73625140]  ;;  %v209_v27 = vld.sshfl [vmem:[#allocation1 + $0x38] sm:$0xff pattern:$0x73625140]  ;;  %v458_v28 = vsel %vm427_vm6, %v450_v11, %v457_v22  ;;  %v313_v29 = vpack.c.bf16 %v207_v21, %v206_v20  ;;  %v464_v42 = vsel %vm411_vm1, %v379_v16, %v380_v18 }
  0x34   :  { %211 = vst [vmem:[#allocation1 + $0x20] ss:$4 sm:$0xff] %v148_v10  ;;  %v314_v33 = vpack.c.bf16 %v209_v27, %v208_v26  ;;  %v465_v56 = vsel %vm415_vm2, %v461_v41, %v464_v42 }
  0x35   :  { %532 = vst [vmem:[%s807_s4 + $0x10] sm:$0xff] %v458_v28  ;;  %v381_v36 = vrot.slane %v313_v29, 4  ;;  %v382_v37 = vrot.slane %v313_v29, 7 }
  0x36   :  { %v212_v39 = vld.sshfl [vmem:[#allocation1] sm:$0xff pattern:$0x73625140]  ;;  %v213_v40 = vld.sshfl [vmem:[#allocation1 + $0x8] sm:$0xff pattern:$0x73625140] }
  0x37   :  { %v214_v46 = vld.sshfl [vmem:[#allocation1 + $0x10] sm:$0xff pattern:$0x73625140]  ;;  %v215_v47 = vld.sshfl [vmem:[#allocation1 + $0x18] sm:$0xff pattern:$0x73625140]  ;;  %v315_v48 = vpack.c.bf16 %v213_v40, %v212_v39  ;;  %v468_v51 = vsel %vm417_vm3, %v381_v36, %v382_v37 }
  0x38   :  { %220 = vst [vmem:[#allocation1] ss:$4 sm:$0xff] %v149_v32  ;;  %v383_v49 = vrot.slane %v314_v33, 2  ;;  %v384_v50 = vrot.slane %v314_v33, 5  ;;  %v316_v52 = vpack.c.bf16 %v215_v47, %v214_v46 }
  0x39   :  { %v385_v58 = vrot.slane %v315_v48, 3 }
  0x3a   :  { %v471_v57 = vsel %vm421_vm4, %v383_v49, %v384_v50  ;;  %v386_v59 = vrot.slane %v316_v52, 6  ;;  %v387_v60 = vrot.slane %v316_v52, 1 }
  0x3b   :  { %v216_v61 = vld.sshfl [vmem:[#allocation1 + $0x20] sm:$0xff pattern:$0x73625140]  ;;  %v217_v62 = vld.sshfl [vmem:[#allocation1 + $0x28] sm:$0xff pattern:$0x73625140]  ;;  %v472_v63 = vsel %vm425_vm5, %v468_v51, %v471_v57  ;;  %v476_v12 = vsel %vm407_vm0, %v315_v48, %v385_v58 }
  0x3c   :  { %v218_v0 = vld.sshfl [vmem:[#allocation1 + $0x30] sm:$0xff pattern:$0x73625140]  ;;  %v219_v1 = vld.sshfl [vmem:[#allocation1 + $0x38] sm:$0xff pattern:$0x73625140]  ;;  %v473_v2 = vsel %vm427_vm6, %v465_v56, %v472_v63  ;;  %v317_v3 = vpack.c.bf16 %v217_v62, %v216_v61  ;;  %v479_v13 = vsel %vm411_vm1, %v386_v59, %v387_v60 }
  0x3d   :  { %221 = vst [vmem:[#allocation1 + $0x20] ss:$4 sm:$0xff] %v150_v55  ;;  %v318_v5 = vpack.c.bf16 %v219_v1, %v218_v0  ;;  %v480_v24 = vsel %vm415_vm2, %v476_v12, %v479_v13 }
  0x3e   :  { %533 = vst [vmem:[%s807_s4 + $0x18] sm:$0xff] %v473_v2  ;;  %v388_v8 = vrot.slane %v317_v3, 4  ;;  %v389_v9 = vrot.slane %v317_v3, 7 }
  0x3f   :  { %v222_v10 = vld.sshfl [vmem:[#allocation1] sm:$0xff pattern:$0x73625140]  ;;  %v223_v11 = vld.sshfl [vmem:[#allocation1 + $0x8] sm:$0xff pattern:$0x73625140] }
  0x40   :  { %v224_v14 = vld.sshfl [vmem:[#allocation1 + $0x10] sm:$0xff pattern:$0x73625140]  ;;  %v225_v15 = vld.sshfl [vmem:[#allocation1 + $0x18] sm:$0xff pattern:$0x73625140]  ;;  %v319_v16 = vpack.c.bf16 %v223_v11, %v222_v10  ;;  %v483_v21 = vsel %vm417_vm3, %v388_v8, %v389_v9 }
  0x41   :  { %230 = vst [vmem:[#allocation1] ss:$4 sm:$0xff] %v151_v4  ;;  %v390_v18 = vrot.slane %v318_v5, 2  ;;  %v391_v20 = vrot.slane %v318_v5, 5  ;;  %v320_v22 = vpack.c.bf16 %v225_v15, %v224_v14 }
  0x42   :  { %v392_v27 = vrot.slane %v319_v16, 3 }
  0x43   :  { %v486_v26 = vsel %vm421_vm4, %v390_v18, %v391_v20  ;;  %v393_v28 = vrot.slane %v320_v22, 6  ;;  %v394_v29 = vrot.slane %v320_v22, 1 }
  0x44   :  { %v226_v30 = vld.sshfl [vmem:[#allocation1 + $0x20] sm:$0xff pattern:$0x73625140]  ;;  %v227_v31 = vld.sshfl [vmem:[#allocation1 + $0x28] sm:$0xff pattern:$0x73625140]  ;;  %v487_v32 = vsel %vm425_vm5, %v483_v21, %v486_v26  ;;  %v491_v42 = vsel %vm407_vm0, %v319_v16, %v392_v27 }
  0x45   :  { %v228_v33 = vld.sshfl [vmem:[#allocation1 + $0x30] sm:$0xff pattern:$0x73625140]  ;;  %v229_v34 = vld.sshfl [vmem:[#allocation1 + $0x38] sm:$0xff pattern:$0x73625140]  ;;  %v488_v35 = vsel %vm427_vm6, %v480_v24, %v487_v32  ;;  %v321_v36 = vpack.c.bf16 %v227_v31, %v226_v30  ;;  %v494_v43 = vsel %vm411_vm1, %v393_v28, %v394_v29 }
  0x46   :  { %231 = vst [vmem:[#allocation1 + $0x20] ss:$4 sm:$0xff] %v152_v23  ;;  %v322_v37 = vpack.c.bf16 %v229_v34, %v228_v33  ;;  %v495_v51 = vsel %vm415_vm2, %v491_v42, %v494_v43 }
  0x47   :  { %534 = vst [vmem:[%s807_s4 + $0x20] sm:$0xff] %v488_v35  ;;  %v395_v38 = vrot.slane %v321_v36, 4  ;;  %v396_v39 = vrot.slane %v321_v36, 7 }
  0x48   :  { %v232_v40 = vld.sshfl [vmem:[#allocation1] sm:$0xff pattern:$0x73625140]  ;;  %v233_v41 = vld.sshfl [vmem:[#allocation1 + $0x8] sm:$0xff pattern:$0x73625140] }
  0x49   :  { %v234_v44 = vld.sshfl [vmem:[#allocation1 + $0x10] sm:$0xff pattern:$0x73625140]  ;;  %v235_v45 = vld.sshfl [vmem:[#allocation1 + $0x18] sm:$0xff pattern:$0x73625140]  ;;  %v323_v46 = vpack.c.bf16 %v233_v41, %v232_v40  ;;  %v498_v49 = vsel %vm417_vm3, %v395_v38, %v396_v39 }
  0x4a   :  { %240 = vst [vmem:[#allocation1] ss:$4 sm:$0xff] %v153_v25  ;;  %v397_v47 = vrot.slane %v322_v37, 2  ;;  %v398_v48 = vrot.slane %v322_v37, 5  ;;  %v324_v50 = vpack.c.bf16 %v235_v45, %v234_v44 }
  0x4b   :  { %v399_v52 = vrot.slane %v323_v46, 3 }
  0x4c   :  { %v501_v53 = vsel %vm421_vm4, %v397_v47, %v398_v48  ;;  %v400_v54 = vrot.slane %v324_v50, 6  ;;  %v401_v55 = vrot.slane %v324_v50, 1 }
  0x4d   :  { %v502_v56 = vsel %vm425_vm5, %v498_v49, %v501_v53  ;;  %v236_v57 = vld.sshfl [vmem:[#allocation1 + $0x20] sm:$0xff pattern:$0x73625140]  ;;  %v237_v58 = vld.sshfl [vmem:[#allocation1 + $0x28] sm:$0xff pattern:$0x73625140]  ;;  %v506_v61 = vsel %vm407_vm0, %v323_v46, %v399_v52 }
  0x4e   :  { %v503_v59 = vsel %vm427_vm6, %v495_v51, %v502_v56  ;;  %v238_v17 = vld.sshfl [vmem:[#allocation1 + $0x30] sm:$0xff pattern:$0x73625140]  ;;  %v239_v19 = vld.sshfl [vmem:[#allocation1 + $0x38] sm:$0xff pattern:$0x73625140]  ;;  %v325_v25 = vpack.c.bf16 %v237_v58, %v236_v57  ;;  %v509_v62 = vsel %vm411_vm1, %v400_v54, %v401_v55 }
  0x4f   :  { %535 = vst [vmem:[%s807_s4 + $0x28] sm:$0xff] %v503_v59  ;;  %v326_v60 = vpack.c.bf16 %v239_v19, %v238_v17  ;;  %v510_v4 = vsel %vm415_vm2, %v506_v61, %v509_v62 }
  0x50   :  { %v402_v63 = vrot.slane %v325_v25, 4  ;;  %v403_v0 = vrot.slane %v325_v25, 7 }
  0x51   :  { %v404_v1 = vrot.slane %v326_v60, 2  ;;  %v405_v2 = vrot.slane %v326_v60, 5  ;;  %v241_v3 = vld.sshfl [vmem:[#allocation1] sm:$0xff pattern:$0x73625140] }
  0x52   :  { %v513_v5 = vsel %vm417_vm3, %v402_v63, %v403_v0  ;;  %v327_v6 = vpack.c.bf16 %v241_v3, %v241_v3 }
  0x53   :  { %v516_v7 = vsel %vm421_vm4, %v404_v1, %v405_v2 }
  0x54   :  { %v517_v8 = vsel %vm425_vm5, %v513_v5, %v516_v7  ;;  %v406_v9 = vrot.slane %v327_v6, 3 }
  0x55   :  { %v518_v10 = vsel %vm427_vm6, %v510_v4, %v517_v8 }
  0x56   :  { %536 = vst [vmem:[%s807_s4 + $0x30] sm:$0xff] %v518_v10  ;;  %v521_v11 = vsel %vm407_vm0, %v327_v6, %v406_v9 }
  0x57   :  { %538 = vst.msk [vmem:[%s807_s4 + $0x38] sm:$0x1] %vm537_vm7, %v521_v11 }

// kernel: lenet5_forward.7
= control target key start
LH: loop header
LB: loop body
LE: loop exit
PB: predicated region body
PF: predicated region fallthrough
CT: control target
= control target key end

     0   :  { %s751_s12 = smov 0   ;;  %s891_s0 = inlined_call_operand.vmem [shape: bf16[1352,200], index: 0, kind: input, shape index: {}]   ;;  %s892_s1 = inlined_call_operand.vmem [shape: bf16[200,16], index: 1, kind: input, shape index: {}]   ;;  %s893_s2 = inlined_call_operand.vmem [shape: f32[1,16], index: 2, kind: input, shape index: {}]   ;;  %s894_s3 = inlined_call_operand.vmem [shape: bf16[1352,16], index: 3, kind: output, shape index: {}]  }
   0x1 LB: > { %s563_s13 = sadd.s32 4294967295, %s729_s12   ;;  %p567_p0 = scmp.ge.s32.totalorder %s729_s12, 1  ;;  %s729_s12 = sphi %s751_s12, %s13_s12  }
   0x2   : > { %p139_p1 = scmp.lt.s32.totalorder %s729_s12, 14 }
   0x4   : > { %p140_p2 = pnand %p567_p0, %p139_p1 }
   0x5   : > { %s164_s18 = smul.u32 (!%p140_p2), 13, %s563_s13 }
   0x6   : > { %143 = sbr.rel (%p140_p2) target bundleno = 233 (0xe9), region = 32 }
   0x7   : > { %p165_p3 = scmp.lt.s32.totalorder (!%p140_p2), %s164_s18, 168 }
   0xb   : > { %v696_v0 = vld [vmem:[%s892_s1 + $0x38] sm:$0xff]  ;;  %v215_v1 = vld [vmem:[%s892_s1 + $0x60] sm:$0xf]  ;;  %vm377_vm0 = vcmask 1043456   ;;  %v695_v3 = vld [vmem:[%s892_s1 + $0x30] sm:$0xff]  ;;  %s896_s18 = smov (!%p165_p3, %s164_s18), 168 }
   0xc   : > { %v329_v2 = vunpack.c.l.b16 %v215_v1  ;;  %381 = vmatpush.bf16.msra.mxu0 %v696_v0  ;;  %701 = vmatpush.bf16.msra.mxu2 %v696_v0  ;;  %v700_v6 = vld [vmem:[%s892_s1 + $0x58] sm:$0xff]  ;;  %v694_v7 = vld [vmem:[%s892_s1 + $0x28] sm:$0xff]  ;;  %v699_v8 = vld [vmem:[%s892_s1 + $0x50] sm:$0xff]  ;;  %s676_s29 = sshll.u32 %s896_s18, 3  ;;  %vm355_vm1 = vcmask 588800   ;;  %s570_s22 = sshll.u32 %s896_s18, 2 }
   0xd   : > { %v693_v9 = vld [vmem:[%s892_s1 + $0x20] sm:$0xff]  ;;  %v698_v10 = vld [vmem:[%s892_s1 + $0x48] sm:$0xff]  ;;  %v692_v11 = vld [vmem:[%s892_s1 + $0x18] sm:$0xff]  ;;  %s792_s9 = scalar_lea.vmem %s891_s0, %s676_s29  ;;  %s848_s25 = scalar_lea.vmem %s894_s3, %s570_s22  ;;  %vm493_vm2 = vcmask 125952  }
   0xe   : > { %v342_v4 = vpack.c.b16 %v329_v2, %v329_v2  ;;  %v697_v12 = vld [vmem:[%s892_s1 + $0x40] sm:$0xff]  ;;  %v691_v13 = vld [vmem:[%s892_s1 + $0x10] sm:$0xff]  ;;  %v575_v15 = vld [vmem:[%s792_s9 + $0x8] sm:$0xf0] }
   0xf   : > { %v677_v14 = vld [vmem:[%s792_s9 + $0x4] sm:$0xf]  ;;  %v607_v17 = vld [vmem:[%s792_s9 + $0x48] sm:$0xf0]  ;;  %v573_v22 = vld [vmem:[%s792_s9] sm:$0xf] }
  0x10   : > { %v379_v5 = vsel %vm377_vm0, %v342_v4, 0  ;;  %382 = vmatpush.bf16.msra.mxu0 %v695_v3  ;;  %702 = vmatpush.bf16.msra.mxu2 %v695_v3  ;;  %v685_v16 = vld [vmem:[%s792_s9 + $0x44] sm:$0xf]  ;;  %v578_v18 = vor.u32 %v677_v14, %v575_v15  ;;  %v690_v19 = vld [vmem:[%s892_s1 + $0x8] sm:$0xff]  ;;  %v597_v24 = vld [vmem:[%s792_s9 + $0x30] sm:$0xf] }
  0x11   : > { %427 = vmatpush.bf16.msra.mxu1 %v379_v5  ;;  %709 = vmatpush.bf16.msra.mxu3 %v379_v5  ;;  %v610_v20 = vor.u32 %v685_v16, %v607_v17  ;;  %v689_v21 = vld [vmem:[%s892_s1] sm:$0xff]  ;;  %v678_v23 = vld [vmem:[%s792_s9 + $0x4] sm:$0xf0]  ;;  %v684_v25 = vld [vmem:[%s792_s9 + $0x34] sm:$0xf0] }
  0x12   : > { %v574_v26 = vor.u32 %v678_v23, %v573_v22  ;;  %v598_v27 = vor.u32 %v684_v25, %v597_v24  ;;  %v679_v28 = vld [vmem:[%s792_s9 + $0x14] sm:$0xf]  ;;  %v583_v29 = vld [vmem:[%s792_s9 + $0x18] sm:$0xf0]  ;;  %v581_v34 = vld [vmem:[%s792_s9 + $0x10] sm:$0xf] }
  0x13   : > { %v687_v30 = vld [vmem:[%s792_s9 + $0x54] sm:$0xf]  ;;  %v615_v31 = vld [vmem:[%s792_s9 + $0x58] sm:$0xf0]  ;;  %v586_v32 = vor.u32 %v679_v28, %v583_v29  ;;  %v680_v35 = vld [vmem:[%s792_s9 + $0x14] sm:$0xf0] }
  0x14   : > { %383 = vmatpush.bf16.msra.mxu0 %v694_v7  ;;  %703 = vmatpush.bf16.msra.mxu2 %v694_v7  ;;  %v618_v33 = vor.u32 %v687_v30, %v615_v31  ;;  %v605_v36 = vld [vmem:[%s792_s9 + $0x40] sm:$0xf]  ;;  %v686_v37 = vld [vmem:[%s792_s9 + $0x44] sm:$0xf0]  ;;  %v582_v38 = vor.u32 %v680_v35, %v581_v34  ;;  %v681_v41 = vld [vmem:[%s792_s9 + $0x24] sm:$0xf] }
  0x15   : > { %428 = vmatpush.bf16.msra.mxu1 %v700_v6  ;;  %710 = vmatpush.bf16.msra.mxu3 %v700_v6  ;;  %v606_v39 = vor.u32 %v686_v37, %v605_v36  ;;  %v190_v40 = vld [vmem:[%s792_s9 + $0x60] sm:$0xff]  ;;  %v591_v42 = vld [vmem:[%s792_s9 + $0x28] sm:$0xf0]  ;;  %v682_v47 = vld [vmem:[%s792_s9 + $0x24] sm:$0xf0] }
  0x16   : > { %v258_v43 = vunpack.c.h.b16 %v190_v40  ;;  %v594_v44 = vor.u32 %v681_v41, %v591_v42  ;;  %v589_v46 = vld [vmem:[%s792_s9 + $0x20] sm:$0xf]  ;;  %v613_v48 = vld [vmem:[%s792_s9 + $0x50] sm:$0xf]  ;;  %v688_v49 = vld [vmem:[%s792_s9 + $0x54] sm:$0xf0]  ;;  %v257_v55 = vunpack.c.l.b16 %v190_v40 }
  0x17   : > { %v590_v50 = vor.u32 %v682_v47, %v589_v46  ;;  %v614_v51 = vor.u32 %v688_v49, %v613_v48  ;;  %v683_v52 = vld [vmem:[%s792_s9 + $0x34] sm:$0xf]  ;;  %v599_v53 = vld [vmem:[%s792_s9 + $0x38] sm:$0xf0]  ;;  %v841_v58 = vld [vmem:[%s893_s2] ss:$0 sm:$0xff] }
  0x18   : > { %384 = vmatpush.bf16.msra.mxu0 %v693_v9  ;;  %704 = vmatpush.bf16.msra.mxu2 %v693_v9  ;;  %v272_v45 = vpack.c.b16 %v258_v43, %v258_v43  ;;  %v602_v54 = vor.u32 %v683_v52, %v599_v53  ;;  %v271_v56 = vpack.c.b16 %v257_v55, %v257_v55 }
  0x19   : > { %429 = vmatpush.bf16.msra.mxu1 %v699_v8  ;;  %711 = vmatpush.bf16.msra.mxu3 %v699_v8 }
  0x1c   : > { %385 = vmatpush.bf16.msra.mxu0 %v692_v11  ;;  %705 = vmatpush.bf16.msra.mxu2 %v692_v11 }
  0x1d   : > { %430 = vmatpush.bf16.msra.mxu1 %v698_v10  ;;  %712 = vmatpush.bf16.msra.mxu3 %v698_v10 }
  0x20   : > { %386 = vmatpush.bf16.msra.mxu0 %v691_v13  ;;  %706 = vmatpush.bf16.msra.mxu2 %v691_v13 }
  0x21   : > { %431 = vmatpush.bf16.msra.mxu1 %v697_v12  ;;  %713 = vmatpush.bf16.msra.mxu3 %v697_v12 }
  0x24   : > { %667 = vmatmul.msk.bf16.vlgmr.msra.gmra.mxu1 %vm355_vm1, %v578_v18  ;;  %387 = vmatpush.bf16.msra.mxu0 %v690_v19 }
  0x25   : > { %671 = vmatmul.msk.bf16.vlgmr.msra.gmra.mxu3 %vm355_vm1, %v610_v20  ;;  %707 = vmatpush.bf16.msra.mxu2 %v690_v19 }
  0x28   : > { %388 = vmatpush.bf16.msra.mxu0 %v689_v21 }
  0x29   : > { %708 = vmatpush.bf16.msra.mxu2 %v689_v21 }
  0x2b   : > { %389 = vmatmul.bf16.vlgmr.msra.gmra.mxu0 %v574_v26 }
  0x2c   : > { %404 = vmatmul.bf16.vlgmr.msra.gmra.mxu2 %v598_v27 }
  0x34   : > { %668 = vmatmul.msk.bf16.gmra.mxu1 %vm355_vm1, %v586_v32 }
  0x35   : > { %672 = vmatmul.msk.bf16.gmra.mxu3 %vm355_vm1, %v618_v33 }
  0x3b   : > { %394 = vmatmul.bf16.gmra.mxu0 %v582_v38 }
  0x3c   : > { %409 = vmatmul.bf16.gmra.mxu2 %v606_v39 }
  0x44   : > { %669 = vmatmul.msk.bf16.gmra.mxu1 %vm355_vm1, %v594_v44 }
  0x45   : > { %673 = vmatmul.msk.bf16.gmra.mxu3 %vm355_vm1, %v272_v45 }
  0x4b   : > { %399 = vmatmul.bf16.gmra.mxu0 %v590_v50 }
  0x4c   : > { %414 = vmatmul.bf16.gmra.mxu2 %v614_v51 }
  0x54   : > { %670 = vmatmul.msk.bf16.gmra.mxu1 %vm355_vm1, %v602_v54 }
  0x5c   : > { %419 = vmatmul.bf16.gmra.mxu2 %v271_v56 }
  0xa1   : > { %v433_v57 = vpop.f32.mrf.mxu1 }
  0xa8   : > { %v453_v59 = vpop.f32.mrf.mxu3  ;;  %v390_v61 = vpop.f32.mrf.mxu0 }
  0xa9   : > { %v435_v60 = vpop.f32.mrf.mxu1  ;;  %v391_v62 = vadd.f32 %v841_v58, %v390_v61 }
  0xab   : > { %v434_v63 = vadd.f32 %v433_v57, %v391_v62 }
  0xad   : > { %v467_v0 = vmax.f32 %v434_v63, 0.0 }
  0xaf   : > { %v480_v1 = vpack.c.bf16 %v467_v0, %v467_v0  ;;  %v405_v2 = vpop.f32.mrf.mxu2 }
  0xb0   : > { %v455_v3 = vpop.f32.mrf.mxu3  ;;  %v392_v5 = vpop.f32.mrf.mxu0  ;;  %v406_v41 = vadd.f32 %v841_v58, %v405_v2 }
  0xb1   : > { %v438_v4 = vpop.f32.mrf.mxu1  ;;  %494 = vst.msk [vmem:[%s848_s25] sm:$0xf] %vm493_vm2, %v480_v1  ;;  %v393_v6 = vadd.f32 %v841_v58, %v392_v5 }
  0xb3   : > { %v436_v7 = vadd.f32 %v435_v60, %v393_v6 }
  0xb5   : > { %v468_v8 = vmax.f32 %v436_v7, 0.0 }
  0xb7   : > { %v481_v9 = vpack.c.bf16 %v468_v8, %v468_v8  ;;  %v407_v10 = vpop.f32.mrf.mxu2 }
  0xb8   : > { %v458_v11 = vpop.f32.mrf.mxu3  ;;  %v395_v13 = vpop.f32.mrf.mxu0  ;;  %v408_v57 = vadd.f32 %v841_v58, %v407_v10 }
  0xb9   : > { %v440_v12 = vpop.f32.mrf.mxu1  ;;  %495 = vst.msk [vmem:[%s848_s25 + $0x4] sm:$0xf] %vm493_vm2, %v481_v9  ;;  %v396_v14 = vadd.f32 %v841_v58, %v395_v13 }
  0xbb   : > { %v439_v15 = vadd.f32 %v438_v4, %v396_v14 }
  0xbd   : > { %v469_v16 = vmax.f32 %v439_v15, 0.0 }
  0xbf   : > { %v482_v17 = vpack.c.bf16 %v469_v16, %v469_v16  ;;  %v410_v18 = vpop.f32.mrf.mxu2 }
  0xc0   : > { %v460_v19 = vpop.f32.mrf.mxu3  ;;  %v411_v20 = vadd.f32 %v841_v58, %v410_v18  ;;  %v397_v22 = vpop.f32.mrf.mxu0 }
  0xc1   : > { %v443_v21 = vpop.f32.mrf.mxu1  ;;  %496 = vst.msk [vmem:[%s848_s25 + $0x8] sm:$0xf] %vm493_vm2, %v482_v17  ;;  %v398_v23 = vadd.f32 %v841_v58, %v397_v22 }
  0xc2   : > { %v454_v24 = vadd.f32 %v453_v59, %v411_v20 }
  0xc3   : > { %v441_v25 = vadd.f32 %v440_v12, %v398_v23 }
  0xc4   : > { %v475_v26 = vmax.f32 %v454_v24, 0.0 }
  0xc5   : > { %v470_v27 = vmax.f32 %v441_v25, 0.0 }
  0xc6   : > { %v488_v28 = vpack.c.bf16 %v475_v26, %v475_v26 }
  0xc7   : > { %v483_v29 = vpack.c.bf16 %v470_v27, %v470_v27  ;;  %v412_v30 = vpop.f32.mrf.mxu2 }
  0xc8   : > { %v463_v31 = vpop.f32.mrf.mxu3  ;;  %502 = vst.msk [vmem:[%s848_s25 + $0x20] sm:$0xf] %vm493_vm2, %v488_v28  ;;  %v413_v32 = vadd.f32 %v841_v58, %v412_v30  ;;  %v400_v34 = vpop.f32.mrf.mxu0 }
  0xc9   : > { %v445_v33 = vpop.f32.mrf.mxu1  ;;  %497 = vst.msk [vmem:[%s848_s25 + $0xc] sm:$0xf] %vm493_vm2, %v483_v29  ;;  %v401_v35 = vadd.f32 %v841_v58, %v400_v34 }
  0xca   : > { %v456_v36 = vadd.f32 %v455_v3, %v413_v32 }
  0xcb   : > { %v444_v37 = vadd.f32 %v443_v21, %v401_v35 }
  0xcc   : > { %v476_v38 = vmax.f32 %v456_v36, 0.0 }
  0xcd   : > { %v471_v39 = vmax.f32 %v444_v37, 0.0 }
  0xce   : > { %v489_v40 = vpack.c.bf16 %v476_v38, %v476_v38 }
  0xcf   : > { %v484_v42 = vpack.c.bf16 %v471_v39, %v471_v39  ;;  %v415_v43 = vpop.f32.mrf.mxu2 }
  0xd0   : > { %v465_v44 = vpop.f32.mrf.mxu3  ;;  %503 = vst.msk [vmem:[%s848_s25 + $0x24] sm:$0xf] %vm493_vm2, %v489_v40  ;;  %v416_v45 = vadd.f32 %v841_v58, %v415_v43  ;;  %v402_v47 = vpop.f32.mrf.mxu0 }
  0xd1   : > { %v448_v46 = vpop.f32.mrf.mxu1  ;;  %498 = vst.msk [vmem:[%s848_s25 + $0x10] sm:$0xf] %vm493_vm2, %v484_v42  ;;  %v403_v49 = vadd.f32 %v841_v58, %v402_v47 }
  0xd2   : > { %v449_v48 = vadd.f32 %v448_v46, %v406_v41  ;;  %v459_v50 = vadd.f32 %v458_v11, %v416_v45 }
  0xd3   : > { %v446_v52 = vadd.f32 %v445_v33, %v403_v49 }
  0xd4   : > { %v473_v51 = vmax.f32 %v449_v48, 0.0  ;;  %v477_v53 = vmax.f32 %v459_v50, 0.0 }
  0xd5   : > { %v472_v55 = vmax.f32 %v446_v52, 0.0 }
  0xd6   : > { %v486_v54 = vpack.c.bf16 %v473_v51, %v473_v51  ;;  %v490_v56 = vpack.c.bf16 %v477_v53, %v477_v53 }
  0xd7   : > { %v485_v59 = vpack.c.bf16 %v472_v55, %v472_v55  ;;  %v417_v60 = vpop.f32.mrf.mxu2 }
  0xd8   : > { %500 = vst.msk [vmem:[%s848_s25 + $0x18] sm:$0xf] %vm493_vm2, %v486_v54  ;;  %v418_v61 = vadd.f32 %v841_v58, %v417_v60 }
  0xd9   : > { %504 = vst.msk [vmem:[%s848_s25 + $0x28] sm:$0xf] %vm493_vm2, %v490_v56  ;;  %v450_v62 = vpop.f32.mrf.mxu1 }
  0xda   : > { %499 = vst.msk [vmem:[%s848_s25 + $0x14] sm:$0xf] %vm493_vm2, %v485_v59  ;;  %v451_v63 = vadd.f32 %v450_v62, %v408_v57  ;;  %v461_v0 = vadd.f32 %v460_v19, %v418_v61 }
  0xdc   : > { %v474_v1 = vmax.f32 %v451_v63, 0.0  ;;  %v478_v2 = vmax.f32 %v461_v0, 0.0 }
  0xde   : > { %v487_v3 = vpack.c.bf16 %v474_v1, %v474_v1  ;;  %v491_v4 = vpack.c.bf16 %v478_v2, %v478_v2 }
  0xdf   : > { %v420_v5 = vpop.f32.mrf.mxu2 }
  0xe0   : > { %501 = vst.msk [vmem:[%s848_s25 + $0x1c] sm:$0xf] %vm493_vm2, %v487_v3  ;;  %v421_v6 = vadd.f32 %v841_v58, %v420_v5 }
  0xe1   : > { %505 = vst.msk [vmem:[%s848_s25 + $0x2c] sm:$0xf] %vm493_vm2, %v491_v4 }
  0xe2   : > { %v464_v7 = vadd.f32 %v463_v31, %v421_v6 }
  0xe4   : > { %v479_v8 = vmax.f32 %v464_v7, 0.0 }
  0xe6   : > { %v492_v9 = vpack.c.bf16 %v479_v8, %v479_v8 }
  0xe7   : > { %v422_v10 = vpop.f32.mrf.mxu2 }
  0xe8   : > { %506 = vst.msk [vmem:[%s848_s25 + $0x30] sm:$0xf] %vm493_vm2, %v492_v9 }
  0xe9 PF: > { %s13_s12 = sadd.s32 1, %s729_s12  }
  0xea   : > { %p10_p4 = scmp.ge.s32.totalorder %s13_s12, 15  }
  0xec   :  { %12 = sbr.rel (!%p10_p4) target bundleno = 1 (0x1), region = 62 }

// kernel: lenet5_forward.8
= control target key start
LH: loop header
LB: loop body
LE: loop exit
PB: predicated region body
PF: predicated region fallthrough
CT: control target
= control target key end

     0   :  { %vm169_vm0 = vcmask 1040384   ;;  %vm173_vm1 = vcmask 1042434   ;;  %vm177_vm2 = vcmask 1041408   ;;  %vm179_vm3 = vcmask 1044484   ;;  %s328_s0 = inlined_call_operand.vmem [shape: bf16[2,2704], index: 0, kind: input, shape index: {}]   ;;  %s329_s1 = inlined_call_operand.vmem [shape: bf16[2,2704], index: 1, kind: input, shape index: {}]   ;;  %s330_s2 = inlined_call_operand.vmem [shape: bf16[2,2704], index: 2, kind: input, shape index: {}]   ;;  %s331_s3 = inlined_call_operand.vmem [shape: bf16[2,2704], index: 3, kind: input, shape index: {}]   ;;  %s332_s4 = inlined_call_operand.vmem [shape: bf16[2,2704], index: 4, kind: output, shape index: {}]  }
   0x1   :  { %v17_v0 = vld [vmem:[%s328_s0] sm:$0xff]  ;;  %v18_v7 = vld [vmem:[%s328_s0 + $0x8] sm:$0xff]  ;;  %v19_v31 = vld [vmem:[%s328_s0 + $0x10] sm:$0x3f]  ;;  %vm183_vm4 = vcmask 1046534   ;;  %vm187_vm5 = vcmask 1045508  }
   0x2   :  { %v26_v1 = vld [vmem:[%s329_s1] sm:$0xff]  ;;  %v20_v2 = vunpack.c.l.bf16 %v17_v0  ;;  %v27_v8 = vld [vmem:[%s329_s1 + $0x8] sm:$0xff]  ;;  %v22_v13 = vunpack.c.l.bf16 %v18_v7  ;;  %v21_v18 = vunpack.c.h.bf16 %v17_v0  ;;  %v23_v27 = vunpack.c.h.bf16 %v18_v7  ;;  %v28_v33 = vld [vmem:[%s329_s1 + $0x10] sm:$0x3f] }
   0x3   :  { %v29_v3 = vunpack.c.l.bf16 %v26_v1  ;;  %v35_v4 = vld [vmem:[%s330_s2] sm:$0xff]  ;;  %v36_v10 = vld [vmem:[%s330_s2 + $0x8] sm:$0xff]  ;;  %v31_v14 = vunpack.c.l.bf16 %v27_v8  ;;  %v30_v19 = vunpack.c.h.bf16 %v26_v1  ;;  %v32_v28 = vunpack.c.h.bf16 %v27_v8  ;;  %v37_v34 = vld [vmem:[%s330_s2 + $0x10] sm:$0x3f] }
   0x4   :  { %v38_v5 = vunpack.c.l.bf16 %v35_v4  ;;  %v44_v6 = vld [vmem:[%s331_s3] sm:$0xff]  ;;  %v45_v11 = vld [vmem:[%s331_s3 + $0x8] sm:$0xff]  ;;  %v40_v16 = vunpack.c.l.bf16 %v36_v10  ;;  %v39_v21 = vunpack.c.h.bf16 %v35_v4  ;;  %v41_v29 = vunpack.c.h.bf16 %v36_v10  ;;  %v46_v35 = vld [vmem:[%s331_s3 + $0x10] sm:$0x3f] }
   0x5   :  { %v47_v9 = vunpack.c.l.bf16 %v44_v6  ;;  %v53_v12 = vmax.f32 %v20_v2, %v29_v3  ;;  %v49_v17 = vunpack.c.l.bf16 %v45_v11  ;;  %v48_v22 = vunpack.c.h.bf16 %v44_v6 }
   0x6   :  { %v54_v23 = vmax.f32 %v21_v18, %v30_v19  ;;  %v55_v24 = vmax.f32 %v22_v13, %v31_v14  ;;  %v50_v30 = vunpack.c.h.bf16 %v45_v11  ;;  %v56_v37 = vmax.f32 %v23_v27, %v32_v28 }
   0x7   :  { %v59_v15 = vmax.f32 %v38_v5, %v47_v9  ;;  %v61_v25 = vmax.f32 %v40_v16, %v49_v17  ;;  %v60_v26 = vmax.f32 %v39_v21, %v48_v22  ;;  %v24_v39 = vunpack.c.l.bf16 %v19_v31 }
   0x8   :  { %v62_v38 = vmax.f32 %v41_v29, %v50_v30  ;;  %v33_v40 = vunpack.c.l.bf16 %v28_v33  ;;  %v42_v41 = vunpack.c.l.bf16 %v37_v34  ;;  %v51_v42 = vunpack.c.l.bf16 %v46_v35 }
   0x9   :  { %v65_v20 = vmax.f32 %v53_v12, %v59_v15  ;;  %v66_v32 = vmax.f32 %v54_v23, %v60_v26  ;;  %v67_v36 = vmax.f32 %v55_v24, %v61_v25  ;;  %v25_v48 = vunpack.c.h.bf16 %v19_v31 }
   0xa   :  { %v34_v49 = vunpack.c.h.bf16 %v28_v33  ;;  %v43_v51 = vunpack.c.h.bf16 %v37_v34  ;;  %v52_v52 = vunpack.c.h.bf16 %v46_v35  ;;  %v68_v53 = vmax.f32 %v56_v37, %v62_v38 }
   0xb   :  { %77 = vst [vmem:[#allocation1] ss:$4 sm:$0xff] %v65_v20  ;;  %v57_v55 = vmax.f32 %v24_v39, %v33_v40  ;;  %v63_v56 = vmax.f32 %v42_v41, %v51_v42  ;;  %vm189_vm6 = vcmask 1043456   ;;  %vm225_vm7 = vcmask 1041409  }
   0xc   :  { %79 = vst [vmem:[#allocation1 + $0x20] ss:$4 sm:$0xff] %v66_v32  ;;  %v58_v0 = vmax.f32 %v25_v48, %v34_v49  ;;  %v64_v4 = vmax.f32 %v43_v51, %v52_v52  ;;  %vm226_vm8 = vmor %vm225_vm7, %vm169_vm0  ;;  %vm211_vm9 = vcmask 1043459   ;;  %vm230_vm13 = vcmask 128005  }
   0xd   :  { %v69_v5 = vmax.f32 %v57_v55, %v63_v56  ;;  %vm227_vm10 = vmor %vm173_vm1, %vm226_vm8  ;;  %vm215_vm14 = vcmask 1044483   ;;  %vm218_vm15 = vcmask 1042432  }
   0xe   :  { %v70_v18 = vmax.f32 %v58_v0, %v64_v4  ;;  %vm228_vm11 = vmor %vm211_vm9, %vm227_vm10 }
   0xf   :  { %vm229_vm12 = vmor %vm179_vm3, %vm228_vm11 }
  0x12   :  { %v80_v43 = vld.sshfl [vmem:[#allocation1] sm:$0xff pattern:$0x73625140]  ;;  %v81_v44 = vld.sshfl [vmem:[#allocation1 + $0x8] sm:$0xff pattern:$0x73625140] }
  0x13   :  { %v82_v45 = vld.sshfl [vmem:[#allocation1 + $0x10] sm:$0xff pattern:$0x73625140]  ;;  %v83_v46 = vld.sshfl [vmem:[#allocation1 + $0x18] sm:$0xff pattern:$0x73625140]  ;;  %v128_v47 = vpack.c.bf16 %v81_v44, %v80_v43 }
  0x14   :  { %88 = vst [vmem:[#allocation1] ss:$4 sm:$0xff] %v67_v36  ;;  %v129_v50 = vpack.c.bf16 %v83_v46, %v82_v45  ;;  %v84_v59 = vld.sshfl [vmem:[#allocation1 + $0x20] sm:$0xff pattern:$0x73625140] }
  0x15   :  { %v150_v54 = vrot.slane %v128_v47, 3  ;;  %v85_v60 = vld.sshfl [vmem:[#allocation1 + $0x28] sm:$0xff pattern:$0x73625140] }
  0x16   :  { %v151_v57 = vrot.slane %v129_v50, 6  ;;  %v152_v58 = vrot.slane %v129_v50, 1  ;;  %v86_v61 = vld.sshfl [vmem:[#allocation1 + $0x30] sm:$0xff pattern:$0x73625140]  ;;  %v130_v63 = vpack.c.bf16 %v85_v60, %v84_v59 }
  0x17   :  { %v87_v62 = vld.sshfl [vmem:[#allocation1 + $0x38] sm:$0xff pattern:$0x73625140]  ;;  %v172_v2 = vsel %vm169_vm0, %v128_v47, %v150_v54 }
  0x18   :  { %89 = vst [vmem:[#allocation1 + $0x20] ss:$4 sm:$0xff] %v68_v53  ;;  %v131_v1 = vpack.c.bf16 %v87_v62, %v86_v61  ;;  %v176_v3 = vsel %vm173_vm1, %v151_v57, %v152_v58  ;;  %v153_v6 = vrot.slane %v130_v63, 4  ;;  %v154_v7 = vrot.slane %v130_v63, 7 }
  0x19   :  { %v178_v11 = vsel %vm177_vm2, %v172_v2, %v176_v3 }
  0x1a   :  { %v155_v8 = vrot.slane %v131_v1, 2  ;;  %v156_v9 = vrot.slane %v131_v1, 5  ;;  %v182_v12 = vsel %vm179_vm3, %v153_v6, %v154_v7 }
  0x1b   :  { %v90_v10 = vld.sshfl [vmem:[#allocation1] sm:$0xff pattern:$0x73625140]  ;;  %v91_v13 = vld.sshfl [vmem:[#allocation1 + $0x8] sm:$0xff pattern:$0x73625140] }
  0x1c   :  { %v92_v14 = vld.sshfl [vmem:[#allocation1 + $0x10] sm:$0xff pattern:$0x73625140]  ;;  %v186_v15 = vsel %vm183_vm4, %v155_v8, %v156_v9  ;;  %v93_v16 = vld.sshfl [vmem:[#allocation1 + $0x18] sm:$0xff pattern:$0x73625140]  ;;  %v132_v17 = vpack.c.bf16 %v91_v13, %v90_v10 }
  0x1d   :  { %v188_v19 = vsel %vm187_vm5, %v182_v12, %v186_v15  ;;  %98 = vst [vmem:[#allocation1] ss:$4 sm:$0xff] %v69_v5  ;;  %v133_v20 = vpack.c.bf16 %v93_v16, %v92_v14 }
  0x1e   :  { %v190_v21 = vsel %vm189_vm6, %v178_v11, %v188_v19  ;;  %v157_v22 = vrot.slane %v132_v17, 3 }
  0x1f   :  { %223 = vst [vmem:[%s332_s4] sm:$0xff] %v190_v21  ;;  %v94_v23 = vld.sshfl [vmem:[#allocation1 + $0x20] sm:$0xff pattern:$0x73625140]  ;;  %v95_v24 = vld.sshfl [vmem:[#allocation1 + $0x28] sm:$0xff pattern:$0x73625140] }
  0x20   :  { %v96_v25 = vld.sshfl [vmem:[#allocation1 + $0x30] sm:$0xff pattern:$0x73625140]  ;;  %v97_v26 = vld.sshfl [vmem:[#allocation1 + $0x38] sm:$0xff pattern:$0x73625140]  ;;  %v134_v27 = vpack.c.bf16 %v95_v24, %v94_v23  ;;  %v193_v31 = vsel %vm169_vm0, %v132_v17, %v157_v22 }
  0x21   :  { %99 = vst [vmem:[#allocation1 + $0x20] ss:$4 sm:$0xff] %v70_v18  ;;  %v135_v28 = vpack.c.bf16 %v97_v26, %v96_v25  ;;  %v158_v29 = vrot.slane %v133_v20, 6  ;;  %v159_v30 = vrot.slane %v133_v20, 1 }
  0x22   :  { %v160_v32 = vrot.slane %v134_v27, 4  ;;  %v161_v33 = vrot.slane %v134_v27, 7 }
  0x23   :  { %v162_v34 = vrot.slane %v135_v28, 2  ;;  %v163_v35 = vrot.slane %v135_v28, 5  ;;  %v196_v36 = vsel %vm173_vm1, %v158_v29, %v159_v30  ;;  %vm231_vm1 = vmor %vm230_vm13, %vm229_vm12 }
  0x24   :  { %v197_v37 = vsel %vm177_vm2, %v193_v31, %v196_v36  ;;  %v200_v38 = vsel %vm179_vm3, %v160_v32, %v161_v33  ;;  %v100_v39 = vld.sshfl [vmem:[#allocation1] sm:$0xff pattern:$0x73625140]  ;;  %v101_v40 = vld.sshfl [vmem:[#allocation1 + $0x8] sm:$0xff pattern:$0x73625140] }
  0x25   :  { %v203_v41 = vsel %vm183_vm4, %v162_v34, %v163_v35  ;;  %v102_v42 = vld.sshfl [vmem:[#allocation1 + $0x10] sm:$0xff pattern:$0x73625140]  ;;  %v103_v43 = vld.sshfl [vmem:[#allocation1 + $0x18] sm:$0xff pattern:$0x73625140]  ;;  %v136_v44 = vpack.c.bf16 %v101_v40, %v100_v39 }
  0x26   :  { %v204_v45 = vsel %vm187_vm5, %v200_v38, %v203_v41  ;;  %v137_v46 = vpack.c.bf16 %v103_v43, %v102_v42 }
  0x27   :  { %v205_v47 = vsel %vm189_vm6, %v197_v37, %v204_v45  ;;  %v164_v48 = vrot.slane %v136_v44, 3 }
  0x28   :  { %224 = vst [vmem:[%s332_s4 + $0x8] sm:$0xff] %v205_v47  ;;  %v104_v49 = vld.sshfl [vmem:[#allocation1 + $0x20] sm:$0xff pattern:$0x73625140]  ;;  %v165_v51 = vrot.slane %v137_v46, 6  ;;  %v166_v53 = vrot.slane %v137_v46, 1 }
  0x29   :  { %v105_v50 = vld.sshfl [vmem:[#allocation1 + $0x28] sm:$0xff pattern:$0x73625140]  ;;  %v208_v54 = vsel %vm169_vm0, %v136_v44, %v164_v48 }
  0x2a   :  { %v138_v52 = vpack.c.bf16 %v105_v50, %v104_v49  ;;  %v210_v57 = vsel %vm177_vm2, %v208_v54, %v165_v51 }
  0x2c   :  { %v167_v55 = vrot.slane %v138_v52, 4  ;;  %v168_v56 = vrot.slane %v138_v52, 7 }
  0x2e   :  { %v214_v58 = vsel %vm211_vm9, %v166_v53, %v167_v55 }
  0x2f   :  { %v217_v59 = vsel %vm215_vm14, %v214_v58, %v168_v56 }
  0x30   :  { %v219_v60 = vsel %vm218_vm15, %v210_v57, %v217_v59 }
  0x31   :  { %232 = vst.msk [vmem:[%s332_s4 + $0x10] sm:$0x3f] %vm231_vm1, %v219_v60 }

// kernel: lenet5_forward.9
= control target key start
LH: loop header
LB: loop body
LE: loop exit
PB: predicated region body
PF: predicated region fallthrough
CT: control target
= control target key end

     0   :  { %vm1435_vm0 = vcmask 130048   ;;  %vm1794_vm1 = vcmask 1043456   ;;  %vm1865_vm2 = vcmask 1041408   ;;  %vm1790_vm3 = vcmask 982016   ;;  %s3432_s1 = inlined_call_operand.vmem [shape: bf16[2704,120], index: 1, kind: input, shape index: {}]   ;;  %s3433_s0 = inlined_call_operand.vmem [shape: bf16[2,2704], index: 0, kind: input, shape index: {}]   ;;  %s3434_s2 = inlined_call_operand.vmem [shape: f32[1,120], index: 2, kind: input, shape index: {}]   ;;  %s3435_s4 = inlined_call_operand.vmem [shape: f32[1,84], index: 4, kind: input, shape index: {}]   ;;  %s3436_s3 = inlined_call_operand.vmem [shape: bf16[120,84], index: 3, kind: input, shape index: {}]   ;;  %s3437_s5 = inlined_call_operand.vmem [shape: bf16[84,128], index: 5, kind: input, shape index: {}]   ;;  %s3438_s6 = inlined_call_operand.vmem [shape: f32[1,128], index: 6, kind: input, shape index: {}]   ;;  %s3439_s7 = inlined_call_operand.vmem [shape: f32[2,128], index: 7, kind: output, shape index: {}]  }
   0x1   :  { %v2621_v0 = vld [vmem:[%s3432_s1 + $0x38] sm:$0xff]  ;;  %v2620_v4 = vld [vmem:[%s3432_s1 + $0x30] sm:$0xff]  ;;  %v2619_v8 = vld [vmem:[%s3432_s1 + $0x28] sm:$0xff]  ;;  %vm1861_vm4 = vcmask 687104  }
   0x2   :  { %v2637_v1 = vld [vmem:[%s3432_s1 + $0xb8] sm:$0xff]  ;;  %1438 = vmatpush.bf16.msra.mxu0 %v2621_v0  ;;  %v2636_v5 = vld [vmem:[%s3432_s1 + $0xb0] sm:$0xff]  ;;  %v2635_v9 = vld [vmem:[%s3432_s1 + $0xa8] sm:$0xff] }
   0x3   :  { %v2629_v2 = vld [vmem:[%s3432_s1 + $0x78] sm:$0xff]  ;;  %1464 = vmatpush.bf16.msra.mxu2 %v2637_v1  ;;  %v2628_v6 = vld [vmem:[%s3432_s1 + $0x70] sm:$0xff]  ;;  %v2627_v10 = vld [vmem:[%s3432_s1 + $0x68] sm:$0xff] }
   0x4   :  { %v2645_v3 = vld [vmem:[%s3432_s1 + $0xf8] sm:$0xff]  ;;  %1451 = vmatpush.bf16.msra.mxu1 %v2629_v2  ;;  %v2644_v7 = vld [vmem:[%s3432_s1 + $0xf0] sm:$0xff]  ;;  %v2643_v11 = vld [vmem:[%s3432_s1 + $0xe8] sm:$0xff] }
   0x5   :  { %1477 = vmatpush.bf16.msra.mxu3 %v2645_v3  ;;  %v2618_v12 = vld [vmem:[%s3432_s1 + $0x20] sm:$0xff]  ;;  %v2617_v16 = vld [vmem:[%s3432_s1 + $0x18] sm:$0xff]  ;;  %v2616_v21 = vld [vmem:[%s3432_s1 + $0x10] sm:$0xff] }
   0x6   :  { %1439 = vmatpush.bf16.msra.mxu0 %v2620_v4  ;;  %v2634_v13 = vld [vmem:[%s3432_s1 + $0xa0] sm:$0xff]  ;;  %v2633_v17 = vld [vmem:[%s3432_s1 + $0x98] sm:$0xff]  ;;  %v2632_v22 = vld [vmem:[%s3432_s1 + $0x90] sm:$0xff] }
   0x7   :  { %1465 = vmatpush.bf16.msra.mxu2 %v2636_v5  ;;  %v2626_v14 = vld [vmem:[%s3432_s1 + $0x60] sm:$0xff]  ;;  %v2625_v18 = vld [vmem:[%s3432_s1 + $0x58] sm:$0xff]  ;;  %v2624_v23 = vld [vmem:[%s3432_s1 + $0x50] sm:$0xff] }
   0x8   :  { %1452 = vmatpush.bf16.msra.mxu1 %v2628_v6  ;;  %v2642_v15 = vld [vmem:[%s3432_s1 + $0xe0] sm:$0xff]  ;;  %v2641_v19 = vld [vmem:[%s3432_s1 + $0xd8] sm:$0xff]  ;;  %v2640_v24 = vld [vmem:[%s3432_s1 + $0xd0] sm:$0xff] }
   0x9   :  { %1478 = vmatpush.bf16.msra.mxu3 %v2644_v7  ;;  %v27_v20 = vld [vmem:[%s3433_s0] sm:$0xff]  ;;  %v2615_v25 = vld [vmem:[%s3432_s1 + $0x8] sm:$0xff]  ;;  %v2653_v31 = vld [vmem:[%s3432_s1 + $0x138] sm:$0xff] }
   0xa   :  { %1440 = vmatpush.bf16.msra.mxu0 %v2619_v8  ;;  %373 = vst [vmem:[#allocation1] ss:$9 sm:$0xff] %v27_v20  ;;  %v2631_v26 = vld [vmem:[%s3432_s1 + $0x88] sm:$0xff]  ;;  %v2614_v29 = vld [vmem:[%s3432_s1] sm:$0xff]  ;;  %v2669_v32 = vld [vmem:[%s3432_s1 + $0x1b8] sm:$0xff] }
   0xb   :  { %1466 = vmatpush.bf16.msra.mxu2 %v2635_v9  ;;  %v2623_v27 = vld [vmem:[%s3432_s1 + $0x48] sm:$0xff]  ;;  %v2630_v30 = vld [vmem:[%s3432_s1 + $0x80] sm:$0xff]  ;;  %v2661_v35 = vld [vmem:[%s3432_s1 + $0x178] sm:$0xff] }
   0xc   :  { %1453 = vmatpush.bf16.msra.mxu1 %v2627_v10  ;;  %v2639_v28 = vld [vmem:[%s3432_s1 + $0xc8] sm:$0xff]  ;;  %v2622_v33 = vld [vmem:[%s3432_s1 + $0x40] sm:$0xff]  ;;  %v2677_v36 = vld [vmem:[%s3432_s1 + $0x1f8] sm:$0xff] }
   0xd   :  { %1479 = vmatpush.bf16.msra.mxu3 %v2643_v11  ;;  %v2638_v34 = vld [vmem:[%s3432_s1 + $0xc0] sm:$0xff]  ;;  %v2652_v37 = vld [vmem:[%s3432_s1 + $0x130] sm:$0xff]  ;;  %v28_v45 = vld [vmem:[%s3433_s0 + $0x8] sm:$0xff] }
   0xe   :  { %1441 = vmatpush.bf16.msra.mxu0 %v2618_v12  ;;  %v2668_v38 = vld [vmem:[%s3432_s1 + $0x1b0] sm:$0xff]  ;;  %v2651_v46 = vld [vmem:[%s3432_s1 + $0x128] sm:$0xff]  ;;  %v2650_v54 = vld [vmem:[%s3432_s1 + $0x120] sm:$0xff] }
   0xf   :  { %1467 = vmatpush.bf16.msra.mxu2 %v2634_v13  ;;  %v2660_v41 = vld [vmem:[%s3432_s1 + $0x170] sm:$0xff]  ;;  %v2667_v47 = vld [vmem:[%s3432_s1 + $0x1a8] sm:$0xff]  ;;  %v2666_v55 = vld [vmem:[%s3432_s1 + $0x1a0] sm:$0xff] }
  0x10   :  { %1454 = vmatpush.bf16.msra.mxu1 %v2626_v14  ;;  %v2676_v42 = vld [vmem:[%s3432_s1 + $0x1f0] sm:$0xff]  ;;  %v2659_v52 = vld [vmem:[%s3432_s1 + $0x168] sm:$0xff]  ;;  %v2658_v56 = vld [vmem:[%s3432_s1 + $0x160] sm:$0xff] }
  0x11   :  { %1480 = vmatpush.bf16.msra.mxu3 %v2642_v15  ;;  %v376_v39 = vld [vmem:[#allocation1 + $0x12] sm:$0xff]  ;;  %v374_v40 = vld [vmem:[#allocation1] sm:$0xff]  ;;  %v375_v44 = vld [vmem:[#allocation1 + $0x9] sm:$0xff] }
  0x12   :  { %1442 = vmatpush.bf16.msra.mxu0 %v2617_v16  ;;  %v377_v43 = vld [vmem:[#allocation1 + $0x1b] sm:$0xff]  ;;  %v2972_v49 = vld [vmem:[#allocation1 + $0x24] sm:$0xff]  ;;  %v2976_v51 = vld [vmem:[#allocation1 + $0x2d] sm:$0xff] }
  0x13   :  { %1468 = vmatpush.bf16.msra.mxu2 %v2633_v17  ;;  %v2970_v48 = vld [vmem:[#allocation1 + $0x36] sm:$0xff]  ;;  %v2974_v50 = vld [vmem:[#allocation1 + $0x3f] sm:$0xff]  ;;  %v2675_v53 = vld [vmem:[%s3432_s1 + $0x1e8] sm:$0xff] }
  0x14   :  { %1455 = vmatpush.bf16.msra.mxu1 %v2625_v18  ;;  %383 = vst [vmem:[#allocation1] ss:$9 sm:$0xff] %v28_v45  ;;  %v2674_v57 = vld [vmem:[%s3432_s1 + $0x1e0] sm:$0xff]  ;;  %v2649_v58 = vld [vmem:[%s3432_s1 + $0x118] sm:$0xff]  ;;  %v2648_v62 = vld [vmem:[%s3432_s1 + $0x110] sm:$0xff] }
  0x15   :  { %1481 = vmatpush.bf16.msra.mxu3 %v2641_v19  ;;  %v2665_v59 = vld [vmem:[%s3432_s1 + $0x198] sm:$0xff]  ;;  %v2664_v63 = vld [vmem:[%s3432_s1 + $0x190] sm:$0xff]  ;;  %v2647_v2 = vld [vmem:[%s3432_s1 + $0x108] sm:$0xff] }
  0x16   :  { %1443 = vmatpush.bf16.msra.mxu0 %v2616_v21  ;;  %v2657_v60 = vld [vmem:[%s3432_s1 + $0x158] sm:$0xff]  ;;  %v2656_v0 = vld [vmem:[%s3432_s1 + $0x150] sm:$0xff]  ;;  %v2663_v3 = vld [vmem:[%s3432_s1 + $0x188] sm:$0xff] }
  0x17   :  { %1469 = vmatpush.bf16.msra.mxu2 %v2632_v22  ;;  %v2673_v61 = vld [vmem:[%s3432_s1 + $0x1d8] sm:$0xff]  ;;  %v2672_v1 = vld [vmem:[%s3432_s1 + $0x1d0] sm:$0xff]  ;;  %v2655_v4 = vld [vmem:[%s3432_s1 + $0x148] sm:$0xff] }
  0x18   :  { %1456 = vmatpush.bf16.msra.mxu1 %v2624_v23  ;;  %v2671_v5 = vld [vmem:[%s3432_s1 + $0x1c8] sm:$0xff]  ;;  %v2646_v6 = vld [vmem:[%s3432_s1 + $0x100] sm:$0xff]  ;;  %v2685_v8 = vld [vmem:[%s3432_s1 + $0x238] sm:$0xff] }
  0x19   :  { %1482 = vmatpush.bf16.msra.mxu3 %v2640_v24  ;;  %v2662_v7 = vld [vmem:[%s3432_s1 + $0x180] sm:$0xff]  ;;  %v2701_v9 = vld [vmem:[%s3432_s1 + $0x2b8] sm:$0xff]  ;;  %v2684_v14 = vld [vmem:[%s3432_s1 + $0x230] sm:$0xff] }
  0x1a   :  { %1444 = vmatpush.bf16.msra.mxu0 %v2615_v25  ;;  %v2654_v10 = vld [vmem:[%s3432_s1 + $0x140] sm:$0xff]  ;;  %v2693_v12 = vld [vmem:[%s3432_s1 + $0x278] sm:$0xff]  ;;  %v2700_v15 = vld [vmem:[%s3432_s1 + $0x2b0] sm:$0xff] }
  0x1b   :  { %1470 = vmatpush.bf16.msra.mxu2 %v2631_v26  ;;  %v2670_v11 = vld [vmem:[%s3432_s1 + $0x1c0] sm:$0xff]  ;;  %v2709_v13 = vld [vmem:[%s3432_s1 + $0x2f8] sm:$0xff]  ;;  %v2692_v16 = vld [vmem:[%s3432_s1 + $0x270] sm:$0xff] }
  0x1c   :  { %1457 = vmatpush.bf16.msra.mxu1 %v2623_v27  ;;  %v2708_v17 = vld [vmem:[%s3432_s1 + $0x2f0] sm:$0xff]  ;;  %v2683_v18 = vld [vmem:[%s3432_s1 + $0x228] sm:$0xff]  ;;  %v2682_v22 = vld [vmem:[%s3432_s1 + $0x220] sm:$0xff] }
  0x1d   :  { %1483 = vmatpush.bf16.msra.mxu3 %v2639_v28  ;;  %v2699_v19 = vld [vmem:[%s3432_s1 + $0x2a8] sm:$0xff]  ;;  %v2698_v23 = vld [vmem:[%s3432_s1 + $0x2a0] sm:$0xff]  ;;  %v2681_v26 = vld [vmem:[%s3432_s1 + $0x218] sm:$0xff] }
  0x1e   :  { %1445 = vmatpush.bf16.msra.mxu0 %v2614_v29  ;;  %v2691_v20 = vld [vmem:[%s3432_s1 + $0x268] sm:$0xff]  ;;  %v2690_v24 = vld [vmem:[%s3432_s1 + $0x260] sm:$0xff]  ;;  %v2697_v27 = vld [vmem:[%s3432_s1 + $0x298] sm:$0xff] }
  0x1f   :  { %1471 = vmatpush.bf16.msra.mxu2 %v2630_v30  ;;  %v2707_v21 = vld [vmem:[%s3432_s1 + $0x2e8] sm:$0xff]  ;;  %v2706_v25 = vld [vmem:[%s3432_s1 + $0x2e0] sm:$0xff]  ;;  %v2689_v28 = vld [vmem:[%s3432_s1 + $0x258] sm:$0xff] }
  0x20   :  { %1458 = vmatpush.bf16.msra.mxu1 %v2622_v33  ;;  %v2705_v29 = vld [vmem:[%s3432_s1 + $0x2d8] sm:$0xff]  ;;  %v2680_v30 = vld [vmem:[%s3432_s1 + $0x210] sm:$0xff]  ;;  %v384_v45 = vld [vmem:[#allocation1] sm:$0xff] }
  0x21   :  { %1484 = vmatpush.bf16.msra.mxu3 %v2638_v34  ;;  %1446 = vmatmul.bf16.vlgmr.msra.gmra.mxu0 %v374_v40  ;;  %v2704_v33 = vld [vmem:[%s3432_s1 + $0x2d0] sm:$0xff]  ;;  %v2679_v34 = vld [vmem:[%s3432_s1 + $0x208] sm:$0xff]  ;;  %v2717_v40 = vld [vmem:[%s3432_s1 + $0x338] sm:$0xff] }
  0x22   :  { %1490 = vmatpush.bf16.msrb.mxu0 %v2653_v31  ;;  %1472 = vmatmul.bf16.vlgmr.msra.gmra.mxu2 %v376_v39  ;;  %v2696_v31 = vld [vmem:[%s3432_s1 + $0x290] sm:$0xff]  ;;  %v2694_v39 = vld [vmem:[%s3432_s1 + $0x280] sm:$0xff] }
  0x23   :  { %1516 = vmatpush.bf16.msrb.mxu2 %v2669_v32  ;;  %1459 = vmatmul.bf16.vlgmr.msra.gmra.mxu1 %v375_v44  ;;  %v2688_v32 = vld [vmem:[%s3432_s1 + $0x250] sm:$0xff]  ;;  %v2725_v44 = vld [vmem:[%s3432_s1 + $0x378] sm:$0xff] }
  0x24   :  { %1503 = vmatpush.bf16.msrb.mxu1 %v2661_v35  ;;  %1485 = vmatmul.bf16.vlgmr.msra.gmra.mxu3 %v377_v43  ;;  %v2695_v35 = vld [vmem:[%s3432_s1 + $0x288] sm:$0xff]  ;;  %v2702_v43 = vld [vmem:[%s3432_s1 + $0x2c0] sm:$0xff] }
  0x25   :  { %1529 = vmatpush.bf16.msrb.mxu3 %v2677_v36  ;;  %v2687_v36 = vld [vmem:[%s3432_s1 + $0x248] sm:$0xff] }
  0x26   :  { %1491 = vmatpush.bf16.msrb.mxu0 %v2652_v37  ;;  %v2703_v37 = vld [vmem:[%s3432_s1 + $0x2c8] sm:$0xff] }
  0x27   :  { %1517 = vmatpush.bf16.msrb.mxu2 %v2668_v38  ;;  %v2678_v38 = vld [vmem:[%s3432_s1 + $0x200] sm:$0xff] }
  0x28   :  { %1504 = vmatpush.bf16.msrb.mxu1 %v2660_v41  ;;  %v2733_v41 = vld [vmem:[%s3432_s1 + $0x3b8] sm:$0xff] }
  0x29   :  { %1530 = vmatpush.bf16.msrb.mxu3 %v2676_v42  ;;  %v2686_v42 = vld [vmem:[%s3432_s1 + $0x240] sm:$0xff] }
  0x2a   :  { %1492 = vmatpush.bf16.msrb.mxu0 %v2651_v46  ;;  %v386_v46 = vld [vmem:[#allocation1 + $0x12] sm:$0xff] }
  0x2b   :  { %1518 = vmatpush.bf16.msrb.mxu2 %v2667_v47  ;;  %v2741_v47 = vld [vmem:[%s3432_s1 + $0x3f8] sm:$0xff] }
  0x2c   :  { %1505 = vmatpush.bf16.msrb.mxu1 %v2659_v52  ;;  %v2732_v52 = vld [vmem:[%s3432_s1 + $0x3b0] sm:$0xff] }
  0x2d   :  { %1531 = vmatpush.bf16.msrb.mxu3 %v2675_v53  ;;  %v3165_v53 = vld [vmem:[#allocation1 + $0x24] sm:$0xff] }
  0x2e   :  { %1493 = vmatpush.bf16.msrb.mxu0 %v2650_v54  ;;  %v3167_v54 = vld [vmem:[#allocation1 + $0x36] sm:$0xff] }
  0x2f   :  { %1519 = vmatpush.bf16.msrb.mxu2 %v2666_v55  ;;  %v3169_v55 = vld [vmem:[#allocation1 + $0x2d] sm:$0xff] }
  0x30   :  { %1506 = vmatpush.bf16.msrb.mxu1 %v2658_v56  ;;  %v3171_v56 = vld [vmem:[#allocation1 + $0x3f] sm:$0xff] }
  0x31   :  { %1532 = vmatpush.bf16.msrb.mxu3 %v2674_v57  ;;  %v2724_v57 = vld [vmem:[%s3432_s1 + $0x370] sm:$0xff] }
  0x32   :  { %1494 = vmatpush.bf16.msrb.mxu0 %v2649_v58  ;;  %v2740_v58 = vld [vmem:[%s3432_s1 + $0x3f0] sm:$0xff] }
  0x33   :  { %1520 = vmatpush.bf16.msrb.mxu2 %v2665_v59  ;;  %v2715_v59 = vld [vmem:[%s3432_s1 + $0x328] sm:$0xff] }
  0x34   :  { %1507 = vmatpush.bf16.msrb.mxu1 %v2657_v60  ;;  %v2731_v60 = vld [vmem:[%s3432_s1 + $0x3a8] sm:$0xff] }
  0x35   :  { %1533 = vmatpush.bf16.msrb.mxu3 %v2673_v61  ;;  %v2723_v61 = vld [vmem:[%s3432_s1 + $0x368] sm:$0xff] }
  0x36   :  { %1495 = vmatpush.bf16.msrb.mxu0 %v2648_v62  ;;  %v2739_v62 = vld [vmem:[%s3432_s1 + $0x3e8] sm:$0xff] }
  0x37   :  { %1521 = vmatpush.bf16.msrb.mxu2 %v2664_v63  ;;  %v2714_v63 = vld [vmem:[%s3432_s1 + $0x320] sm:$0xff] }
  0x38   :  { %1508 = vmatpush.bf16.msrb.mxu1 %v2656_v0  ;;  %v2730_v0 = vld [vmem:[%s3432_s1 + $0x3a0] sm:$0xff] }
  0x39   :  { %1534 = vmatpush.bf16.msrb.mxu3 %v2672_v1  ;;  %v2722_v1 = vld [vmem:[%s3432_s1 + $0x360] sm:$0xff] }
  0x3a   :  { %1496 = vmatpush.bf16.msrb.mxu0 %v2647_v2  ;;  %v2738_v2 = vld [vmem:[%s3432_s1 + $0x3e0] sm:$0xff] }
  0x3b   :  { %1522 = vmatpush.bf16.msrb.mxu2 %v2663_v3  ;;  %v2713_v3 = vld [vmem:[%s3432_s1 + $0x318] sm:$0xff] }
  0x3c   :  { %1509 = vmatpush.bf16.msrb.mxu1 %v2655_v4  ;;  %v2729_v4 = vld [vmem:[%s3432_s1 + $0x398] sm:$0xff] }
  0x3d   :  { %1535 = vmatpush.bf16.msrb.mxu3 %v2671_v5  ;;  %v2721_v5 = vld [vmem:[%s3432_s1 + $0x358] sm:$0xff] }
  0x3e   :  { %1497 = vmatpush.bf16.msrb.mxu0 %v2646_v6  ;;  %v2737_v6 = vld [vmem:[%s3432_s1 + $0x3d8] sm:$0xff] }
  0x3f   :  { %1523 = vmatpush.bf16.msrb.mxu2 %v2662_v7  ;;  %v2712_v7 = vld [vmem:[%s3432_s1 + $0x310] sm:$0xff] }
  0x40   :  { %1510 = vmatpush.bf16.msrb.mxu1 %v2654_v10  ;;  %v2736_v10 = vld [vmem:[%s3432_s1 + $0x3d0] sm:$0xff] }
  0x41   :  { %1536 = vmatpush.bf16.msrb.mxu3 %v2670_v11  ;;  %1498 = vmatmul.bf16.vlgmr.msrb.gmra.mxu0 %v2972_v49  ;;  %v385_v49 = vld [vmem:[#allocation1 + $0x9] sm:$0xff] }
  0x42   :  { %1542 = vmatpush.bf16.msra.mxu0 %v2685_v8  ;;  %1524 = vmatmul.bf16.vlgmr.msrb.gmra.mxu2 %v2970_v48  ;;  %v29_v48 = vld [vmem:[%s3433_s0 + $0x10] sm:$0x3f]  ;;  %v2711_v11 = vld [vmem:[%s3432_s1 + $0x308] sm:$0xff] }
  0x43   :  { %1568 = vmatpush.bf16.msra.mxu2 %v2701_v9  ;;  %1511 = vmatmul.bf16.vlgmr.msrb.gmra.mxu1 %v2976_v51  ;;  %v387_v51 = vld [vmem:[#allocation1 + $0x1b] sm:$0xff]  ;;  %v2728_v8 = vld [vmem:[%s3432_s1 + $0x390] sm:$0xff] }
  0x44   :  { %1555 = vmatpush.bf16.msra.mxu1 %v2693_v12  ;;  %1537 = vmatmul.bf16.vlgmr.msrb.gmra.mxu3 %v2974_v50  ;;  %v2716_v50 = vld [vmem:[%s3432_s1 + $0x330] sm:$0xff]  ;;  %393 = vst [vmem:[#allocation1] ss:$9 sm:$0xff] %v29_v48  ;;  %v2727_v12 = vld [vmem:[%s3432_s1 + $0x388] sm:$0xff]  ;;  %v2758_v48 = vld [vmem:[%s3432_s1 + $0x480] sm:$0xff] }
  0x45   :  { %1581 = vmatpush.bf16.msra.mxu3 %v2709_v13  ;;  %v2720_v9 = vld [vmem:[%s3432_s1 + $0x350] sm:$0xff]  ;;  %v2719_v13 = vld [vmem:[%s3432_s1 + $0x348] sm:$0xff] }
  0x46   :  { %1543 = vmatpush.bf16.msra.mxu0 %v2684_v14  ;;  %v2735_v14 = vld [vmem:[%s3432_s1 + $0x3c8] sm:$0xff] }
  0x47   :  { %1569 = vmatpush.bf16.msra.mxu2 %v2700_v15  ;;  %v2710_v15 = vld [vmem:[%s3432_s1 + $0x300] sm:$0xff] }
  0x48   :  { %1556 = vmatpush.bf16.msra.mxu1 %v2692_v16  ;;  %v2726_v16 = vld [vmem:[%s3432_s1 + $0x380] sm:$0xff] }
  0x49   :  { %1582 = vmatpush.bf16.msra.mxu3 %v2708_v17  ;;  %v2749_v17 = vld [vmem:[%s3432_s1 + $0x438] sm:$0xff] }
  0x4a   :  { %1544 = vmatpush.bf16.msra.mxu0 %v2683_v18  ;;  %v2765_v18 = vld [vmem:[%s3432_s1 + $0x4b8] sm:$0xff] }
  0x4b   :  { %1570 = vmatpush.bf16.msra.mxu2 %v2699_v19  ;;  %v2718_v19 = vld [vmem:[%s3432_s1 + $0x340] sm:$0xff] }
  0x4c   :  { %1557 = vmatpush.bf16.msra.mxu1 %v2691_v20  ;;  %v2734_v20 = vld [vmem:[%s3432_s1 + $0x3c0] sm:$0xff] }
  0x4d   :  { %1583 = vmatpush.bf16.msra.mxu3 %v2707_v21  ;;  %v2757_v21 = vld [vmem:[%s3432_s1 + $0x478] sm:$0xff] }
  0x4e   :  { %1545 = vmatpush.bf16.msra.mxu0 %v2682_v22  ;;  %v2773_v22 = vld [vmem:[%s3432_s1 + $0x4f8] sm:$0xff] }
  0x4f   :  { %1571 = vmatpush.bf16.msra.mxu2 %v2698_v23  ;;  %v2748_v23 = vld [vmem:[%s3432_s1 + $0x430] sm:$0xff] }
  0x50   :  { %1558 = vmatpush.bf16.msra.mxu1 %v2690_v24  ;;  %v2764_v24 = vld [vmem:[%s3432_s1 + $0x4b0] sm:$0xff] }
  0x51   :  { %1584 = vmatpush.bf16.msra.mxu3 %v2706_v25  ;;  %v2756_v25 = vld [vmem:[%s3432_s1 + $0x470] sm:$0xff] }
  0x52   :  { %1546 = vmatpush.bf16.msra.mxu0 %v2681_v26  ;;  %v2772_v26 = vld [vmem:[%s3432_s1 + $0x4f0] sm:$0xff] }
  0x53   :  { %1572 = vmatpush.bf16.msra.mxu2 %v2697_v27  ;;  %v2747_v27 = vld [vmem:[%s3432_s1 + $0x428] sm:$0xff] }
  0x54   :  { %1559 = vmatpush.bf16.msra.mxu1 %v2689_v28  ;;  %v2763_v28 = vld [vmem:[%s3432_s1 + $0x4a8] sm:$0xff] }
  0x55   :  { %1585 = vmatpush.bf16.msra.mxu3 %v2705_v29  ;;  %v2755_v29 = vld [vmem:[%s3432_s1 + $0x468] sm:$0xff] }
  0x56   :  { %1547 = vmatpush.bf16.msra.mxu0 %v2680_v30  ;;  %v2771_v30 = vld [vmem:[%s3432_s1 + $0x4e8] sm:$0xff] }
  0x57   :  { %1573 = vmatpush.bf16.msra.mxu2 %v2696_v31  ;;  %v2746_v31 = vld [vmem:[%s3432_s1 + $0x420] sm:$0xff] }
  0x58   :  { %1560 = vmatpush.bf16.msra.mxu1 %v2688_v32  ;;  %v2762_v32 = vld [vmem:[%s3432_s1 + $0x4a0] sm:$0xff] }
  0x59   :  { %1586 = vmatpush.bf16.msra.mxu3 %v2704_v33  ;;  %v2754_v33 = vld [vmem:[%s3432_s1 + $0x460] sm:$0xff] }
  0x5a   :  { %1548 = vmatpush.bf16.msra.mxu0 %v2679_v34  ;;  %v2770_v34 = vld [vmem:[%s3432_s1 + $0x4e0] sm:$0xff] }
  0x5b   :  { %1574 = vmatpush.bf16.msra.mxu2 %v2695_v35  ;;  %v2745_v35 = vld [vmem:[%s3432_s1 + $0x418] sm:$0xff] }
  0x5c   :  { %1561 = vmatpush.bf16.msra.mxu1 %v2687_v36  ;;  %v2761_v36 = vld [vmem:[%s3432_s1 + $0x498] sm:$0xff] }
  0x5d   :  { %1587 = vmatpush.bf16.msra.mxu3 %v2703_v37  ;;  %v2753_v37 = vld [vmem:[%s3432_s1 + $0x458] sm:$0xff] }
  0x5e   :  { %1549 = vmatpush.bf16.msra.mxu0 %v2678_v38  ;;  %v2769_v38 = vld [vmem:[%s3432_s1 + $0x4d8] sm:$0xff] }
  0x5f   :  { %1575 = vmatpush.bf16.msra.mxu2 %v2694_v39  ;;  %v2744_v39 = vld [vmem:[%s3432_s1 + $0x410] sm:$0xff] }
  0x60   :  { %1562 = vmatpush.bf16.msra.mxu1 %v2686_v42  ;;  %v2768_v42 = vld [vmem:[%s3432_s1 + $0x4d0] sm:$0xff] }
  0x61   :  { %1588 = vmatpush.bf16.msra.mxu3 %v2702_v43  ;;  %1550 = vmatmul.bf16.vlgmr.msra.gmra.mxu0 %v384_v45  ;;  %v2743_v43 = vld [vmem:[%s3432_s1 + $0x408] sm:$0xff] }
  0x62   :  { %1594 = vmatpush.bf16.msrb.mxu0 %v2717_v40  ;;  %1576 = vmatmul.bf16.vlgmr.msra.gmra.mxu2 %v386_v46  ;;  %v2760_v40 = vld [vmem:[%s3432_s1 + $0x490] sm:$0xff]  ;;  %v2751_v45 = vld [vmem:[%s3432_s1 + $0x448] sm:$0xff] }
  0x63   :  { %1620 = vmatpush.bf16.msrb.mxu2 %v2733_v41  ;;  %1563 = vmatmul.bf16.vlgmr.msra.gmra.mxu1 %v385_v49  ;;  %v2752_v41 = vld [vmem:[%s3432_s1 + $0x450] sm:$0xff]  ;;  %v2767_v46 = vld [vmem:[%s3432_s1 + $0x4c8] sm:$0xff]  ;;  %v2781_v49 = vld [vmem:[%s3432_s1 + $0x538] sm:$0xff] }
  0x64   :  { %1607 = vmatpush.bf16.msrb.mxu1 %v2725_v44  ;;  %1589 = vmatmul.bf16.vlgmr.msra.gmra.mxu3 %v387_v51  ;;  %v2759_v44 = vld [vmem:[%s3432_s1 + $0x488] sm:$0xff]  ;;  %v2766_v51 = vld [vmem:[%s3432_s1 + $0x4c0] sm:$0xff] }
  0x65   :  { %1633 = vmatpush.bf16.msrb.mxu3 %v2741_v47  ;;  %v2742_v47 = vld [vmem:[%s3432_s1 + $0x400] sm:$0xff] }
  0x66   :  { %1595 = vmatpush.bf16.msrb.mxu0 %v2716_v50  ;;  %v2750_v50 = vld [vmem:[%s3432_s1 + $0x440] sm:$0xff] }
  0x67   :  { %1621 = vmatpush.bf16.msrb.mxu2 %v2732_v52  ;;  %v394_v52 = vld [vmem:[#allocation1] sm:$0xff] }
  0x68   :  { %1608 = vmatpush.bf16.msrb.mxu1 %v2724_v57  ;;  %v2780_v57 = vld [vmem:[%s3432_s1 + $0x530] sm:$0xff] }
  0x69   :  { %1634 = vmatpush.bf16.msrb.mxu3 %v2740_v58  ;;  %v2779_v58 = vld [vmem:[%s3432_s1 + $0x528] sm:$0xff] }
  0x6a   :  { %1596 = vmatpush.bf16.msrb.mxu0 %v2715_v59  ;;  %v2795_v59 = vld [vmem:[%s3434_s2] ss:$0 sm:$0xff] }
  0x6b   :  { %1622 = vmatpush.bf16.msrb.mxu2 %v2731_v60  ;;  %v2778_v60 = vld [vmem:[%s3432_s1 + $0x520] sm:$0xff] }
  0x6c   :  { %1609 = vmatpush.bf16.msrb.mxu1 %v2723_v61 }
  0x6d   :  { %1635 = vmatpush.bf16.msrb.mxu3 %v2739_v62 }
  0x6e   :  { %1597 = vmatpush.bf16.msrb.mxu0 %v2714_v63 }
  0x6f   :  { %1623 = vmatpush.bf16.msrb.mxu2 %v2730_v0  ;;  %v2777_v0 = vld [vmem:[%s3432_s1 + $0x518] sm:$0xff] }
  0x70   :  { %1610 = vmatpush.bf16.msrb.mxu1 %v2722_v1 }
  0x71   :  { %1636 = vmatpush.bf16.msrb.mxu3 %v2738_v2 }
  0x72   :  { %1598 = vmatpush.bf16.msrb.mxu0 %v2713_v3  ;;  %v2776_v3 = vld [vmem:[%s3432_s1 + $0x510] sm:$0xff] }
  0x73   :  { %1624 = vmatpush.bf16.msrb.mxu2 %v2729_v4  ;;  %v399_v4 = vld [vmem:[#allocation1 + $0x2d] sm:$0xff] }
  0x74   :  { %1611 = vmatpush.bf16.msrb.mxu1 %v2721_v5 }
  0x75   :  { %1637 = vmatpush.bf16.msrb.mxu3 %v2737_v6 }
  0x76   :  { %1599 = vmatpush.bf16.msrb.mxu0 %v2712_v7 }
  0x77   :  { %1625 = vmatpush.bf16.msrb.mxu2 %v2728_v8 }
  0x78   :  { %1612 = vmatpush.bf16.msrb.mxu1 %v2720_v9 }
  0x79   :  { %1638 = vmatpush.bf16.msrb.mxu3 %v2736_v10  ;;  %v2775_v10 = vld [vmem:[%s3432_s1 + $0x508] sm:$0xff] }
  0x7a   :  { %1600 = vmatpush.bf16.msrb.mxu0 %v2711_v11 }
  0x7b   :  { %1626 = vmatpush.bf16.msrb.mxu2 %v2727_v12  ;;  %v2774_v12 = vld [vmem:[%s3432_s1 + $0x500] sm:$0xff] }
  0x7c   :  { %1613 = vmatpush.bf16.msrb.mxu1 %v2719_v13 }
  0x7d   :  { %1639 = vmatpush.bf16.msrb.mxu3 %v2735_v14  ;;  %v398_v14 = vld [vmem:[#allocation1 + $0x24] sm:$0xff] }
  0x7e   :  { %1601 = vmatpush.bf16.msrb.mxu0 %v2710_v15 }
  0x7f   :  { %1627 = vmatpush.bf16.msrb.mxu2 %v2726_v16 }
  0x80   :  { %1614 = vmatpush.bf16.msrb.mxu1 %v2718_v19 }
  0x81   :  { %1640 = vmatpush.bf16.msrb.mxu3 %v2734_v20  ;;  %1602 = vmatmul.bf16.vlgmr.msrb.gmra.mxu0 %v3165_v53  ;;  %v396_v53 = vld [vmem:[#allocation1 + $0x12] sm:$0xff] }
  0x82   :  { %1646 = vmatpush.bf16.msra.mxu0 %v2749_v17  ;;  %1628 = vmatmul.bf16.vlgmr.msrb.gmra.mxu2 %v3167_v54  ;;  %v2782_v54 = vld [vmem:[%s3432_s1 + $0x540] sm:$0xff] }
  0x83   :  { %1672 = vmatpush.bf16.msra.mxu2 %v2765_v18  ;;  %1615 = vmatmul.bf16.vlgmr.msrb.gmra.mxu1 %v3169_v55  ;;  %v395_v55 = vld [vmem:[#allocation1 + $0x9] sm:$0xff] }
  0x84   :  { %1659 = vmatpush.bf16.msra.mxu1 %v2757_v21  ;;  %1641 = vmatmul.bf16.vlgmr.msrb.gmra.mxu3 %v3171_v56  ;;  %v397_v56 = vld [vmem:[#allocation1 + $0x1b] sm:$0xff] }
  0x85   :  { %1685 = vmatpush.bf16.msra.mxu3 %v2773_v22 }
  0x86   :  { %1647 = vmatpush.bf16.msra.mxu0 %v2748_v23 }
  0x87   :  { %1673 = vmatpush.bf16.msra.mxu2 %v2764_v24 }
  0x88   :  { %1660 = vmatpush.bf16.msra.mxu1 %v2756_v25 }
  0x89   :  { %1686 = vmatpush.bf16.msra.mxu3 %v2772_v26 }
  0x8a   :  { %1648 = vmatpush.bf16.msra.mxu0 %v2747_v27 }
  0x8b   :  { %1674 = vmatpush.bf16.msra.mxu2 %v2763_v28 }
  0x8c   :  { %1661 = vmatpush.bf16.msra.mxu1 %v2755_v29 }
  0x8d   :  { %1687 = vmatpush.bf16.msra.mxu3 %v2771_v30 }
  0x8e   :  { %1649 = vmatpush.bf16.msra.mxu0 %v2746_v31 }
  0x8f   :  { %1675 = vmatpush.bf16.msra.mxu2 %v2762_v32 }
  0x90   :  { %1662 = vmatpush.bf16.msra.mxu1 %v2754_v33 }
  0x91   :  { %1688 = vmatpush.bf16.msra.mxu3 %v2770_v34 }
  0x92   :  { %1650 = vmatpush.bf16.msra.mxu0 %v2745_v35 }
  0x93   :  { %1676 = vmatpush.bf16.msra.mxu2 %v2761_v36 }
  0x94   :  { %1663 = vmatpush.bf16.msra.mxu1 %v2753_v37 }
  0x95   :  { %1689 = vmatpush.bf16.msra.mxu3 %v2769_v38 }
  0x96   :  { %1651 = vmatpush.bf16.msra.mxu0 %v2744_v39 }
  0x97   :  { %1677 = vmatpush.bf16.msra.mxu2 %v2760_v40  ;;  %v1740_v40 = vld [vmem:[%s3436_s3 + $0x38] sm:$0xf] }
  0x98   :  { %1664 = vmatpush.bf16.msra.mxu1 %v2752_v41  ;;  %v1774_v41 = vunpack.c.l.b16 %v1740_v40 }
  0x99   :  { %1690 = vmatpush.bf16.msra.mxu3 %v2768_v42 }
  0x9a   :  { %1652 = vmatpush.bf16.msra.mxu0 %v2743_v43  ;;  %v1782_v43 = vpack.c.b16 %v1774_v41, %v1774_v41 }
  0x9b   :  { %1678 = vmatpush.bf16.msra.mxu2 %v2759_v44 }
  0x9c   :  { %1665 = vmatpush.bf16.msra.mxu1 %v2751_v45  ;;  %v1796_v44 = vsel %vm1794_vm1, %v1782_v43, 0 }
  0x9d   :  { %1691 = vmatpush.bf16.msra.mxu3 %v2767_v46  ;;  %v2789_v46 = vld [vmem:[%s3436_s3 + $0x30] sm:$0xff] }
  0x9e   :  { %1653 = vmatpush.bf16.msra.mxu0 %v2742_v47  ;;  %v1447_v61 = vpop.f32.mrf.mxu0 }
  0x9f   :  { %1679 = vmatpush.bf16.msra.mxu2 %v2758_v48  ;;  %v1448_v62 = vadd.f32 %v2795_v59, %v1447_v61  ;;  %v2783_v59 = vld [vmem:[%s3436_s3] sm:$0xff] }
  0xa0   :  { %1666 = vmatpush.bf16.msra.mxu1 %v2750_v50  ;;  %v1460_v63 = vpop.f32.mrf.mxu1  ;;  %v2788_v50 = vld [vmem:[%s3436_s3 + $0x28] sm:$0xff] }
  0xa1   :  { %1692 = vmatpush.bf16.msra.mxu3 %v2766_v51  ;;  %1654 = vmatmul.bf16.vlgmr.msra.gmra.mxu0 %v394_v52  ;;  %v1461_v1 = vadd.f32 %v1460_v63, %v1448_v62  ;;  %v2787_v52 = vld [vmem:[%s3436_s3 + $0x20] sm:$0xff]  ;;  %v1823_v62 = vld [vmem:[%s3437_s5 + $0x28] sm:$0x3] }
  0xa2   :  { %1698 = vmatpush.bf16.msrb.mxu0 %v2781_v49  ;;  %1680 = vmatmul.bf16.vlgmr.msra.gmra.mxu2 %v396_v53 }
  0xa3   :  { %1667 = vmatmul.bf16.vlgmr.msra.gmra.mxu1 %v395_v55  ;;  %1798 = vmatpush.bf16.msrb.mxu2 %v1796_v44  ;;  %v2785_v55 = vld [vmem:[%s3436_s3 + $0x10] sm:$0xff] }
  0xa4   :  { %1718 = vmatpush.bf16.msrb.mxu1 %v2782_v54  ;;  %1693 = vmatmul.bf16.vlgmr.msra.gmra.mxu3 %v397_v56  ;;  %v2786_v54 = vld [vmem:[%s3436_s3 + $0x18] sm:$0xff]  ;;  %v2784_v56 = vld [vmem:[%s3436_s3 + $0x8] sm:$0xff] }
  0xa5   :  { %v1473_v2 = vpop.f32.mrf.mxu2 }
  0xa6   :  { %1699 = vmatpush.bf16.msrb.mxu0 %v2780_v57  ;;  %v1474_v5 = vadd.f32 %v1473_v2, %v1461_v1  ;;  %v1449_v7 = vpop.f32.mrf.mxu0  ;;  %v1849_v1 = vunpack.c.l.b16 %v1823_v62 }
  0xa7   :  { %v1486_v6 = vpop.f32.mrf.mxu3  ;;  %1799 = vmatpush.bf16.msrb.mxu2 %v2789_v46  ;;  %v2794_v7 = vld [vmem:[%s3437_s5 + $0x20] sm:$0xff] }
  0xa8   :  { %v1487_v8 = vadd.f32 %v1486_v6, %v1474_v5  ;;  %v1462_v9 = vpop.f32.mrf.mxu1 }
  0xaa   :  { %1700 = vmatpush.bf16.msrb.mxu0 %v2779_v58 }
  0xab   :  { %1800 = vmatpush.bf16.msrb.mxu2 %v2788_v50 }
  0xad   :  { %v1475_v11 = vpop.f32.mrf.mxu2 }
  0xae   :  { %1701 = vmatpush.bf16.msrb.mxu0 %v2778_v60  ;;  %v2793_v11 = vld [vmem:[%s3437_s5 + $0x18] sm:$0xff] }
  0xaf   :  { %v1488_v13 = vpop.f32.mrf.mxu3  ;;  %1801 = vmatpush.bf16.msrb.mxu2 %v2787_v52 }
  0xb2   :  { %1702 = vmatpush.bf16.msrb.mxu0 %v2777_v0 }
  0xb3   :  { %2563 = vmatmul.msk.bf16.vlgmr.msrb.gmra.mxu1 %vm1435_vm0, %v399_v4  ;;  %1802 = vmatpush.bf16.msrb.mxu2 %v2786_v54 }
  0xb6   :  { %1703 = vmatpush.bf16.msrb.mxu0 %v2776_v3  ;;  %v1855_v3 = vpack.c.b16 %v1849_v1, %v1849_v1 }
  0xb7   :  { %1803 = vmatpush.bf16.msrb.mxu2 %v2785_v55 }
  0xb8   :  { %v1867_v5 = vsel %vm1865_vm2, %v1855_v3, 0 }
  0xb9   :  { %1871 = vmatpush.bf16.msrb.mxu3 %v1867_v5 }
  0xba   :  { %1704 = vmatpush.bf16.msrb.mxu0 %v2775_v10 }
  0xbb   :  { %1804 = vmatpush.bf16.msrb.mxu2 %v2784_v56 }
  0xbd   :  { %1872 = vmatpush.bf16.msrb.mxu3 %v2794_v7 }
  0xbe   :  { %1705 = vmatpush.bf16.msrb.mxu0 %v2774_v12  ;;  %v1499_v15 = vpop.f32.mrf.mxu0 }
  0xbf   :  { %v1500_v16 = vadd.f32 %v1499_v15, %v1487_v8  ;;  %1805 = vmatpush.bf16.msrb.mxu2 %v2783_v59 }
  0xc0   :  { %v1512_v17 = vpop.f32.mrf.mxu1 }
  0xc1   :  { %1706 = vmatmul.bf16.vlgmr.msrb.gmra.mxu0 %v398_v14  ;;  %v1513_v18 = vadd.f32 %v1512_v17, %v1500_v16  ;;  %1873 = vmatpush.bf16.msrb.mxu3 %v2793_v11  ;;  %v2792_v14 = vld [vmem:[%s3437_s5 + $0x10] sm:$0xff] }
  0xc5   :  { %v1525_v19 = vpop.f32.mrf.mxu2  ;;  %1874 = vmatpush.bf16.msrb.mxu3 %v2792_v14 }
  0xc6   :  { %v1526_v20 = vadd.f32 %v1525_v19, %v1513_v18  ;;  %v1501_v22 = vpop.f32.mrf.mxu0 }
  0xc7   :  { %v1538_v21 = vpop.f32.mrf.mxu3 }
  0xc8   :  { %v1539_v23 = vadd.f32 %v1538_v21, %v1526_v20  ;;  %v1514_v24 = vpop.f32.mrf.mxu1 }
  0xcd   :  { %v1527_v25 = vpop.f32.mrf.mxu2 }
  0xce   :  { %v2791_v25 = vld [vmem:[%s3437_s5 + $0x8] sm:$0xff] }
  0xcf   :  { %v1540_v26 = vpop.f32.mrf.mxu3  ;;  %1875 = vmatpush.bf16.msrb.mxu3 %v2791_v25 }
  0xd0   :  { %v2790_v26 = vld [vmem:[%s3437_s5] sm:$0xff] }
  0xd3   :  { %1876 = vmatpush.bf16.msrb.mxu3 %v2790_v26 }
  0xde   :  { %v1551_v27 = vpop.f32.mrf.mxu0 }
  0xdf   :  { %v1552_v28 = vadd.f32 %v1551_v27, %v1539_v23  ;;  %v2796_v27 = vld [vmem:[%s3435_s4] ss:$0 sm:$0xff] }
  0xe0   :  { %v1564_v29 = vpop.f32.mrf.mxu1 }
  0xe1   :  { %v1565_v30 = vadd.f32 %v1564_v29, %v1552_v28 }
  0xe5   :  { %v1577_v31 = vpop.f32.mrf.mxu2 }
  0xe6   :  { %v1578_v32 = vadd.f32 %v1577_v31, %v1565_v30  ;;  %v1553_v34 = vpop.f32.mrf.mxu0 }
  0xe7   :  { %v1590_v33 = vpop.f32.mrf.mxu3 }
  0xe8   :  { %v1591_v35 = vadd.f32 %v1590_v33, %v1578_v32  ;;  %v1566_v36 = vpop.f32.mrf.mxu1  ;;  %v2797_v33 = vld [vmem:[%s3438_s6] ss:$0 sm:$0xff] }
  0xed   :  { %v1579_v37 = vpop.f32.mrf.mxu2 }
  0xef   :  { %v1592_v38 = vpop.f32.mrf.mxu3 }
  0xfe   :  { %v1603_v39 = vpop.f32.mrf.mxu0 }
  0xff   :  { %v1604_v61 = vadd.f32 %v1603_v39, %v1591_v35 }
 0x100   :  { %v1616_v42 = vpop.f32.mrf.mxu1 }
 0x101   :  { %v1617_v4 = vadd.f32 %v1616_v42, %v1604_v61 }
 0x105   :  { %v1629_v45 = vpop.f32.mrf.mxu2 }
 0x106   :  { %v1605_v48 = vpop.f32.mrf.mxu0  ;;  %v1630_v6 = vadd.f32 %v1629_v45, %v1617_v4 }
 0x107   :  { %v1642_v47 = vpop.f32.mrf.mxu3 }
 0x108   :  { %v1618_v49 = vpop.f32.mrf.mxu1  ;;  %v1643_v10 = vadd.f32 %v1642_v47, %v1630_v6 }
 0x10d   :  { %v1631_v51 = vpop.f32.mrf.mxu2 }
 0x10f   :  { %v1644_v53 = vpop.f32.mrf.mxu3 }
 0x11e   :  { %v1655_v57 = vpop.f32.mrf.mxu0 }
 0x11f   :  { %v1656_v13 = vadd.f32 %v1655_v57, %v1643_v10 }
 0x120   :  { %v1668_v58 = vpop.f32.mrf.mxu1 }
 0x121   :  { %v1669_v15 = vadd.f32 %v1668_v58, %v1656_v13 }
 0x125   :  { %v1681_v60 = vpop.f32.mrf.mxu2 }
 0x126   :  { %v1657_v0 = vpop.f32.mrf.mxu0  ;;  %v1682_v16 = vadd.f32 %v1681_v60, %v1669_v15 }
 0x127   :  { %v1694_v63 = vpop.f32.mrf.mxu3 }
 0x128   :  { %v1670_v2 = vpop.f32.mrf.mxu1  ;;  %v1695_v18 = vadd.f32 %v1694_v63, %v1682_v16 }
 0x12d   :  { %v1683_v8 = vpop.f32.mrf.mxu2 }
 0x12f   :  { %v1696_v9 = vpop.f32.mrf.mxu3 }
 0x130   :  { %v1720_v12 = vpop.f32.mrf.mxu1 }
 0x138   :  { %v1722_v17 = vpop.f32.mrf.mxu1 }
 0x13e   :  { %v1707_v19 = vpop.f32.mrf.mxu0 }
 0x13f   :  { %v1708_v20 = vadd.f32 %v1707_v19, %v1695_v18 }
 0x141   :  { %v1721_v21 = vadd.f32 %v1720_v12, %v1708_v20 }
 0x143   :  { %v1724_v22 = vmax.f32 %v1721_v21, 0.0 }
 0x145   :  { %v1725_v23 = vpack.c.bf16 %v1724_v22, %v1724_v22 }
 0x146   :  { %v1709_v24 = vpop.f32.mrf.mxu0 }
 0x147   :  { %2592 = vmatmul.msk.bf16.vlgmr.msrb.gmra.mxu2 %vm1790_vm3, %v1725_v23 }
 0x1ca   :  { %v1807_v28 = vpop.f32.mrf.mxu2 }
 0x1cb   :  { %v1808_v29 = vadd.f32 %v2796_v27, %v1807_v28 }
 0x1cd   :  { %v1811_v30 = vmax.f32 %v1808_v29, 0.0 }
 0x1cf   :  { %v1812_v31 = vpack.c.bf16 %v1811_v30, %v1811_v30 }
 0x1d1   :  { %2613 = vmatmul.msk.bf16.vlgmr.msrb.gmra.mxu3 %vm1861_vm4, %v1812_v31 }
 0x1d2   :  { %v1809_v32 = vpop.f32.mrf.mxu2 }
 0x254   :  { %v1878_v34 = vpop.f32.mrf.mxu3 }
 0x255   :  { %v1879_v35 = vadd.f32 %v2797_v33, %v1878_v34 }
 0x257   :  { %1882 = vst [vmem:[%s3439_s7] sm:$0x3] %v1879_v35 }
 0x25c   :  { %v1880_v36 = vpop.f32.mrf.mxu3 }

</bundles_post_ra>
